<compile_context>
chip_gen: v7x
topology: tpu7x:2x2x1
jax: 0.10.0
libtpu: 0.0.40
codegen_flags: <defaults>
</compile_context>

<pallas_src>
import functools

import jax
import jax.numpy as jnp
from jax.experimental import pallas as pl
from jax.experimental.pallas import tpu as pltpu


def _im2col_3x3(pad_ref, H, W, mm_dtype):
    """Build the (H*W, 9*C) im2col patch matrix from a (H+2, W+2, C) padded scratch."""
    cols = []
    for dy in range(3):
        for dx in range(3):
            cols.append(
                pad_ref[dy:dy + H, dx:dx + W, :].astype(mm_dtype).reshape(H * W, -1))
    return jnp.concatenate(cols, axis=-1)          # (H*W, 9*C)


def fused_resblock_kernel(x_ref, w1_ref, b1_ref, w2_ref, b2_ref, o_ref, pad_ref,
                          *, res_scale, mm_dtype):
    # x_ref : (1, H, W, C)            input tile (identity)
    # w*_ref: (9*C, C)   b*_ref: (1, C)
    # o_ref : (1, H, W, C)
    # pad_ref: (H+2, W+2, C) f32 VMEM scratch, shared by both convs.
    _, H, W, C = o_ref.shape

    # Zero the padded scratch every grid step (cheap; ~(H+2)*(W+2)*C elems) so
    # correctness never depends on which TensorCore gets which grid index.
    # The 1-pixel zero border provides the "SAME" padding for both convs.
    pad_ref[...] = jnp.zeros_like(pad_ref)

    # ---- conv1 + bias + ReLU (single im2col MXU matmul, f32 accumulation) ----
    pad_ref[1:H + 1, 1:W + 1, :] = x_ref[0].astype(jnp.float32)
    p1 = _im2col_3x3(pad_ref, H, W, mm_dtype)                      # (H*W, 9C)
    h = jnp.dot(p1, w1_ref[...], preferred_element_type=jnp.float32)
    h = jnp.maximum(h + b1_ref[...], 0.0)                          # (H*W, C) f32

    # Hidden activation stays in f32 VMEM (no HBM round trip, no rounding).
    # Reuse the same scratch: the zero border is still intact.
    pad_ref[1:H + 1, 1:W + 1, :] = h.reshape(H, W, C)

    # ---- conv2 + bias + residual add ----
    p2 = _im2col_3x3(pad_ref, H, W, mm_dtype)
    y = jnp.dot(p2, w2_ref[...], preferred_element_type=jnp.float32) + b2_ref[...]
    if res_scale != 1.0:                 # trace-time branch: skip mul when == 1
        y = y * res_scale

    out = x_ref[0].astype(jnp.float32).reshape(H * W, C) + y
    o_ref[0] = out.reshape(H, W, C).astype(o_ref.dtype)


def residual_block_nobn(x_nchw, w1, b1, w2, b2, res_scale=1.0,
                        matmul_dtype=jnp.bfloat16):
    """Fused Pallas implementation of ResidualBlockNoBN.forward.

    x_nchw: (N, C, H, W);  w*: (Cout, Cin, 3, 3) PyTorch layout;  b*: (C,)
    matmul_dtype: dtype of the MXU operands (bf16 default; f32 accumulation).
    """
    N, C, H, W = x_nchw.shape
    dtype = x_nchw.dtype

    # Layout glue only (no spatial padding copies): NCHW -> NHWC, and repack the
    # conv weights into im2col form (9*Cin, Cout) matching the patch column order.
    x = jnp.transpose(x_nchw, (0, 2, 3, 1))                              # NHWC
    w1k = jnp.transpose(w1, (2, 3, 1, 0)).reshape(9 * C, C).astype(matmul_dtype)
    w2k = jnp.transpose(w2, (2, 3, 1, 0)).reshape(9 * C, C).astype(matmul_dtype)
    b1k = b1.reshape(1, C).astype(jnp.float32)
    b2k = b2.reshape(1, C).astype(jnp.float32)

    kernel = functools.partial(fused_resblock_kernel,
                               res_scale=float(res_scale),
                               mm_dtype=matmul_dtype)

    out = pl.pallas_call(
        kernel,
        out_shape=jax.ShapeDtypeStruct((N, H, W, C), dtype),
        grid=(N,),
        in_specs=[
            pl.BlockSpec((1, H, W, C), lambda n: (n, 0, 0, 0)),   # x (unpadded)
            pl.BlockSpec((9 * C, C), lambda n: (0, 0)),           # w1 (im2col)
            pl.BlockSpec((1, C), lambda n: (0, 0)),               # b1
            pl.BlockSpec((9 * C, C), lambda n: (0, 0)),           # w2 (im2col)
            pl.BlockSpec((1, C), lambda n: (0, 0)),               # b2
        ],
        out_specs=pl.BlockSpec((1, H, W, C), lambda n: (n, 0, 0, 0)),
        scratch_shapes=[pltpu.VMEM((H + 2, W + 2, C), jnp.float32)],
        compiler_params=pltpu.CompilerParams(
            dimension_semantics=("parallel",),
            vmem_limit_bytes=32 * 1024 * 1024),
    )(x, w1k, b1k, w2k, b2k)

    return jnp.transpose(out, (0, 3, 1, 2))                              # NCHW


def reference_forward(x, w1, b1, w2, b2, res_scale=1.0):
    """Pure-JAX reference (mirrors the PyTorch forward)."""
    dn = ("NCHW", "OIHW", "NCHW")
    h = jax.lax.conv_general_dilated(x, w1, (1, 1), "SAME", dimension_numbers=dn)
    h = jnp.maximum(h + b1[None, :, None, None], 0.0)
    o = jax.lax.conv_general_dilated(h, w2, (1, 1), "SAME", dimension_numbers=dn)
    o = o + b2[None, :, None, None]
    return x + o * res_scale


if __name__ == "__main__":
    # Small but conv-consistent shapes: N=2, num_feat=32, H=W=16.
    N, C, H, W = 2, 32, 16, 16
    res_scale = 1.0

    key = jax.random.PRNGKey(0)
    kx, kw1, kb1, kw2, kb2 = jax.random.split(key, 5)

    x = jax.random.normal(kx, (N, C, H, W), dtype=jnp.float32)

    # Deterministic init mimicking default_init_weights(scale=0.1).
    fan_in = C * 3 * 3
    w_std = (2.0 / fan_in) ** 0.5 * 0.1
    w1 = jax.random.normal(kw1, (C, C, 3, 3), dtype=jnp.float32) * w_std
    w2 = jax.random.normal(kw2, (C, C, 3, 3), dtype=jnp.float32) * w_std
    b1 = jax.random.normal(kb1, (C,), dtype=jnp.float32) * 0.01
    b2 = jax.random.normal(kb2, (C,), dtype=jnp.float32) * 0.01

    ref = reference_forward(x, w1, b1, w2, b2, res_scale)

    # f32 MXU operands: tight check against the f32 reference.
    fwd_f32 = jax.jit(functools.partial(residual_block_nobn, res_scale=res_scale,
                                        matmul_dtype=jnp.float32))
    out_f32 = jax.block_until_ready(fwd_f32(x, w1, b1, w2, b2))
    assert out_f32.shape == (N, C, H, W) and out_f32.dtype == x.dtype
    assert jnp.allclose(out_f32, ref, atol=2e-3, rtol=2e-3), (
        f"f32 path max abs err {jnp.max(jnp.abs(out_f32 - ref))}")

    # Default perf path: bf16 MXU operands, f32 accumulation.  Looser tolerance
    # reflects bf16 input rounding (~2^-9 relative) of activations/weights.
    fwd = jax.jit(functools.partial(residual_block_nobn, res_scale=res_scale))
    out = jax.block_until_ready(fwd(x, w1, b1, w2, b2))
    assert out.shape == (N, C, H, W) and out.dtype == x.dtype
    assert jnp.allclose(out, ref, atol=1e-2, rtol=1e-2), (
        f"bf16 path max abs err {jnp.max(jnp.abs(out - ref))}")

    print("KERNEL_OK")
</pallas_src>

<mosaic_0001>
module attributes {stable_mosaic.version = 11 : i64} {
  func.func @fused_resblock_kernel(%arg0: i32, %arg1: memref<1x16x16x32xf32, #tpu.memory_space<vmem>>, %arg2: memref<288x32xf32, #tpu.memory_space<vmem>>, %arg3: memref<1x32xf32, #tpu.memory_space<vmem>>, %arg4: memref<288x32xf32, #tpu.memory_space<vmem>>, %arg5: memref<1x32xf32, #tpu.memory_space<vmem>>, %arg6: memref<1x16x16x32xf32, #tpu.memory_space<vmem>>, %arg7: memref<18x18x32xf32, #tpu.memory_space<vmem>>) attributes {dimension_semantics = [#tpu.dimension_semantics<parallel>], iteration_bounds = array<i64: 2>, scalar_prefetch = 0 : i64, scratch_operands = 1 : i64, tpu.core_type = #tpu.core_type<tc>, window_params = [{transform_indices = @transform_0, window_bounds = array<i64: 1, 16, 16, 32>}, {pipeline_mode = #tpu.pipeline_mode<synchronous>, transform_indices = @transform_1, window_bounds = array<i64: 288, 32>}, {pipeline_mode = #tpu.pipeline_mode<synchronous>, transform_indices = @transform_2, window_bounds = array<i64: 1, 32>}, {pipeline_mode = #tpu.pipeline_mode<synchronous>, transform_indices = @transform_3, window_bounds = array<i64: 288, 32>}, {pipeline_mode = #tpu.pipeline_mode<synchronous>, transform_indices = @transform_4, window_bounds = array<i64: 1, 32>}, {transform_indices = @transform_5, window_bounds = array<i64: 1, 16, 16, 32>}]} {
    %cst = arith.constant 0.000000e+00 : f32
    %0 = vector.broadcast %cst : f32 to vector<18x18x32xf32>
    %c0 = arith.constant 0 : index
    %c0_0 = arith.constant 0 : index
    %c0_1 = arith.constant 0 : index
    %1 = vector.load %arg7[%c0, %c0_0, %c0_1] : memref<18x18x32xf32, #tpu.memory_space<vmem>>, vector<18x18x32xf32>
    tpu.vector_store %arg7[%c0, %c0_0, %c0_1], %0 {strides = array<i32>} : memref<18x18x32xf32, #tpu.memory_space<vmem>>, vector<18x18x32xf32>,
    %c0_2 = arith.constant 0 : index
    %c0_3 = arith.constant 0 : index
    %c0_4 = arith.constant 0 : index
    %c0_5 = arith.constant 0 : index
    %2 = vector.load %arg1[%c0_2, %c0_3, %c0_4, %c0_5] : memref<1x16x16x32xf32, #tpu.memory_space<vmem>>, vector<1x16x16x32xf32>
    %3 = vector.shape_cast %2 : vector<1x16x16x32xf32> to vector<16x16x32xf32>
    %c1 = arith.constant 1 : index
    %c1_6 = arith.constant 1 : index
    %c0_7 = arith.constant 0 : index
    %4 = vector.load %arg7[%c1, %c1_6, %c0_7] : memref<18x18x32xf32, #tpu.memory_space<vmem>>, vector<16x16x32xf32>
    tpu.vector_store %arg7[%c1, %c1_6, %c0_7], %3 {strides = array<i32>} : memref<18x18x32xf32, #tpu.memory_space<vmem>>, vector<16x16x32xf32>,
    %c0_8 = arith.constant 0 : index
    %c0_9 = arith.constant 0 : index
    %c0_10 = arith.constant 0 : index
    %5 = vector.load %arg7[%c0_8, %c0_9, %c0_10] : memref<18x18x32xf32, #tpu.memory_space<vmem>>, vector<16x16x32xf32>
    %6 = vector.shape_cast %5 : vector<16x16x32xf32> to vector<256x32xf32>
    %c0_11 = arith.constant 0 : index
    %c1_12 = arith.constant 1 : index
    %c0_13 = arith.constant 0 : index
    %7 = vector.load %arg7[%c0_11, %c1_12, %c0_13] : memref<18x18x32xf32, #tpu.memory_space<vmem>>, vector<16x16x32xf32>
    %8 = vector.shape_cast %7 : vector<16x16x32xf32> to vector<256x32xf32>
    %c0_14 = arith.constant 0 : index
    %c2 = arith.constant 2 : index
    %c0_15 = arith.constant 0 : index
    %9 = vector.load %arg7[%c0_14, %c2, %c0_15] : memref<18x18x32xf32, #tpu.memory_space<vmem>>, vector<16x16x32xf32>
    %10 = vector.shape_cast %9 : vector<16x16x32xf32> to vector<256x32xf32>
    %c1_16 = arith.constant 1 : index
    %c0_17 = arith.constant 0 : index
    %c0_18 = arith.constant 0 : index
    %11 = vector.load %arg7[%c1_16, %c0_17, %c0_18] : memref<18x18x32xf32, #tpu.memory_space<vmem>>, vector<16x16x32xf32>
    %12 = vector.shape_cast %11 : vector<16x16x32xf32> to vector<256x32xf32>
    %c1_19 = arith.constant 1 : index
    %c1_20 = arith.constant 1 : index
    %c0_21 = arith.constant 0 : index
    %13 = vector.load %arg7[%c1_19, %c1_20, %c0_21] : memref<18x18x32xf32, #tpu.memory_space<vmem>>, vector<16x16x32xf32>
    %14 = vector.shape_cast %13 : vector<16x16x32xf32> to vector<256x32xf32>
    %c1_22 = arith.constant 1 : index
    %c2_23 = arith.constant 2 : index
    %c0_24 = arith.constant 0 : index
    %15 = vector.load %arg7[%c1_22, %c2_23, %c0_24] : memref<18x18x32xf32, #tpu.memory_space<vmem>>, vector<16x16x32xf32>
    %16 = vector.shape_cast %15 : vector<16x16x32xf32> to vector<256x32xf32>
    %c2_25 = arith.constant 2 : index
    %c0_26 = arith.constant 0 : index
    %c0_27 = arith.constant 0 : index
    %17 = vector.load %arg7[%c2_25, %c0_26, %c0_27] : memref<18x18x32xf32, #tpu.memory_space<vmem>>, vector<16x16x32xf32>
    %18 = vector.shape_cast %17 : vector<16x16x32xf32> to vector<256x32xf32>
    %c2_28 = arith.constant 2 : index
    %c1_29 = arith.constant 1 : index
    %c0_30 = arith.constant 0 : index
    %19 = vector.load %arg7[%c2_28, %c1_29, %c0_30] : memref<18x18x32xf32, #tpu.memory_space<vmem>>, vector<16x16x32xf32>
    %20 = vector.shape_cast %19 : vector<16x16x32xf32> to vector<256x32xf32>
    %c2_31 = arith.constant 2 : index
    %c2_32 = arith.constant 2 : index
    %c0_33 = arith.constant 0 : index
    %21 = vector.load %arg7[%c2_31, %c2_32, %c0_33] : memref<18x18x32xf32, #tpu.memory_space<vmem>>, vector<16x16x32xf32>
    %22 = vector.shape_cast %21 : vector<16x16x32xf32> to vector<256x32xf32>
    %23 = tpu.concatenate %6, %8, %10, %12, %14, %16, %18, %20, %22 in 1 : vector<256x32xf32>, vector<256x32xf32>, vector<256x32xf32>, vector<256x32xf32>, vector<256x32xf32>, vector<256x32xf32>, vector<256x32xf32>, vector<256x32xf32>, vector<256x32xf32> -> vector<256x288xf32>
    %c0_34 = arith.constant 0 : index
    %c0_35 = arith.constant 0 : index
    %24 = vector.load %arg2[%c0_34, %c0_35] : memref<288x32xf32, #tpu.memory_space<vmem>>, vector<288x32xf32>
    %cst_36 = arith.constant dense<0.000000e+00> : vector<256x32xf32>
    %25 = tpu.matmul %23, %24, %cst_36 {dimension_numbers = #tpu.dot_dimension_numbers<[1], [0], [0], [1], [0, 0, 1, 1], [], []>} : vector<256x288xf32>, vector<288x32xf32>, vector<256x32xf32> -> vector<256x32xf32>
    %c0_37 = arith.constant 0 : index
    %c0_38 = arith.constant 0 : index
    %26 = vector.load %arg3[%c0_37, %c0_38] : memref<1x32xf32, #tpu.memory_space<vmem>>, vector<1x32xf32>
    %27 = vector.broadcast %26 : vector<1x32xf32> to vector<256x32xf32>
    %28 = arith.addf %25, %27 : vector<256x32xf32>
    %cst_39 = arith.constant 0.000000e+00 : f32
    %29 = vector.broadcast %cst_39 : f32 to vector<256x32xf32>
    %30 = arith.maximumf %28, %29 : vector<256x32xf32>
    %31 = vector.shape_cast %30 : vector<256x32xf32> to vector<16x16x32xf32>
    %c1_40 = arith.constant 1 : index
    %c1_41 = arith.constant 1 : index
    %c0_42 = arith.constant 0 : index
    %32 = vector.load %arg7[%c1_40, %c1_41, %c0_42] : memref<18x18x32xf32, #tpu.memory_space<vmem>>, vector<16x16x32xf32>
    tpu.vector_store %arg7[%c1_40, %c1_41, %c0_42], %31 {strides = array<i32>} : memref<18x18x32xf32, #tpu.memory_space<vmem>>, vector<16x16x32xf32>,
    %c0_43 = arith.constant 0 : index
    %c0_44 = arith.constant 0 : index
    %c0_45 = arith.constant 0 : index
    %33 = vector.load %arg7[%c0_43, %c0_44, %c0_45] : memref<18x18x32xf32, #tpu.memory_space<vmem>>, vector<16x16x32xf32>
    %34 = vector.shape_cast %33 : vector<16x16x32xf32> to vector<256x32xf32>
    %c0_46 = arith.constant 0 : index
    %c1_47 = arith.constant 1 : index
    %c0_48 = arith.constant 0 : index
    %35 = vector.load %arg7[%c0_46, %c1_47, %c0_48] : memref<18x18x32xf32, #tpu.memory_space<vmem>>, vector<16x16x32xf32>
    %36 = vector.shape_cast %35 : vector<16x16x32xf32> to vector<256x32xf32>
    %c0_49 = arith.constant 0 : index
    %c2_50 = arith.constant 2 : index
    %c0_51 = arith.constant 0 : index
    %37 = vector.load %arg7[%c0_49, %c2_50, %c0_51] : memref<18x18x32xf32, #tpu.memory_space<vmem>>, vector<16x16x32xf32>
    %38 = vector.shape_cast %37 : vector<16x16x32xf32> to vector<256x32xf32>
    %c1_52 = arith.constant 1 : index
    %c0_53 = arith.constant 0 : index
    %c0_54 = arith.constant 0 : index
    %39 = vector.load %arg7[%c1_52, %c0_53, %c0_54] : memref<18x18x32xf32, #tpu.memory_space<vmem>>, vector<16x16x32xf32>
    %40 = vector.shape_cast %39 : vector<16x16x32xf32> to vector<256x32xf32>
    %c1_55 = arith.constant 1 : index
    %c1_56 = arith.constant 1 : index
    %c0_57 = arith.constant 0 : index
    %41 = vector.load %arg7[%c1_55, %c1_56, %c0_57] : memref<18x18x32xf32, #tpu.memory_space<vmem>>, vector<16x16x32xf32>
    %42 = vector.shape_cast %41 : vector<16x16x32xf32> to vector<256x32xf32>
    %c1_58 = arith.constant 1 : index
    %c2_59 = arith.constant 2 : index
    %c0_60 = arith.constant 0 : index
    %43 = vector.load %arg7[%c1_58, %c2_59, %c0_60] : memref<18x18x32xf32, #tpu.memory_space<vmem>>, vector<16x16x32xf32>
    %44 = vector.shape_cast %43 : vector<16x16x32xf32> to vector<256x32xf32>
    %c2_61 = arith.constant 2 : index
    %c0_62 = arith.constant 0 : index
    %c0_63 = arith.constant 0 : index
    %45 = vector.load %arg7[%c2_61, %c0_62, %c0_63] : memref<18x18x32xf32, #tpu.memory_space<vmem>>, vector<16x16x32xf32>
    %46 = vector.shape_cast %45 : vector<16x16x32xf32> to vector<256x32xf32>
    %c2_64 = arith.constant 2 : index
    %c1_65 = arith.constant 1 : index
    %c0_66 = arith.constant 0 : index
    %47 = vector.load %arg7[%c2_64, %c1_65, %c0_66] : memref<18x18x32xf32, #tpu.memory_space<vmem>>, vector<16x16x32xf32>
    %48 = vector.shape_cast %47 : vector<16x16x32xf32> to vector<256x32xf32>
    %c2_67 = arith.constant 2 : index
    %c2_68 = arith.constant 2 : index
    %c0_69 = arith.constant 0 : index
    %49 = vector.load %arg7[%c2_67, %c2_68, %c0_69] : memref<18x18x32xf32, #tpu.memory_space<vmem>>, vector<16x16x32xf32>
    %50 = vector.shape_cast %49 : vector<16x16x32xf32> to vector<256x32xf32>
    %51 = tpu.concatenate %34, %36, %38, %40, %42, %44, %46, %48, %50 in 1 : vector<256x32xf32>, vector<256x32xf32>, vector<256x32xf32>, vector<256x32xf32>, vector<256x32xf32>, vector<256x32xf32>, vector<256x32xf32>, vector<256x32xf32>, vector<256x32xf32> -> vector<256x288xf32>
    %c0_70 = arith.constant 0 : index
    %c0_71 = arith.constant 0 : index
    %52 = vector.load %arg4[%c0_70, %c0_71] : memref<288x32xf32, #tpu.memory_space<vmem>>, vector<288x32xf32>
    %cst_72 = arith.constant dense<0.000000e+00> : vector<256x32xf32>
    %53 = tpu.matmul %51, %52, %cst_72 {dimension_numbers = #tpu.dot_dimension_numbers<[1], [0], [0], [1], [0, 0, 1, 1], [], []>} : vector<256x288xf32>, vector<288x32xf32>, vector<256x32xf32> -> vector<256x32xf32>
    %c0_73 = arith.constant 0 : index
    %c0_74 = arith.constant 0 : index
    %54 = vector.load %arg5[%c0_73, %c0_74] : memref<1x32xf32, #tpu.memory_space<vmem>>, vector<1x32xf32>
    %55 = vector.broadcast %54 : vector<1x32xf32> to vector<256x32xf32>
    %56 = arith.addf %53, %55 : vector<256x32xf32>
    %c0_75 = arith.constant 0 : index
    %c0_76 = arith.constant 0 : index
    %c0_77 = arith.constant 0 : index
    %c0_78 = arith.constant 0 : index
    %57 = vector.load %arg1[%c0_75, %c0_76, %c0_77, %c0_78] : memref<1x16x16x32xf32, #tpu.memory_space<vmem>>, vector<1x16x16x32xf32>
    %58 = vector.shape_cast %57 : vector<1x16x16x32xf32> to vector<16x16x32xf32>
    %59 = vector.shape_cast %58 : vector<16x16x32xf32> to vector<256x32xf32>
    %60 = arith.addf %59, %56 : vector<256x32xf32>
    %61 = vector.shape_cast %60 : vector<256x32xf32> to vector<16x16x32xf32>
    %c0_79 = arith.constant 0 : index
    %c0_80 = arith.constant 0 : index
    %c0_81 = arith.constant 0 : index
    %c0_82 = arith.constant 0 : index
    %62 = vector.load %arg6[%c0_79, %c0_80, %c0_81, %c0_82] : memref<1x16x16x32xf32, #tpu.memory_space<vmem>>, vector<1x16x16x32xf32>
    %63 = vector.shape_cast %62 : vector<1x16x16x32xf32> to vector<16x16x32xf32>
    %64 = vector.shape_cast %61 : vector<16x16x32xf32> to vector<1x16x16x32xf32>
    tpu.vector_store %arg6[%c0_79, %c0_80, %c0_81, %c0_82], %64 {strides = array<i32>} : memref<1x16x16x32xf32, #tpu.memory_space<vmem>>, vector<1x16x16x32xf32>,
    return
  }
  func.func @transform_0(%arg0: i32) -> (i32, i32, i32, i32) {
    %c0_i32 = arith.constant 0 : i32
    %c0_i32_0 = arith.constant 0 : i32
    %c0_i32_1 = arith.constant 0 : i32
    %c0_i32_2 = arith.constant 0 : i32
    return %arg0, %c0_i32, %c0_i32_0, %c0_i32_1 : i32, i32, i32, i32
  }
  func.func @transform_1(%arg0: i32) -> (i32, i32) {
    %c0_i32 = arith.constant 0 : i32
    %c0_i32_0 = arith.constant 0 : i32
    %c0_i32_1 = arith.constant 0 : i32
    return %c0_i32, %c0_i32_0 : i32, i32
  }
  func.func @transform_2(%arg0: i32) -> (i32, i32) {
    %c0_i32 = arith.constant 0 : i32
    %c0_i32_0 = arith.constant 0 : i32
    %c0_i32_1 = arith.constant 0 : i32
    return %c0_i32, %c0_i32_0 : i32, i32
  }
  func.func @transform_3(%arg0: i32) -> (i32, i32) {
    %c0_i32 = arith.constant 0 : i32
    %c0_i32_0 = arith.constant 0 : i32
    %c0_i32_1 = arith.constant 0 : i32
    return %c0_i32, %c0_i32_0 : i32, i32
  }
  func.func @transform_4(%arg0: i32) -> (i32, i32) {
    %c0_i32 = arith.constant 0 : i32
    %c0_i32_0 = arith.constant 0 : i32
    %c0_i32_1 = arith.constant 0 : i32
    return %c0_i32, %c0_i32_0 : i32, i32
  }
  func.func @transform_5(%arg0: i32) -> (i32, i32, i32, i32) {
    %c0_i32 = arith.constant 0 : i32
    %c0_i32_0 = arith.constant 0 : i32
    %c0_i32_1 = arith.constant 0 : i32
    %c0_i32_2 = arith.constant 0 : i32
    return %arg0, %c0_i32, %c0_i32_0, %c0_i32_1 : i32, i32, i32, i32
  }
}

</mosaic_0001>

<bundles_post_ra>
// kernel: residual_block_nobn.1
= control target key start
LH: loop header
LB: loop body
LE: loop exit
PB: predicated region body
PF: predicated region fallthrough
CT: control target
= control target key end

     0   :  { %10 = vsyncpa [#allocation4], 0  ;;  %s7817_s0 = inlined_call_operand.vmem [shape: f32[2,16,16,32], index: 0, kind: input, shape index: {}]   ;;  %s7818_s1 = inlined_call_operand.vmem [shape: f32[288,32], index: 1, kind: input, shape index: {}]   ;;  %s7819_s2 = inlined_call_operand.vmem [shape: f32[1,32], index: 2, kind: input, shape index: {}]   ;;  %s7820_s3 = inlined_call_operand.vmem [shape: f32[288,32], index: 3, kind: input, shape index: {}]   ;;  %s7821_s4 = inlined_call_operand.vmem [shape: f32[1,32], index: 4, kind: input, shape index: {}]   ;;  %s7822_s5 = inlined_call_operand.hbm [shape: f32[2,16,16,32], index: 5, kind: output, shape index: {}]  }
   0x1   :  { %12 = vsyncpa [#allocation4 + $0x1], 0  ;;  %s5746_s18 = smov 0   ;;  %s5748_s19 = smov 0  }
   0x2   :  { %s5750_s20 = smov 0   ;;  %s5752_s21 = smov 0  }
   0x3 LB: > { %s5767_s22 = sadd.s32 4294967295, %s5706_s21   ;;  %s4257_s23 = sadd.s32 4294967294, %s5706_s21   ;;  %s5706_s21 = sphi %s5752_s21, %s7828_s21   ;;  %s5702_s20 = sphi %s5750_s20, %s7827_s20   ;;  %s5698_s19 = sphi %s5748_s19, %s7826_s19   ;;  %s5694_s18 = sphi %s5746_s18, %s7825_s18  }
   0x4   : > { %s5771_s24 = sadd.s32 1, %s5706_s21   ;;  %s135_s25 = sadd.s32 1, %s5702_s20 }
   0x5   : > { %s132_s26 = ssub.s32 %s5706_s21, %s5771_s24  ;;  %p145_p0 = scmp.ne.s32.totalorder %s5702_s20, %s5698_s19 }
   0x6   : > { %p133_p1 = scmp.eq.s32.totalorder %s132_s26, 0  ;;  %p146_p2 = scmp.eq.s32.totalorder %s5767_s22, 1 }
   0x7   : > { %p151_p3 = scmp.ne.s32.totalorder %s5698_s19, %s5694_s18  ;;  %p152_p4 = scmp.eq.s32.totalorder %s4257_s23, 1 }
   0x8   : > { %s5782_s27 = scalar_select %p133_p1, %s5702_s20, %s135_s25  }
   0x9   : > { %p5784_p5 = por %p146_p2, %p145_p0  ;;  %p5788_p6 = por %p152_p4, %p151_p3 }
   0xa   : > { %p4260_p7 = scmp.ge.s32.totalorder %s5706_s21, 1  ;;  %p190_p8 = scmp.lt.s32.totalorder %s5706_s21, 3 }
   0xc   : > { %p191_p9 = pnand %p4260_p7, %p190_p8 }
   0xd   : > { %vm223_vm0 = vcmask (!%p191_p9), 261120   ;;  %vm226_vm1 = vcmask (!%p191_p9), 254976   ;;  %p218_p10 = scmp.lt.s32.totalorder (!%p191_p9), %s5767_s22, 1  ;;  %v5708_v0 = vmov (!%p191_p9), 0.0   ;;  %v5709_v1 = vmov (!%p191_p9), 0.0|0.0   ;;  %v1595_v2 = vld [vmem:[%s7818_s1] sm:$0xff] (!%p191_p9) }
   0xe   : > { %194 = sbr.rel (%p191_p9) target bundleno = 996 (0x3e4), region = 40  ;;  %224 = vst.msk [vmem:[#allocation2] sm:$0xff] (!%p191_p9), %vm223_vm0, %v5708_v0  ;;  %225 = vst.msk [vmem:[#allocation2 + $0x8] sm:$0xff] (!%p191_p9), %vm223_vm0, %v5708_v0  ;;  %4521 = vmatprep.subr.bf16.mxu0 (!%p191_p9), %v5709_v1  ;;  %v1596_v3 = vld [vmem:[%s7818_s1 + $0x8] sm:$0xff] (!%p191_p9)  ;;  %v1597_v4 = vld [vmem:[%s7818_s1 + $0x10] sm:$0xff] (!%p191_p9)  ;;  %s5710_s10 = smov (!%p191_p9), 32  }
   0xf   : > { %227 = vst.msk [vmem:[#allocation2 + $0x10] sm:$0x3] (!%p191_p9), %vm226_vm1, %v5708_v0  ;;  %230 = vst.msk [vmem:[#allocation2 + $0x28] sm:$0x3] (!%p191_p9), %vm226_vm1, %v5708_v0  ;;  %v4522_v5 = vpack.c.bf16 (!%p191_p9), %v1596_v3, %v1595_v2  ;;  %v1598_v6 = vld [vmem:[%s7818_s1 + $0x18] sm:$0xff] (!%p191_p9)  ;;  %v1599_v8 = vld [vmem:[%s7818_s1 + $0x20] sm:$0xff] (!%p191_p9) }
  0x10   : > { %228 = vst.msk [vmem:[#allocation2 + $0x18] sm:$0xff] (!%p191_p9), %vm223_vm0, %v5708_v0  ;;  %229 = vst.msk [vmem:[#allocation2 + $0x20] sm:$0xff] (!%p191_p9), %vm223_vm0, %v5708_v0  ;;  %v4525_v7 = vpack.c.bf16 (!%p191_p9), %v1598_v6, %v1597_v4  ;;  %v1600_v9 = vld [vmem:[%s7818_s1 + $0x28] sm:$0xff] (!%p191_p9)  ;;  %v1601_v16 = vld [vmem:[%s7818_s1 + $0x30] sm:$0xff] (!%p191_p9)  ;;  %s5711_s23 = smov (!%p191_p9), 64   ;;  %s5712_s7 = smov (!%p191_p9), 96  }
  0x11   : > { %231 = vst.msk [vmem:[#allocation2 + $0x30] sm:$0xff] (!%p191_p9), %vm223_vm0, %v5708_v0  ;;  %232 = vst.msk [vmem:[#allocation2 + $0x38] sm:$0xff] (!%p191_p9), %vm223_vm0, %v5708_v0  ;;  %4523 = vmatpush1.bf16.msra.mxu0 (!%p191_p9), %v4522_v5  ;;  %v1602_v17 = vld [vmem:[%s7818_s1 + $0x38] sm:$0xff] (!%p191_p9)  ;;  %v4528_v21 = vpack.c.bf16 (!%p191_p9), %v1600_v9, %v1599_v8  ;;  %v1603_v36 = vld [vmem:[%s7818_s1 + $0x40] sm:$0xff] (!%p191_p9)  ;;  %vm1433_vm2 = vcmask (!%p191_p9), 523264   ;;  %vm1466_vm3 = vcmask (!%p191_p9), 785408  }
  0x12   : > { %233 = vst.msk [vmem:[#allocation2 + $0x40] sm:$0x3] (!%p191_p9), %vm226_vm1, %v5708_v0  ;;  %236 = vst.msk [vmem:[#allocation2 + $0x58] sm:$0x3] (!%p191_p9), %vm226_vm1, %v5708_v0  ;;  %4524 = vmatprep.subr.bf16.mxu0 (!%p191_p9), %v5709_v1  ;;  %v4531_v35 = vpack.c.bf16 (!%p191_p9), %v1602_v17, %v1601_v16  ;;  %v1604_v37 = vld [vmem:[%s7818_s1 + $0x48] sm:$0xff] (!%p191_p9)  ;;  %v1605_v51 = vld [vmem:[%s7818_s1 + $0x50] sm:$0xff] (!%p191_p9) }
  0x13   : > { %234 = vst.msk [vmem:[#allocation2 + $0x48] sm:$0xff] (!%p191_p9), %vm223_vm0, %v5708_v0  ;;  %235 = vst.msk [vmem:[#allocation2 + $0x50] sm:$0xff] (!%p191_p9), %vm223_vm0, %v5708_v0  ;;  %v4534_v48 = vpack.c.bf16 (!%p191_p9), %v1604_v37, %v1603_v36  ;;  %v1606_v52 = vld [vmem:[%s7818_s1 + $0x58] sm:$0xff] (!%p191_p9)  ;;  %v1607_v61 = vld [vmem:[%s7818_s1 + $0x60] sm:$0xff] (!%p191_p9)  ;;  %s5713_s16 = smov (!%p191_p9), [#allocation3]  }
  0x14   : > { %237 = vst.msk [vmem:[#allocation2 + $0x60] sm:$0xff] (!%p191_p9), %vm223_vm0, %v5708_v0  ;;  %238 = vst.msk [vmem:[#allocation2 + $0x68] sm:$0xff] (!%p191_p9), %vm223_vm0, %v5708_v0  ;;  %v4537_v58 = vpack.c.bf16 (!%p191_p9), %v1606_v52, %v1605_v51  ;;  %v1608_v62 = vld [vmem:[%s7818_s1 + $0x68] sm:$0xff] (!%p191_p9)  ;;  %v1609_v17 = vld [vmem:[%s7818_s1 + $0x70] sm:$0xff] (!%p191_p9)  ;;  %s5648_s25 = sshll.u32 (!%p191_p9), %s5713_s16, 4  ;;  %s5649_s25 = int_to_ptr.vmem [resolvable:$false] %s5648_s25 }
  0x15   : > { %239 = vst.msk [vmem:[#allocation2 + $0x70] sm:$0x3] %vm226_vm1, %v5708_v0  ;;  %242 = vst.msk [vmem:[#allocation2 + $0x88] sm:$0x3] %vm226_vm1, %v5708_v0  ;;  %s219_s11 = scalar_select %p218_p10, %s5767_s22, 1  ;;  %v376_v18 = vld [vmem:[#allocation2 + $0x1] sm:$0xff]  ;;  %4526 = vmatpush1.bf16.msra.mxu0 %v4525_v7  ;;  %v4540_v5 = vpack.c.bf16 %v1608_v62, %v1607_v61 }
  0x16   : > { %240 = vst.msk [vmem:[#allocation2 + $0x78] sm:$0xff] %vm223_vm0, %v5708_v0  ;;  %241 = vst.msk [vmem:[#allocation2 + $0x80] sm:$0xff] %vm223_vm0, %v5708_v0  ;;  %v377_v19 = vld [vmem:[#allocation2 + $0x9] sm:$0xff]  ;;  %4527 = vmatprep.subr.bf16.mxu0 %v5709_v1  ;;  %v1630_v62 = vld [vmem:[%s7818_s1 + $0x118] sm:$0xff]  ;;  %s5650_s26 = scalar_lea.vmem %s5649_s25, 8192 }
  0x17   : > { %243 = vst.msk [vmem:[#allocation2 + $0x90] sm:$0xff] %vm223_vm0, %v5708_v0  ;;  %244 = vst.msk [vmem:[#allocation2 + $0x98] sm:$0xff] %vm223_vm0, %v5708_v0  ;;  %s4335_s14 = sshll.u32 %s219_s11, 8  ;;  %v4683_v22 = vpack.i.bf16 %v377_v19, %v376_v18  ;;  %v1628_v51 = vld [vmem:[%s7818_s1 + $0x108] sm:$0xff]  ;;  %s4336_s11 = sshll.u32 %s5767_s22, 12 }
  0x18   : > { %245 = vst.msk [vmem:[#allocation2 + $0xa0] sm:$0x3] %vm226_vm1, %v5708_v0  ;;  %248 = vst.msk [vmem:[#allocation2 + $0xb8] sm:$0x3] %vm226_vm1, %v5708_v0  ;;  %s5868_s17 = scalar_lea.vmem %s7817_s0, %s4335_s14  ;;  %s7766_s15 = scalar_lea.hbm %s7822_s5, %s4336_s11 }
  0x19   : > { %246 = vst.msk [vmem:[#allocation2 + $0xa8] sm:$0xff] %vm223_vm0, %v5708_v0  ;;  %247 = vst.msk [vmem:[#allocation2 + $0xb0] sm:$0xff] %vm223_vm0, %v5708_v0  ;;  %v281_v10 = vld [vmem:[%s5868_s17 + $0x10] sm:$0xff]  ;;  %v282_v11 = vld [vmem:[%s5868_s17 + $0x18] sm:$0xff]  ;;  %4684 = vrot.lane.b32.xlu0 %v4683_v22, %s5710_s10  ;;  %4529 = vmatpush1.bf16.msra.mxu0 %v4528_v21 }
  0x1a   : > { %249 = vst.msk [vmem:[#allocation2 + $0xc0] sm:$0xff] %vm223_vm0, %v5708_v0  ;;  %250 = vst.msk [vmem:[#allocation2 + $0xc8] sm:$0xff] %vm223_vm0, %v5708_v0  ;;  %v279_v12 = vld [vmem:[%s5868_s17] sm:$0xff]  ;;  %v280_v13 = vld [vmem:[%s5868_s17 + $0x8] sm:$0xff]  ;;  %4530 = vmatprep.subr.bf16.mxu0 %v5709_v1 }
  0x1b   : > { %251 = vst.msk [vmem:[#allocation2 + $0xd0] sm:$0x3] %vm226_vm1, %v5708_v0  ;;  %254 = vst.msk [vmem:[#allocation2 + $0xe8] sm:$0x3] %vm226_vm1, %v5708_v0  ;;  %v283_v14 = vld [vmem:[%s5868_s17 + $0x20] sm:$0xff]  ;;  %v284_v15 = vld [vmem:[%s5868_s17 + $0x28] sm:$0xff] }
  0x1c   : > { %252 = vst.msk [vmem:[#allocation2 + $0xd8] sm:$0xff] %vm223_vm0, %v5708_v0  ;;  %253 = vst.msk [vmem:[#allocation2 + $0xe0] sm:$0xff] %vm223_vm0, %v5708_v0  ;;  %v285_v20 = vld [vmem:[%s5868_s17 + $0x30] sm:$0xff]  ;;  %v286_v23 = vld [vmem:[%s5868_s17 + $0x38] sm:$0xff] }
  0x1d   : > { %255 = vst.msk [vmem:[#allocation2 + $0xf0] sm:$0xff] %vm223_vm0, %v5708_v0  ;;  %256 = vst.msk [vmem:[#allocation2 + $0xf8] sm:$0xff] %vm223_vm0, %v5708_v0  ;;  %v287_v24 = vld [vmem:[%s5868_s17 + $0x40] sm:$0xff]  ;;  %v288_v25 = vld [vmem:[%s5868_s17 + $0x48] sm:$0xff]  ;;  %4532 = vmatpush1.bf16.msra.mxu0 %v4531_v35 }
  0x1e   : > { %257 = vst.msk [vmem:[#allocation2 + $0x100] sm:$0x3] %vm226_vm1, %v5708_v0  ;;  %260 = vst.msk [vmem:[#allocation2 + $0x118] sm:$0x3] %vm226_vm1, %v5708_v0  ;;  %v289_v26 = vld [vmem:[%s5868_s17 + $0x50] sm:$0xff]  ;;  %v290_v27 = vld [vmem:[%s5868_s17 + $0x58] sm:$0xff]  ;;  %4533 = vmatprep.subr.bf16.mxu0 %v5709_v1 }
  0x1f   : > { %258 = vst.msk [vmem:[#allocation2 + $0x108] sm:$0xff] %vm223_vm0, %v5708_v0  ;;  %259 = vst.msk [vmem:[#allocation2 + $0x110] sm:$0xff] %vm223_vm0, %v5708_v0  ;;  %v291_v28 = vld [vmem:[%s5868_s17 + $0x60] sm:$0xff]  ;;  %v292_v29 = vld [vmem:[%s5868_s17 + $0x68] sm:$0xff] }
  0x20   : > { %261 = vst.msk [vmem:[#allocation2 + $0x120] sm:$0xff] %vm223_vm0, %v5708_v0  ;;  %262 = vst.msk [vmem:[#allocation2 + $0x128] sm:$0xff] %vm223_vm0, %v5708_v0  ;;  %v293_v30 = vld [vmem:[%s5868_s17 + $0x70] sm:$0xff]  ;;  %v294_v31 = vld [vmem:[%s5868_s17 + $0x78] sm:$0xff] }
  0x21   : > { %263 = vst.msk [vmem:[#allocation2 + $0x130] sm:$0x3] %vm226_vm1, %v5708_v0  ;;  %266 = vst.msk [vmem:[#allocation2 + $0x148] sm:$0x3] %vm226_vm1, %v5708_v0  ;;  %v295_v32 = vld [vmem:[%s5868_s17 + $0x80] sm:$0xff]  ;;  %v296_v33 = vld [vmem:[%s5868_s17 + $0x88] sm:$0xff]  ;;  %4535 = vmatpush1.bf16.msra.mxu0 %v4534_v48 }
  0x22   : > { %264 = vst.msk [vmem:[#allocation2 + $0x138] sm:$0xff] %vm223_vm0, %v5708_v0  ;;  %265 = vst.msk [vmem:[#allocation2 + $0x140] sm:$0xff] %vm223_vm0, %v5708_v0  ;;  %v297_v34 = vld [vmem:[%s5868_s17 + $0x90] sm:$0xff]  ;;  %v298_v38 = vld [vmem:[%s5868_s17 + $0x98] sm:$0xff]  ;;  %4536 = vmatprep.subr.bf16.mxu0 %v5709_v1 }
  0x23   : > { %267 = vst.msk [vmem:[#allocation2 + $0x150] sm:$0xff] %vm223_vm0, %v5708_v0  ;;  %268 = vst.msk [vmem:[#allocation2 + $0x158] sm:$0xff] %vm223_vm0, %v5708_v0  ;;  %v302_v36 = vld [vmem:[%s5868_s17 + $0xb8] sm:$0xff]  ;;  %v1615_v48 = vld [vmem:[%s7818_s1 + $0xa0] sm:$0xff] }
  0x24   : > { %269 = vst.msk [vmem:[#allocation2 + $0x160] sm:$0x3] %vm226_vm1, %v5708_v0  ;;  %272 = vst.msk [vmem:[#allocation2 + $0x178] sm:$0x3] %vm226_vm1, %v5708_v0 }
  0x25   : > { %270 = vst.msk [vmem:[#allocation2 + $0x168] sm:$0xff] %vm223_vm0, %v5708_v0  ;;  %271 = vst.msk [vmem:[#allocation2 + $0x170] sm:$0xff] %vm223_vm0, %v5708_v0  ;;  %4538 = vmatpush1.bf16.msra.mxu0 %v4537_v58 }
  0x26   : > { %273 = vst.msk [vmem:[#allocation2 + $0x180] sm:$0xff] %vm223_vm0, %v5708_v0  ;;  %274 = vst.msk [vmem:[#allocation2 + $0x188] sm:$0xff] %vm223_vm0, %v5708_v0  ;;  %4539 = vmatprep.subr.bf16.mxu0 %v5709_v1 }
  0x27   : > { %275 = vst.msk [vmem:[#allocation2 + $0x190] sm:$0x3] %vm226_vm1, %v5708_v0  ;;  %278 = vst.msk [vmem:[#allocation2 + $0x1a8] sm:$0x3] %vm226_vm1, %v5708_v0 }
  0x28   : > { %276 = vst.msk [vmem:[#allocation2 + $0x198] sm:$0xff] %vm223_vm0, %v5708_v0  ;;  %277 = vst.msk [vmem:[#allocation2 + $0x1a0] sm:$0xff] %vm223_vm0, %v5708_v0 }
  0x29   : > { %314 = vst.msk [vmem:[#allocation2 + $0x31] sm:$0xff] %vm223_vm0, %v281_v10  ;;  %315 = vst.msk [vmem:[#allocation2 + $0x39] sm:$0xff] %vm223_vm0, %v282_v11  ;;  %4541 = vmatpush1.bf16.msra.mxu0 %v4540_v5 }
  0x2a   : > { %312 = vst.msk [vmem:[#allocation2 + $0x19] sm:$0xff] %vm223_vm0, %v279_v12  ;;  %313 = vst.msk [vmem:[#allocation2 + $0x21] sm:$0xff] %vm223_vm0, %v280_v13  ;;  %4542 = vmatprep.subr.bf16.mxu0 %v5709_v1 }
  0x2b   : > { %316 = vst.msk [vmem:[#allocation2 + $0x49] sm:$0xff] %vm223_vm0, %v283_v14  ;;  %317 = vst.msk [vmem:[#allocation2 + $0x51] sm:$0xff] %vm223_vm0, %v284_v15  ;;  %v408_v14 = vld [vmem:[#allocation2 + $0x2] sm:$0xff] }
  0x2c   : > { %318 = vst.msk [vmem:[#allocation2 + $0x61] sm:$0xff] %vm223_vm0, %v285_v20  ;;  %319 = vst.msk [vmem:[#allocation2 + $0x69] sm:$0xff] %vm223_vm0, %v286_v23  ;;  %v1610_v20 = vld [vmem:[%s7818_s1 + $0x78] sm:$0xff]  ;;  %v299_v23 = vld [vmem:[%s5868_s17 + $0xa0] sm:$0xff] }
  0x2d   : > { %320 = vst.msk [vmem:[#allocation2 + $0x79] sm:$0xff] %vm223_vm0, %v287_v24  ;;  %321 = vst.msk [vmem:[#allocation2 + $0x81] sm:$0xff] %vm223_vm0, %v288_v25  ;;  %v4543_v22 = vpack.c.bf16 %v1610_v20, %v1609_v17  ;;  %v1611_v24 = vld [vmem:[%s7818_s1 + $0x80] sm:$0xff]  ;;  %v1612_v25 = vld [vmem:[%s7818_s1 + $0x88] sm:$0xff] }
  0x2e   : > { %322 = vst.msk [vmem:[#allocation2 + $0x91] sm:$0xff] %vm223_vm0, %v289_v26  ;;  %323 = vst.msk [vmem:[#allocation2 + $0x99] sm:$0xff] %vm223_vm0, %v290_v27  ;;  %v409_v26 = vld [vmem:[#allocation2 + $0xa] sm:$0xff] }
  0x2f   : > { %324 = vst.msk [vmem:[#allocation2 + $0xa9] sm:$0xff] %vm223_vm0, %v291_v28  ;;  %325 = vst.msk [vmem:[#allocation2 + $0xb1] sm:$0xff] %vm223_vm0, %v292_v29  ;;  %v300_v28 = vld [vmem:[%s5868_s17 + $0xa8] sm:$0xff]  ;;  %4544 = vmatpush1.bf16.msra.mxu0 %v4543_v22  ;;  %v4546_v29 = vpack.c.bf16 %v1612_v25, %v1611_v24  ;;  %v309_v24 = vld [vmem:[%s5868_s17 + $0xf0] sm:$0xff] }
  0x30   : > { %326 = vst.msk [vmem:[#allocation2 + $0xc1] sm:$0xff] %vm223_vm0, %v293_v30  ;;  %327 = vst.msk [vmem:[#allocation2 + $0xc9] sm:$0xff] %vm223_vm0, %v294_v31  ;;  %v5931_v39 = vld [vmem:[#allocation2 + $0x31] sm:$0xff]  ;;  %v5933_v40 = vld [vmem:[#allocation2 + $0x39] sm:$0xff]  ;;  %4545 = vmatprep.subr.bf16.mxu0 %v5709_v1 }
  0x31   : > { %328 = vst.msk [vmem:[#allocation2 + $0xd9] sm:$0xff] %vm223_vm0, %v295_v32  ;;  %329 = vst.msk [vmem:[#allocation2 + $0xe1] sm:$0xff] %vm223_vm0, %v296_v33  ;;  %v5935_v41 = vld [vmem:[#allocation2 + $0x19] sm:$0xff]  ;;  %v4693_v42 = vpack.i.bf16 %v5933_v40, %v5931_v39  ;;  %v5940_v43 = vld [vmem:[#allocation2 + $0x21] sm:$0xff] }
  0x32   : > { %330 = vst.msk [vmem:[#allocation2 + $0xf1] sm:$0xff] %vm223_vm0, %v297_v34  ;;  %331 = vst.msk [vmem:[#allocation2 + $0xf9] sm:$0xff] %vm223_vm0, %v298_v38  ;;  %v5942_v44 = vld [vmem:[#allocation2 + $0x49] sm:$0xff]  ;;  %v5944_v45 = vld [vmem:[#allocation2 + $0x51] sm:$0xff]  ;;  %v4688_v46 = vpack.i.bf16 %v5940_v43, %v5935_v41 }
  0x33   : > { %v5948_v47 = vld [vmem:[#allocation2 + $0x61] sm:$0xff]  ;;  %4694 = vrot.lane.b32.xlu1 %v4693_v42, %s5710_s10  ;;  %v4698_v49 = vpack.i.bf16 %v5944_v45, %v5942_v44  ;;  %v5953_v50 = vld [vmem:[#allocation2 + $0x69] sm:$0xff]  ;;  %v5976_v60 = vld [vmem:[#allocation2 + $0x32] sm:$0xff]  ;;  %332 = vst.msk [vmem:[#allocation2 + $0x109] sm:$0xff] %vm223_vm0, %v299_v23  ;;  %4547 = vmatpush1.bf16.msra.mxu0 %v4546_v29 }
  0x34   : > { %4689 = vrot.lane.b32.xlu0 %v4688_v46, %s5710_s10  ;;  %v4703_v53 = vpack.i.bf16 %v5953_v50, %v5948_v47  ;;  %v5965_v54 = vld [vmem:[#allocation2 + $0x79] sm:$0xff]  ;;  %v5967_v55 = vld [vmem:[#allocation2 + $0x81] sm:$0xff]  ;;  %4417 = vmatprep.mubr.msk.f32.mxu1 %vm223_vm0, %v5976_v60  ;;  %v6020_v15 = vld [vmem:[#allocation2 + $0x30] sm:$0xff]  ;;  %333 = vst.msk [vmem:[#allocation2 + $0x111] sm:$0xff] %vm223_vm0, %v300_v28 }
  0x35   : > { %v5969_v56 = vld [vmem:[#allocation2 + $0x91] sm:$0xff]  ;;  %v5971_v57 = vld [vmem:[#allocation2 + $0x99] sm:$0xff]  ;;  %v4708_v59 = vpack.i.bf16 %v5967_v55, %v5965_v54  ;;  %v4738_v18 = vpack.i.bf16 %v408_v14, %v6020_v15  ;;  %v6029_v19 = vld [vmem:[#allocation2 + $0x22] sm:$0xff]  ;;  %335 = vst.msk [vmem:[#allocation2 + $0x129] sm:$0xff] %vm223_vm0, %v302_v36  ;;  %4548 = vmatprep.subr.bf16.mxu0 %v5709_v1  ;;  %v4768_v5 = vpack.i.bf16 %v6020_v15, %v5942_v44 }
  0x36   : > { %v4713_v63 = vpack.i.bf16 %v5971_v57, %v5969_v56  ;;  %v5988_v0 = vld [vmem:[#allocation2 + $0xa9] sm:$0xff]  ;;  %v5990_v2 = vld [vmem:[#allocation2 + $0xb1] sm:$0xff]  ;;  %v6011_v11 = vld [vmem:[#allocation2 + $0x1a] sm:$0xff]  ;;  %v4748_v30 = vpack.i.bf16 %v5976_v60, %v6029_v19  ;;  %342 = vst.msk [vmem:[#allocation2 + $0x181] sm:$0xff] %vm223_vm0, %v309_v24 }
  0x37   : > { %4699 = vrot.lane.b32.xlu1 %v4698_v49, %s5710_s10  ;;  %v5994_v3 = vld [vmem:[#allocation2 + $0xc1] sm:$0xff]  ;;  %v5996_v4 = vld [vmem:[#allocation2 + $0xc9] sm:$0xff]  ;;  %v4718_v6 = vpack.i.bf16 %v5990_v2, %v5988_v0  ;;  %v6022_v16 = vld [vmem:[#allocation2 + $0x18] sm:$0xff] }
  0x38   : > { %4704 = vrot.lane.b32.xlu0 %v4703_v53, %s5710_s10  ;;  %v4723_v7 = vpack.i.bf16 %v5996_v4, %v5994_v3  ;;  %v6005_v8 = vld [vmem:[#allocation2 + $0xd9] sm:$0xff]  ;;  %v6007_v9 = vld [vmem:[#allocation2 + $0xe1] sm:$0xff]  ;;  %v4743_v21 = vpack.i.bf16 %v6022_v16, %v5931_v39  ;;  %v1613_v31 = vld [vmem:[%s7818_s1 + $0x90] sm:$0xff] }
  0x39   : > { %v6009_v10 = vld [vmem:[#allocation2 + $0xf1] sm:$0xff]  ;;  %v4728_v12 = vpack.i.bf16 %v6007_v9, %v6005_v8  ;;  %v6062_v35 = vld [vmem:[#allocation2 + $0x20] sm:$0xff]  ;;  %v6066_v37 = vld [vmem:[#allocation2 + $0x48] sm:$0xff] }
  0x3a   : > { %v4733_v13 = vpack.i.bf16 %v6011_v11, %v6009_v10  ;;  %v6044_v27 = vld [vmem:[#allocation2 + $0x38] sm:$0xff]  ;;  %v301_v33 = vld [vmem:[%s5868_s17 + $0xb0] sm:$0xff]  ;;  %v303_v38 = vld [vmem:[%s5868_s17 + $0xc0] sm:$0xff]  ;;  %v4758_v46 = vpack.i.bf16 %v6062_v35, %v5933_v40  ;;  %v4763_v52 = vpack.i.bf16 %v6011_v11, %v6066_v37  ;;  %v4793_v28 = vpack.i.bf16 %v6066_v37, %v5948_v47 }
  0x3b   : > { %4709 = vrot.lane.b32.xlu1 %v4708_v59, %s5710_s10  ;;  %v1614_v32 = vld [vmem:[%s7818_s1 + $0x98] sm:$0xff]  ;;  %v4753_v34 = vpack.i.bf16 %v409_v26, %v6044_v27  ;;  %334 = vst.msk [vmem:[#allocation2 + $0x121] sm:$0xff] %vm223_vm0, %v301_v33  ;;  %336 = vst.msk [vmem:[#allocation2 + $0x139] sm:$0xff] %vm223_vm0, %v303_v38  ;;  %v1627_v42 = vld [vmem:[%s7818_s1 + $0x100] sm:$0xff] }
  0x3c   : > { %4714 = vrot.lane.b32.xlu0 %v4713_v63, %s5710_s10  ;;  %v4549_v39 = vpack.c.bf16 %v1614_v32, %v1613_v31  ;;  %v1616_v49 = vld [vmem:[%s7818_s1 + $0xa8] sm:$0xff]  ;;  %v4569_v40 = vpack.c.bf16 %v1628_v51, %v1627_v42  ;;  %v1629_v53 = vld [vmem:[%s7818_s1 + $0x110] sm:$0xff]  ;;  %v6093_v58 = vld [vmem:[#allocation2 + $0x3a] sm:$0xff] }
  0x3d   : > { %v6095_v59 = vld [vmem:[#allocation2 + $0x4a] sm:$0xff]  ;;  %v4552_v61 = vpack.c.bf16 %v1616_v49, %v1615_v48  ;;  %v4573_v11 = vpack.c.bf16 %v1630_v62, %v1629_v53  ;;  %v306_v15 = vld [vmem:[%s5868_s17 + $0xd8] sm:$0xff]  ;;  %v541_v22 = vld [vmem:[#allocation2 + $0x60] sm:$0xff] }
  0x3e   : > { %4550 = vmatpush1.bf16.msra.mxu0 %v4549_v39  ;;  %4570 = vmatprep.subr.bf16.mxu1 %v4569_v40  ;;  %v304_v63 = vld [vmem:[%s5868_s17 + $0xc8] sm:$0xff]  ;;  %v6115_v44 = vld [vmem:[#allocation2 + $0x50] sm:$0xff]  ;;  %339 = vst.msk [vmem:[#allocation2 + $0x159] sm:$0xff] %vm223_vm0, %v306_v15  ;;  %v4788_v26 = vpack.i.bf16 %v5976_v60, %v541_v22  ;;  %v310_v60 = vld [vmem:[%s5868_s17 + $0xf8] sm:$0xff] }
  0x3f   : > { %4719 = vrot.lane.b32.xlu1 %v4718_v6, %s5710_s10  ;;  %4551 = vmatprep.subr.bf16.mxu0 %v5709_v1  ;;  %v1617_v6 = vld [vmem:[%s7818_s1 + $0xb0] sm:$0xff]  ;;  %337 = vst.msk [vmem:[#allocation2 + $0x141] sm:$0xff] %vm223_vm0, %v304_v63  ;;  %v4778_v17 = vpack.i.bf16 %v6029_v19, %v6115_v44  ;;  %v1620_v20 = vld [vmem:[%s7818_s1 + $0xc8] sm:$0xff]  ;;  %v4783_v19 = vpack.i.bf16 %v6044_v27, %v5944_v45  ;;  %v1622_v27 = vld [vmem:[%s7818_s1 + $0xd8] sm:$0xff] }
  0x40   : > { %4724 = vrot.lane.b32.xlu0 %v4723_v7, %s5710_s10  ;;  %v1618_v7 = vld [vmem:[%s7818_s1 + $0xb8] sm:$0xff]  ;;  %4572 = vmatpush3.bf16.msra.mxu1 %v4569_v40  ;;  %v305_v14 = vld [vmem:[%s5868_s17 + $0xd0] sm:$0xff]  ;;  %v308_v23 = vld [vmem:[%s5868_s17 + $0xe8] sm:$0xff]  ;;  %343 = vst.msk [vmem:[#allocation2 + $0x189] sm:$0xff] %vm223_vm0, %v310_v60  ;;  %v4808_v42 = vpack.i.bf16 %v6115_v44, %v5953_v50  ;;  %v4818_v40 = vpack.i.bf16 %v541_v22, %v5965_v54 }
  0x41   : > { %4574 = vmatprep.subr.bf16.mxu1 %v4573_v11  ;;  %338 = vst.msk [vmem:[#allocation2 + $0x151] sm:$0xff] %vm223_vm0, %v305_v14  ;;  %341 = vst.msk [vmem:[#allocation2 + $0x171] sm:$0xff] %vm223_vm0, %v308_v23  ;;  %v1621_v45 = vld [vmem:[%s7818_s1 + $0xd0] sm:$0xff]  ;;  %v542_v31 = vld [vmem:[#allocation2 + $0x68] sm:$0xff] }
  0x42   : > { %4553 = vmatpush1.bf16.msra.mxu0 %v4552_v61  ;;  %v509_v29 = vld [vmem:[#allocation2 + $0x52] sm:$0xff]  ;;  %v4561_v32 = vpack.c.bf16 %v1622_v27, %v1621_v45  ;;  %v1623_v47 = vld [vmem:[%s7818_s1 + $0xe0] sm:$0xff]  ;;  %v4803_v36 = vpack.i.bf16 %v6093_v58, %v542_v31  ;;  %v611_v14 = vld [vmem:[#allocation2 + $0xaa] sm:$0xff] }
  0x43   : > { %4729 = vrot.lane.b32.xlu1 %v4728_v12, %s5710_s10  ;;  %v4773_v12 = vpack.i.bf16 %v6095_v59, %v6093_v58  ;;  %4554 = vmatprep.subr.bf16.mxu0 %v5709_v1  ;;  %v543_v37 = vld [vmem:[#allocation2 + $0x78] sm:$0xff]  ;;  %v1625_v48 = vld [vmem:[%s7818_s1 + $0xf0] sm:$0xff]  ;;  %v513_v53 = vld [vmem:[#allocation2 + $0x82] sm:$0xff] }
  0x44   : > { %4734 = vrot.lane.b32.xlu0 %v4733_v13, %s5710_s10  ;;  %v4555_v13 = vpack.c.bf16 %v1618_v7, %v1617_v6  ;;  %4576 = vmatpush3.bf16.msra.mxu1 %v4573_v11  ;;  %v607_v39 = vld [vmem:[#allocation2 + $0x7a] sm:$0xff]  ;;  %v4813_v51 = vpack.i.bf16 %v6095_v59, %v543_v37  ;;  %v609_v62 = vld [vmem:[#allocation2 + $0x92] sm:$0xff]  ;;  %v4843_v7 = vpack.i.bf16 %v543_v37, %v5969_v56  ;;  %v613_v23 = vld [vmem:[#allocation2 + $0xc2] sm:$0xff] }
  0x45   : > { %4577 = vmatprep.subr.bf16.mxu1 %v5709_v1  ;;  %v1626_v49 = vld [vmem:[%s7818_s1 + $0xf8] sm:$0xff]  ;;  %v544_v61 = vld [vmem:[#allocation2 + $0x80] sm:$0xff]  ;;  %v545_v54 = vld [vmem:[#allocation2 + $0x90] sm:$0xff] }
  0x46   : > { %4556 = vmatpush1.bf16.msra.mxu0 %v4555_v13  ;;  %v4567_v50 = vpack.c.bf16 %v1626_v49, %v1625_v48  ;;  %v610_v63 = vld [vmem:[#allocation2 + $0x9a] sm:$0xff]  ;;  %v514_v11 = vld [vmem:[#allocation2 + $0x92] sm:$0xff]  ;;  %v547_v13 = vld [vmem:[#allocation2 + $0xa8] sm:$0xff]  ;;  %v4858_v15 = vpack.i.bf16 %v544_v61, %v5971_v57 }
  0x47   : > { %4739 = vrot.lane.b32.xlu1 %v4738_v18, %s5711_s23  ;;  %v1619_v18 = vld [vmem:[%s7818_s1 + $0xc0] sm:$0xff]  ;;  %4557 = vmatprep.subr.bf16.mxu0 %v5709_v1  ;;  %v4848_v44 = vpack.i.bf16 %v514_v11, %v513_v53  ;;  %v548_v22 = vld [vmem:[#allocation2 + $0xb0] sm:$0xff]  ;;  %v4893_v45 = vpack.i.bf16 %v547_v13, %v5994_v3  ;;  %v551_v60 = vld [vmem:[#allocation2 + $0xd8] sm:$0xff] }
  0x48   : > { %4744 = vrot.lane.b32.xlu0 %v4743_v21, %s5712_s7  ;;  %v307_v21 = vld [vmem:[%s5868_s17 + $0xe0] sm:$0xff]  ;;  %v4558_v25 = vpack.c.bf16 %v1620_v20, %v1619_v18  ;;  %4418 = vmatmul.mubr.msk.f32.vlgmr.msra.gmra.mrb[0].mxu1 %vm223_vm0, %v6093_v58  ;;  %v516_v20 = vld [vmem:[#allocation2 + $0xaa] sm:$0xff]  ;;  %v4878_v57 = vpack.i.bf16 %v513_v53, %v548_v22  ;;  %v517_v27 = vld [vmem:[#allocation2 + $0xb2] sm:$0xff]  ;;  %v4943_v49 = vpack.i.bf16 %v551_v60, %v6009_v10 }
  0x49   : > { %340 = vst.msk [vmem:[#allocation2 + $0x169] sm:$0xff] %vm223_vm0, %v307_v21  ;;  %4420 = vmatprep.mubr.msk.f32.mxu1 %vm223_vm0, %v6095_v59  ;;  %v4828_v59 = vpack.i.bf16 %v509_v29, %v544_v61  ;;  %v515_v18 = vld [vmem:[#allocation2 + $0x9a] sm:$0xff]  ;;  %v4868_v21 = vpack.i.bf16 %v545_v54, %v5988_v0  ;;  %v614_v24 = vld [vmem:[#allocation2 + $0xca] sm:$0xff]  ;;  %v4913_v3 = vpack.i.bf16 %v516_v20, %v551_v60 }
  0x4a   : > { %4559 = vmatpush1.bf16.msra.mxu0 %v4558_v25  ;;  %v553_v48 = vld [vmem:[#allocation2 + $0xf0] sm:$0xff]  ;;  %v6287_v60 = vld [vmem:[#allocation2 + $0x138] sm:$0xff] }
  0x4b   : > { %4749 = vrot.lane.b32.xlu1 %v4748_v30, %s5710_s10  ;;  %v510_v30 = vld [vmem:[#allocation2 + $0x62] sm:$0xff]  ;;  %4560 = vmatprep.subr.bf16.mxu0 %v5709_v1  ;;  %v619_v61 = vld [vmem:[#allocation2 + $0x10a] sm:$0xff] }
  0x4c   : > { %4754 = vrot.lane.b32.xlu0 %v4753_v34, %s5711_s23  ;;  %v4798_v33 = vpack.i.bf16 %v510_v30, %v509_v29  ;;  %v1624_v34 = vld [vmem:[%s7818_s1 + $0xe8] sm:$0xff]  ;;  %4421 = vmatmul.mubr.msk.f32.gmra.mrb[2].mxu1 %vm223_vm0, %v509_v29  ;;  %v4838_v6 = vpack.i.bf16 %v510_v30, %v545_v54 }
  0x4d   : > { %4423 = vmatprep.mubr.msk.f32.mxu1 %vm223_vm0, %v510_v30  ;;  %v4564_v38 = vpack.c.bf16 %v1624_v34, %v1623_v47  ;;  %v550_v29 = vld [vmem:[#allocation2 + $0xc8] sm:$0xff]  ;;  %v520_v34 = vld [vmem:[#allocation2 + $0xda] sm:$0xff] }
  0x4e   : > { %4562 = vmatpush1.bf16.msra.mxu0 %v4561_v32  ;;  %v4908_v32 = vpack.i.bf16 %v548_v22, %v5996_v4  ;;  %v519_v47 = vld [vmem:[#allocation2 + $0xca] sm:$0xff]  ;;  %v6263_v22 = vld [vmem:[#allocation2 + $0x112] sm:$0xff] }
  0x4f   : > { %4759 = vrot.lane.b32.xlu1 %v4758_v46, %s5712_s7  ;;  %v511_v46 = vld [vmem:[#allocation2 + $0x6a] sm:$0xff]  ;;  %4563 = vmatprep.subr.bf16.mxu0 %v5709_v1  ;;  %v4923_v37 = vpack.i.bf16 %v520_v34, %v519_v47 }
  0x50   : > { %4764 = vrot.lane.b32.xlu0 %v4763_v52, %s5711_s23  ;;  %4424 = vmatmul.mubr.msk.f32.gmra.mrb[4].mxu1 %vm223_vm0, %v511_v46  ;;  %v512_v52 = vld [vmem:[#allocation2 + $0x7a] sm:$0xff]  ;;  %v6240_v54 = vld [vmem:[#allocation2 + $0x10a] sm:$0xff] }
  0x51   : > { %4426 = vmatprep.mubr.msk.f32.mxu1 %vm223_vm0, %v607_v39  ;;  %v4823_v58 = vpack.i.bf16 %v512_v52, %v511_v46  ;;  %v4863_v56 = vpack.i.bf16 %v512_v52, %v547_v13  ;;  %v617_v39 = vld [vmem:[#allocation2 + $0xf2] sm:$0xff]  ;;  %v621_v13 = vld [vmem:[#allocation2 + $0x122] sm:$0xff] }
  0x52   : > { %4565 = vmatpush1.bf16.msra.mxu0 %v4564_v38  ;;  %v552_v38 = vld [vmem:[#allocation2 + $0xe0] sm:$0xff]  ;;  %v522_v52 = vld [vmem:[#allocation2 + $0xf2] sm:$0xff] }
  0x53   : > { %4769 = vrot.lane.b32.xlu1 %v4768_v5, %s5712_s7  ;;  %4566 = vmatprep.subr.bf16.mxu0 %v5709_v1  ;;  %v4833_v5 = vpack.i.bf16 %v542_v31, %v5967_v55  ;;  %v615_v31 = vld [vmem:[#allocation2 + $0xda] sm:$0xff]  ;;  %v4928_v4 = vpack.i.bf16 %v517_v27, %v552_v38 }
  0x54   : > { %4774 = vrot.lane.b32.xlu0 %v4773_v12, %s5710_s10  ;;  %4427 = vmatmul.mubr.msk.f32.gmra.mrb[6].mxu1 %vm223_vm0, %v513_v53  ;;  %v546_v12 = vld [vmem:[#allocation2 + $0x98] sm:$0xff] }
  0x55   : > { %4429 = vmatprep.mubr.msk.f32.mxu1 %vm223_vm0, %v609_v62  ;;  %v4853_v55 = vpack.i.bf16 %v511_v46, %v546_v12  ;;  %v4883_v25 = vpack.i.bf16 %v546_v12, %v5990_v2  ;;  %v4903_v2 = vpack.i.bf16 %v515_v18, %v550_v29  ;;  %v4933_v46 = vpack.i.bf16 %v550_v29, %v6007_v9  ;;  %v586_v53 = vld [vmem:[#allocation2 + $0xf9] sm:$0xff]  ;;  %v556_v12 = vld [vmem:[#allocation2 + $0x110] sm:$0xff] }
  0x56   : > { %4568 = vmatpush1.bf16.msra.mxu0 %v4567_v50  ;;  %v554_v50 = vld [vmem:[#allocation2 + $0xf8] sm:$0xff] }
  0x57   : > { %4779 = vrot.lane.b32.xlu1 %v4778_v17, %s5711_s23  ;;  %v612_v17 = vld [vmem:[#allocation2 + $0xb2] sm:$0xff]  ;;  %v4953_v9 = vpack.i.bf16 %v519_v47, %v554_v50 }
  0x58   : > { %4784 = vrot.lane.b32.xlu0 %v4783_v19, %s5712_s7  ;;  %4430 = vmatmul.mubr.msk.f32.gmra.mrb[8].mxu1 %vm223_vm0, %v610_v63  ;;  %v4873_v19 = vpack.i.bf16 %v516_v20, %v515_v18  ;;  %v620_v62 = vld [vmem:[#allocation2 + $0x112] sm:$0xff]  ;;  %v587_v63 = vld [vmem:[#allocation2 + $0x109] sm:$0xff]  ;;  %v6255_v18 = vld [vmem:[#allocation2 + $0x121] sm:$0xff] }
  0x59   : > { %4432 = vmatprep.mubr.msk.f32.mxu1 %vm223_vm0, %v611_v14  ;;  %v622_v14 = vld [vmem:[#allocation2 + $0x12a] sm:$0xff] }
  0x5b   : > { %4789 = vrot.lane.b32.xlu1 %v4788_v26, %s5711_s23  ;;  %v549_v26 = vld [vmem:[#allocation2 + $0xc0] sm:$0xff] }
  0x5c   : > { %4794 = vrot.lane.b32.xlu0 %v4793_v28, %s5712_s7  ;;  %4433 = vmatmul.mubr.msk.f32.gmra.mrb[10].mxu1 %vm223_vm0, %v612_v17  ;;  %v4888_v0 = vpack.i.bf16 %v514_v11, %v549_v26  ;;  %v518_v28 = vld [vmem:[#allocation2 + $0xc2] sm:$0xff] }
  0x5d   : > { %4435 = vmatprep.mubr.msk.f32.mxu1 %vm223_vm0, %v613_v23  ;;  %v4898_v30 = vpack.i.bf16 %v518_v28, %v517_v27  ;;  %v557_v17 = vld [vmem:[#allocation2 + $0x120] sm:$0xff]  ;;  %v6267_v23 = vld [vmem:[#allocation2 + $0x128] sm:$0xff] }
  0x5e   : > { %v6279_v27 = vld [vmem:[#allocation2 + $0x122] sm:$0xff] }
  0x5f   : > { %4799 = vrot.lane.b32.xlu1 %v4798_v33, %s5710_s10  ;;  %v616_v33 = vld [vmem:[#allocation2 + $0xe2] sm:$0xff] }
  0x60   : > { %4804 = vrot.lane.b32.xlu0 %v4803_v36, %s5711_s23  ;;  %4436 = vmatmul.mubr.msk.f32.gmra.mrb[12].mxu1 %vm223_vm0, %v614_v24  ;;  %v4918_v36 = vpack.i.bf16 %v549_v26, %v6005_v8  ;;  %v4938_v8 = vpack.i.bf16 %v518_v28, %v553_v48 }
  0x61   : > { %4438 = vmatprep.mubr.msk.f32.mxu1 %vm223_vm0, %v615_v31  ;;  %v6289_v31 = vld [vmem:[#allocation2 + $0x142] sm:$0xff] }
  0x63   : > { %4809 = vrot.lane.b32.xlu1 %v4808_v42, %s5712_s7  ;;  %v618_v42 = vld [vmem:[#allocation2 + $0xfa] sm:$0xff] }
  0x64   : > { %4814 = vrot.lane.b32.xlu0 %v4813_v51, %s5711_s23  ;;  %4439 = vmatmul.mubr.msk.f32.gmra.mrb[14].mxu1 %vm223_vm0, %v616_v33  ;;  %v521_v51 = vld [vmem:[#allocation2 + $0xe2] sm:$0xff]  ;;  %v6294_v33 = vld [vmem:[#allocation2 + $0x139] sm:$0xff] }
  0x65   : > { %4441 = vmatprep.mubr.msk.f32.mxu1 %vm223_vm0, %v617_v39  ;;  %v6315_v39 = vld [vmem:[#allocation2 + $0x140] sm:$0xff] }
  0x67   : > { %4819 = vrot.lane.b32.xlu1 %v4818_v40, %s5712_s7  ;;  %v4948_v40 = vpack.i.bf16 %v522_v52, %v521_v51 }
  0x68   : > { %4824 = vrot.lane.b32.xlu0 %v4823_v58, %s5710_s10  ;;  %4442 = vmatmul.mubr.msk.f32.gmra.mrb[16].mxu1 %vm223_vm0, %v618_v42  ;;  %v555_v58 = vld [vmem:[#allocation2 + $0x108] sm:$0xff] }
  0x69   : > { %4444 = vmatprep.mubr.msk.f32.mxu1 %vm223_vm0, %v619_v61  ;;  %v4963_v10 = vpack.i.bf16 %v520_v34, %v555_v58  ;;  %v5018_v34 = vpack.i.bf16 %v6240_v54, %v6287_v60  ;;  %v6317_v42 = vld [vmem:[#allocation2 + $0x16a] sm:$0xff] }
  0x6b   : > { %4829 = vrot.lane.b32.xlu1 %v4828_v59, %s5711_s23  ;;  %v4958_v59 = vpack.i.bf16 %v552_v38, %v586_v53  ;;  %v6311_v38 = vld [vmem:[#allocation2 + $0x15a] sm:$0xff] }
  0x6c   : > { %4834 = vrot.lane.b32.xlu0 %v4833_v5, %s5712_s7  ;;  %4445 = vmatmul.mubr.msk.f32.gmra.mrb[18].mxu1 %vm223_vm0, %v620_v62  ;;  %v523_v5 = vld [vmem:[#allocation2 + $0xfa] sm:$0xff] }
  0x6d   : > { %v4973_v11 = vpack.i.bf16 %v6240_v54, %v523_v5  ;;  %4447 = vmatprep.mubr.msk.f32.mxu1 %vm223_vm0, %v621_v13  ;;  %v5003_v26 = vpack.i.bf16 %v523_v5, %v6267_v23  ;;  %v6358_v13 = vld [vmem:[#allocation2 + $0x18a] sm:$0xff] }
  0x6f   : > { %4839 = vrot.lane.b32.xlu1 %v4838_v6, %s5711_s23  ;;  %v4968_v6 = vpack.i.bf16 %v553_v48, %v587_v63 }
  0x70   : > { %4844 = vrot.lane.b32.xlu0 %v4843_v7, %s5712_s7  ;;  %4448 = vmatmul.mubr.msk.f32.gmra.mrb[20].mxu1 %vm223_vm0, %v622_v14 }
  0x73   : > { %4849 = vrot.lane.b32.xlu1 %v4848_v44, %s5710_s10  ;;  %v6247_v44 = vld [vmem:[#allocation2 + $0x111] sm:$0xff] }
  0x74   : > { %4854 = vrot.lane.b32.xlu0 %v4853_v55, %s5711_s23  ;;  %v4978_v55 = vpack.i.bf16 %v521_v51, %v556_v12  ;;  %v6330_v51 = vld [vmem:[#allocation2 + $0x141] sm:$0xff] }
  0x77   : > { %4859 = vrot.lane.b32.xlu1 %v4858_v15, %s5712_s7  ;;  %v4983_v15 = vpack.i.bf16 %v554_v50, %v6247_v44  ;;  %v344_v50 = vld [vmem:[#allocation2] sm:$0xff] }
  0x78   : > { %4864 = vrot.lane.b32.xlu0 %v4863_v56, %s5711_s23 }
  0x7b   : > { %4869 = vrot.lane.b32.xlu1 %v4868_v21, %s5712_s7  ;;  %v4988_v21 = vpack.i.bf16 %v522_v52, %v557_v17  ;;  %v5033_v52 = vpack.i.bf16 %v6263_v22, %v6315_v39 }
  0x7c   : > { %4874 = vrot.lane.b32.xlu0 %v4873_v19, %s5710_s10  ;;  %v4993_v19 = vpack.i.bf16 %v555_v58, %v6255_v18  ;;  %v6339_v58 = vld [vmem:[#allocation2 + $0x182] sm:$0xff] }
  0x7f   : > { %4879 = vrot.lane.b32.xlu1 %v4878_v57, %s5711_s23 }
  0x80   : > { %4884 = vrot.lane.b32.xlu0 %v4883_v25, %s5712_s7  ;;  %v4998_v25 = vpack.i.bf16 %v586_v53, %v6263_v22  ;;  %v6337_v53 = vld [vmem:[#allocation2 + $0x13a] sm:$0xff] }
  0x83   : > { %4889 = vrot.lane.b32.xlu1 %v4888_v0, %s5711_s23  ;;  %v6275_v0 = vld [vmem:[#allocation2 + $0x129] sm:$0xff] }
  0x84   : > { %4894 = vrot.lane.b32.xlu0 %v4893_v45, %s5712_s7  ;;  %v5008_v29 = vpack.i.bf16 %v556_v12, %v6275_v0 }
  0x87   : > { %4899 = vrot.lane.b32.xlu1 %v4898_v30, %s5710_s10  ;;  %v623_v30 = vld [vmem:[#allocation2 + $0x13a] sm:$0xff] }
  0x88   : > { %4904 = vrot.lane.b32.xlu0 %v4903_v2, %s5711_s23  ;;  %v5013_v2 = vpack.i.bf16 %v587_v63, %v6279_v27  ;;  %4450 = vmatprep.mubr.msk.f32.mxu1 %vm223_vm0, %v623_v30 }
  0x89   : > { %4451 = vmatmul.mubr.msk.f32.gmra.mrb[22].mxu1 %vm223_vm0, %v6289_v31 }
  0x8b   : > { %4909 = vrot.lane.b32.xlu1 %v4908_v32, %s5712_s7  ;;  %v6244_v7 = vpop.permute.xlu0 %4684 }
  0x8c   : > { %4914 = vrot.lane.b32.xlu0 %v4913_v3, %s5711_s23  ;;  %v6296_v3 = vld [vmem:[#allocation2 + $0x152] sm:$0xff]  ;;  %v4686_v48 = vunpack.i.l.bf16 %v6244_v7  ;;  %v4687_v14 = vunpack.i.h.bf16 %v6244_v7 }
  0x8d   : > { %4453 = vmatprep.mubr.msk.f32.mxu1 %vm223_vm0, %v6296_v3 }
  0x8e   : > { %4454 = vmatmul.mubr.msk.f32.gmra.mrb[24].mxu1 %vm223_vm0, %v6311_v38 }
  0x8f   : > { %4919 = vrot.lane.b32.xlu1 %v4918_v36, %s5712_s7  ;;  %v5023_v36 = vpack.i.bf16 %v557_v17, %v6294_v33  ;;  %4456 = vmatprep.mubr.msk.f32.mxu1 %vm223_vm0, %v6317_v42 }
  0x90   : > { %4924 = vrot.lane.b32.xlu0 %v4923_v37, %s5710_s10  ;;  %v6309_v37 = vld [vmem:[#allocation2 + $0x12a] sm:$0xff] }
  0x93   : > { %4929 = vrot.lane.b32.xlu1 %v4928_v4, %s5711_s23 }
  0x94   : > { %4934 = vrot.lane.b32.xlu0 %v4933_v46, %s5712_s7 }
  0x97   : > { %4939 = vrot.lane.b32.xlu1 %v4938_v8, %s5711_s23 }
  0x98   : > { %4944 = vrot.lane.b32.xlu0 %v4943_v49, %s5712_s7  ;;  %v5028_v49 = vpack.i.bf16 %v6247_v44, %v6309_v37  ;;  %v5043_v44 = vpack.i.bf16 %v6255_v18, %v6337_v53  ;;  %v345_v18 = vld [vmem:[#allocation2 + $0x8] sm:$0xff] }
  0x9b   : > { %4949 = vrot.lane.b32.xlu1 %v4948_v40, %s5710_s10  ;;  %v6335_v40 = vld [vmem:[#allocation2 + $0x172] sm:$0xff] }
  0x9c   : > { %4954 = vrot.lane.b32.xlu0 %v4953_v9, %s5711_s23  ;;  %4457 = vmatmul.mubr.msk.f32.gmra.mrb[26].mxu1 %vm223_vm0, %v6335_v40 }
  0x9d   : > { %4459 = vmatprep.mubr.msk.f32.mxu1 %vm223_vm0, %v6339_v58 }
  0x9f   : > { %4959 = vrot.lane.b32.xlu1 %v4958_v59, %s5712_s7 }
  0xa0   : > { %4964 = vrot.lane.b32.xlu0 %v4963_v10, %s5711_s23  ;;  %v5038_v10 = vpack.i.bf16 %v6267_v23, %v6330_v51  ;;  %4460 = vmatmul.mubr.msk.f32.gmra.mrb[28].mxu1 %vm223_vm0, %v6358_v13 }
  0xa3   : > { %4969 = vrot.lane.b32.xlu1 %v4968_v6, %s5712_s7  ;;  %v1401_v6 = vsel %vm223_vm0, %v344_v50, %v4686_v48 }
  0xa4   : > { %4974 = vrot.lane.b32.xlu0 %v4973_v11, %s5710_s10 }
  0xa5   : > { %v6253_v56 = vpop.permute.xlu1 %4694 }
  0xa6   : > { %v6258_v20 = vpop.permute.xlu0 %4689 }
  0xa7   : > { %4979 = vrot.lane.b32.xlu1 %v4978_v55, %s5711_s23  ;;  %v6356_v55 = vld [vmem:[#allocation2 + $0x150] sm:$0xff]  ;;  %v4691_v48 = vunpack.i.l.bf16 %v6258_v20 }
  0xa8   : > { %4984 = vrot.lane.b32.xlu0 %v4983_v15, %s5712_s7  ;;  %v5048_v7 = vpack.i.bf16 %v6279_v27, %v6356_v55 }
  0xa9   : > { %v6265_v57 = vpop.permute.xlu1 %4699 }
  0xaa   : > { %v6269_v24 = vpop.permute.xlu0 %4704 }
  0xab   : > { %4989 = vrot.lane.b32.xlu1 %v4988_v21, %s5711_s23  ;;  %v6363_v21 = vld [vmem:[#allocation2 + $0x151] sm:$0xff] }
  0xac   : > { %4994 = vrot.lane.b32.xlu0 %v4993_v19, %s5712_s7 }
  0xad   : > { %v6277_v45 = vpop.permute.xlu1 %4709 }
  0xae   : > { %v6281_v28 = vpop.permute.xlu0 %4714 }
  0xaf   : > { %4999 = vrot.lane.b32.xlu1 %v4998_v25, %s5710_s10 }
  0xb0   : > { %5004 = vrot.lane.b32.xlu0 %v5003_v26, %s5711_s23  ;;  %v5053_v26 = vpack.i.bf16 %v6287_v60, %v6363_v21 }
  0xb1   : > { %v6292_v32 = vpop.permute.xlu1 %4719 }
  0xb2   : > { %v6300_v47 = vpop.permute.xlu0 %4724 }
  0xb3   : > { %5009 = vrot.lane.b32.xlu1 %v5008_v29, %s5712_s7 }
  0xb4   : > { %5014 = vrot.lane.b32.xlu0 %v5013_v2, %s5710_s10  ;;  %v1402_v2 = vsel %vm223_vm0, %v345_v18, %v4687_v14  ;;  %v6395_v14 = vld [vmem:[#allocation2 + $0x168] sm:$0xff] }
  0xb5   : > { %v6313_v4 = vpop.permute.xlu1 %4729 }
  0xb6   : > { %v6321_v46 = vpop.permute.xlu0 %4734 }
  0xb7   : > { %v4737_v8 = vunpack.i.h.bf16 %v6321_v46  ;;  %5019 = vrot.lane.b32.xlu1 %v5018_v34, %s5711_s23  ;;  %v5058_v34 = vpack.i.bf16 %v6275_v0, %v6289_v31 }
  0xb8   : > { %5024 = vrot.lane.b32.xlu0 %v5023_v36, %s5712_s7  ;;  %v6378_v36 = vld [vmem:[#allocation2 + $0x158] sm:$0xff] }
  0xb9   : > { %v4740_v9 = vpop.permute.xlu1 %4739  ;;  %v1499_v54 = vsel %vm223_vm0, %v5935_v41, %v4737_v8 }
  0xba   : > { %v4742_v61 = vunpack.i.h.bf16 %v4740_v9  ;;  %v4741_v59 = vunpack.i.l.bf16 %v4740_v9  ;;  %v4745_v62 = vpop.permute.xlu0 %4744 }
  0xbb   : > { %v4747_v63 = vunpack.i.h.bf16 %v4745_v62  ;;  %v4746_v5 = vunpack.i.l.bf16 %v4745_v62  ;;  %5029 = vrot.lane.b32.xlu1 %v5028_v49, %s5710_s10  ;;  %v5063_v62 = vpack.i.bf16 %v6309_v37, %v6378_v36 }
  0xbc   : > { %5034 = vrot.lane.b32.xlu0 %v5033_v52, %s5711_s23  ;;  %v1531_v11 = vsel %vm1433_vm2, %v1499_v54, %v4741_v59  ;;  %v1434_v12 = vsel %vm1433_vm2, %v1401_v6, %v4742_v61  ;;  %v474_v61 = vld [vmem:[#allocation2 + $0x31] sm:$0xff] }
  0xbd   : > { %v4750_v15 = vpop.permute.xlu1 %4749  ;;  %v1563_v41 = vsel %vm1466_vm3, %v1531_v11, %v4746_v5  ;;  %v1467_v17 = vsel %vm1466_vm3, %v1434_v12, %v4747_v63  ;;  %v4692_v63 = vunpack.i.h.bf16 %v6258_v20 }
  0xbe   : > { %v4751_v19 = vunpack.i.l.bf16 %v4750_v15  ;;  %v4755_v22 = vpop.permute.xlu0 %4754  ;;  %1798 = vmatprep.mubr.f32.mxu0 %v1563_v41  ;;  %v4752_v8 = vunpack.i.h.bf16 %v4750_v15 }
  0xbf   : > { %v4757_v23 = vunpack.i.h.bf16 %v4755_v22  ;;  %v4756_v25 = vunpack.i.l.bf16 %v4755_v22  ;;  %5039 = vrot.lane.b32.xlu1 %v5038_v10, %s5712_s7  ;;  %1799 = vmatmul.mubr.f32.vlgmr.msra.gmra.mrb[0].mxu0 %v1467_v17  ;;  %v6389_v10 = vld [vmem:[#allocation2 + $0x159] sm:$0xff] }
  0xc0   : > { %5044 = vrot.lane.b32.xlu0 %v5043_v44, %s5710_s10  ;;  %v1500_v29 = vsel %vm223_vm0, %v5940_v43, %v4751_v19  ;;  %v1501_v12 = vsel %vm223_vm0, %v474_v61, %v4752_v8  ;;  %v1403_v44 = vsel %vm223_vm0, %v6022_v16, %v4691_v48  ;;  %v5068_v41 = vpack.i.bf16 %v6315_v39, %v6389_v10  ;;  %v475_v22 = vld [vmem:[#allocation2 + $0x39] sm:$0xff] }
  0xc1   : > { %v4760_v30 = vpop.permute.xlu1 %4759  ;;  %v1532_v43 = vsel %vm1433_vm2, %v1500_v29, %v4756_v25  ;;  %v1435_v60 = vsel %vm1433_vm2, %v1402_v2, %v4757_v23  ;;  %v5073_v16 = vpack.i.bf16 %v6294_v33, %v6296_v3  ;;  %v5078_v23 = vpack.i.bf16 %v6337_v53, %v6395_v14  ;;  %v6409_v25 = vld [vmem:[#allocation2 + $0x169] sm:$0xff] }
  0xc2   : > { %v4762_v27 = vunpack.i.h.bf16 %v4760_v30  ;;  %v4761_v49 = vunpack.i.l.bf16 %v4760_v30  ;;  %v4765_v52 = vpop.permute.xlu0 %4764  ;;  %v1404_v30 = vsel %vm223_vm0, %v6062_v35, %v4692_v63 }
  0xc3   : > { %v4767_v50 = vunpack.i.h.bf16 %v4765_v52  ;;  %v4766_v9 = vunpack.i.l.bf16 %v4765_v52  ;;  %5049 = vrot.lane.b32.xlu1 %v5048_v7, %s5711_s23  ;;  %v4696_v7 = vunpack.i.l.bf16 %v6253_v56  ;;  %v348_v52 = vld [vmem:[#allocation2 + $0x30] sm:$0xff] }
  0xc4   : > { %5054 = vrot.lane.b32.xlu0 %v5053_v26, %s5712_s7  ;;  %v1564_v0 = vsel %vm1466_vm3, %v1532_v43, %v4761_v49  ;;  %v1468_v59 = vsel %vm1466_vm3, %v1435_v60, %v4762_v27  ;;  %v5083_v27 = vpack.i.bf16 %v6356_v55, %v6409_v25  ;;  %v476_v49 = vld [vmem:[#allocation2 + $0x49] sm:$0xff] }
  0xc5   : > { %v4770_v5 = vpop.permute.xlu1 %4769  ;;  %1803 = vmatprep.mubr.f32.mxu0 %v1564_v0  ;;  %v1533_v37 = vsel %vm1433_vm2, %v1501_v12, %v4766_v9  ;;  %v1436_v20 = vsel %vm1433_vm2, %v1403_v44, %v4767_v50  ;;  %v6423_v43 = vld [vmem:[#allocation2 + $0x170] sm:$0xff] }
  0xc6   : > { %v4772_v54 = vunpack.i.h.bf16 %v4770_v5  ;;  %v4771_v6 = vunpack.i.l.bf16 %v4770_v5  ;;  %v4775_v11 = vpop.permute.xlu0 %4774  ;;  %1804 = vmatmul.mubr.f32.gmra.mrb[2].mxu0 %v1468_v59  ;;  %v5088_v59 = vpack.i.bf16 %v6330_v51, %v6311_v38  ;;  %v1405_v5 = vsel %vm223_vm0, %v348_v52, %v4696_v7  ;;  %v6435_v12 = vld [vmem:[#allocation2 + $0x171] sm:$0xff] }
  0xc7   : > { %v4776_v15 = vunpack.i.l.bf16 %v4775_v11  ;;  %5059 = vrot.lane.b32.xlu1 %v5058_v34, %s5710_s10  ;;  %v4777_v2 = vunpack.i.h.bf16 %v4775_v11  ;;  %v5093_v11 = vpack.i.bf16 %v6289_v31, %v6423_v43  ;;  %v4697_v51 = vunpack.i.h.bf16 %v6253_v56 }
  0xc8   : > { %5064 = vrot.lane.b32.xlu0 %v5063_v62, %s5711_s23  ;;  %v1565_v17 = vsel %vm1466_vm3, %v1533_v37, %v4771_v6  ;;  %v1469_v19 = vsel %vm1466_vm3, %v1436_v20, %v4772_v54  ;;  %v477_v20 = vld [vmem:[#allocation2 + $0x51] sm:$0xff]  ;;  %v5098_v31 = vpack.i.bf16 %v6378_v36, %v6435_v12  ;;  %v5103_v56 = vpack.i.bf16 %v6363_v21, %v6317_v42 }
  0xc9   : > { %v4780_v18 = vpop.permute.xlu1 %4779  ;;  %1808 = vmatprep.mubr.f32.mxu0 %v1565_v17  ;;  %v1502_v48 = vsel %vm223_vm0, %v475_v22, %v4776_v15  ;;  %v1503_v55 = vsel %vm223_vm0, %v476_v49, %v4777_v2  ;;  %v350_v49 = vld [vmem:[#allocation2 + $0x48] sm:$0xff] }
  0xca   : > { %v4782_v39 = vunpack.i.h.bf16 %v4780_v18  ;;  %v4781_v26 = vunpack.i.l.bf16 %v4780_v18  ;;  %v4785_v29 = vpop.permute.xlu0 %4784  ;;  %1809 = vmatmul.mubr.f32.gmra.mrb[4].mxu0 %v1469_v19  ;;  %v349_v19 = vld [vmem:[#allocation2 + $0x38] sm:$0xff] }
  0xcb   : > { %v4787_v34 = vunpack.i.h.bf16 %v4785_v29  ;;  %v4786_v33 = vunpack.i.l.bf16 %v4785_v29  ;;  %5069 = vrot.lane.b32.xlu1 %v5068_v41, %s5712_s7  ;;  %v597_v29 = vld [vmem:[#allocation2 + $0x181] sm:$0xff] }
  0xcc   : > { %5074 = vrot.lane.b32.xlu0 %v5073_v16, %s5710_s10  ;;  %v1534_v53 = vsel %vm1433_vm2, %v1502_v48, %v4781_v26  ;;  %v1437_v8 = vsel %vm1433_vm2, %v1404_v30, %v4782_v39  ;;  %v1406_v26 = vsel %vm223_vm0, %v349_v19, %v4697_v51  ;;  %v4701_v30 = vunpack.i.l.bf16 %v6265_v57 }
  0xcd   : > { %v4790_v50 = vpop.permute.xlu1 %4789  ;;  %v1566_v35 = vsel %vm1466_vm3, %v1534_v53, %v4786_v33  ;;  %v1470_v9 = vsel %vm1466_vm3, %v1437_v8, %v4787_v34 }
  0xce   : > { %v4792_v60 = vunpack.i.h.bf16 %v4790_v50  ;;  %v4791_v61 = vunpack.i.l.bf16 %v4790_v50  ;;  %v4795_v0 = vpop.permute.xlu0 %4794  ;;  %1813 = vmatprep.mubr.f32.mxu0 %v1566_v35  ;;  %v5113_v35 = vpack.i.bf16 %v6395_v14, %v597_v29 }
  0xcf   : > { %v4797_v62 = vunpack.i.h.bf16 %v4795_v0  ;;  %v4796_v63 = vunpack.i.l.bf16 %v4795_v0  ;;  %5079 = vrot.lane.b32.xlu1 %v5078_v23, %s5711_s23  ;;  %1814 = vmatmul.mubr.f32.gmra.mrb[6].mxu0 %v1470_v9  ;;  %v6447_v23 = vld [vmem:[#allocation2 + $0x180] sm:$0xff] }
  0xd0   : > { %5084 = vrot.lane.b32.xlu0 %v5083_v27, %s5712_s7  ;;  %v1535_v54 = vsel %vm1433_vm2, %v1503_v55, %v4791_v61  ;;  %v1438_v6 = vsel %vm1433_vm2, %v1405_v5, %v4792_v60  ;;  %v5108_v8 = vpack.i.bf16 %v6296_v3, %v6447_v23  ;;  %v478_v27 = vld [vmem:[#allocation2 + $0x61] sm:$0xff]  ;;  %v5118_v60 = vpack.i.bf16 %v6389_v10, %v6335_v40  ;;  %v479_v55 = vld [vmem:[#allocation2 + $0x69] sm:$0xff] }
  0xd1   : > { %v4800_v44 = vpop.permute.xlu1 %4799  ;;  %v1567_v15 = vsel %vm1466_vm3, %v1535_v54, %v4796_v63  ;;  %v1471_v37 = vsel %vm1466_vm3, %v1438_v6, %v4797_v62  ;;  %v6462_v61 = vld [vmem:[#allocation2 + $0x188] sm:$0xff]  ;;  %v1407_v63 = vsel %vm223_vm0, %v350_v49, %v4701_v30  ;;  %v4702_v5 = vunpack.i.h.bf16 %v6265_v57 }
  0xd2   : > { %v4801_v41 = vunpack.i.l.bf16 %v4800_v44  ;;  %v4805_v17 = vpop.permute.xlu0 %4804  ;;  %1818 = vmatprep.mubr.f32.mxu0 %v1567_v15  ;;  %v4802_v2 = vunpack.i.h.bf16 %v4800_v44  ;;  %v6470_v6 = vld [vmem:[#allocation2 + $0x189] sm:$0xff]  ;;  %v5123_v44 = vpack.i.bf16 %v6311_v38, %v6462_v61  ;;  %v5133_v30 = vpack.i.bf16 %v6409_v25, %v6339_v58 }
  0xd3   : > { %v4807_v16 = vunpack.i.h.bf16 %v4805_v17  ;;  %v4806_v22 = vunpack.i.l.bf16 %v4805_v17  ;;  %5089 = vrot.lane.b32.xlu1 %v5088_v59, %s5710_s10  ;;  %1819 = vmatmul.mubr.f32.gmra.mrb[8].mxu0 %v1471_v37  ;;  %v351_v15 = vld [vmem:[#allocation2 + $0x50] sm:$0xff] }
  0xd4   : > { %5094 = vrot.lane.b32.xlu0 %v5093_v11, %s5711_s23  ;;  %v1504_v18 = vsel %vm223_vm0, %v477_v20, %v4801_v41  ;;  %v1505_v62 = vsel %vm223_vm0, %v478_v27, %v4802_v2  ;;  %v4706_v20 = vunpack.i.l.bf16 %v6269_v24  ;;  %v1408_v38 = vsel %vm223_vm0, %v351_v15, %v4702_v5  ;;  %v352_v2 = vld [vmem:[#allocation2 + $0x60] sm:$0xff] }
  0xd5   : > { %v4810_v7 = vpop.permute.xlu1 %4809  ;;  %v1536_v39 = vsel %vm1433_vm2, %v1504_v18, %v4806_v22  ;;  %v1439_v21 = vsel %vm1433_vm2, %v1406_v26, %v4807_v16  ;;  %v5128_v16 = vpack.i.bf16 %v6423_v43, %v6470_v6  ;;  %v567_v18 = vld [vmem:[#allocation2 + $0x198] sm:$0xff] }
  0xd6   : > { %v4812_v34 = vunpack.i.h.bf16 %v4810_v7  ;;  %v4811_v36 = vunpack.i.l.bf16 %v4810_v7  ;;  %v4815_v33 = vpop.permute.xlu0 %4814  ;;  %v631_v7 = vld [vmem:[#allocation2 + $0x19a] sm:$0xff]  ;;  %v5138_v27 = vpack.i.bf16 %v6317_v42, %v567_v18 }
  0xd7   : > { %v4817_v48 = vunpack.i.h.bf16 %v4815_v33  ;;  %v4816_v53 = vunpack.i.l.bf16 %v4815_v33  ;;  %5099 = vrot.lane.b32.xlu1 %v5098_v31, %s5712_s7  ;;  %v480_v43 = vld [vmem:[#allocation2 + $0x79] sm:$0xff]  ;;  %4462 = vmatprep.mubr.msk.f32.mxu1 %vm223_vm0, %v631_v7 }
  0xd8   : > { %5104 = vrot.lane.b32.xlu0 %v5103_v56, %s5710_s10  ;;  %v1568_v52 = vsel %vm1466_vm3, %v1536_v39, %v4811_v36  ;;  %v1472_v50 = vsel %vm1466_vm3, %v1439_v21, %v4812_v34  ;;  %v632_v39 = vld [vmem:[#allocation2 + $0x1a2] sm:$0xff] }
  0xd9   : > { %v4820_v9 = vpop.permute.xlu1 %4819  ;;  %1823 = vmatprep.mubr.f32.mxu0 %v1568_v52  ;;  %v1537_v14 = vsel %vm1433_vm2, %v1505_v62, %v4816_v53  ;;  %v1440_v10 = vsel %vm1433_vm2, %v1407_v63, %v4817_v48  ;;  %v599_v48 = vld [vmem:[#allocation2 + $0x199] sm:$0xff]  ;;  %4463 = vmatmul.mubr.msk.f32.gmra.mrb[30].mxu1 %vm223_vm0, %v632_v39  ;;  %v1409_v52 = vsel %vm223_vm0, %v352_v2, %v4706_v20  ;;  %v4711_v20 = vunpack.i.l.bf16 %v6277_v45 }
  0xda   : > { %v4822_v0 = vunpack.i.h.bf16 %v4820_v9  ;;  %v4821_v59 = vunpack.i.l.bf16 %v4820_v9  ;;  %v4825_v3 = vpop.permute.xlu0 %4824  ;;  %1824 = vmatmul.mubr.f32.gmra.mrb[10].mxu0 %v1472_v50  ;;  %v5143_v9 = vpack.i.bf16 %v6447_v23, %v599_v48  ;;  %v568_v62 = vld [vmem:[#allocation2 + $0x1a0] sm:$0xff]  ;;  %v482_v23 = vld [vmem:[#allocation2 + $0x91] sm:$0xff] }
  0xdb   : > { %v4826_v54 = vunpack.i.l.bf16 %v4825_v3  ;;  %5109 = vrot.lane.b32.xlu1 %v5108_v8, %s5711_s23  ;;  %v4827_v22 = vunpack.i.h.bf16 %v4825_v3  ;;  %v481_v3 = vld [vmem:[#allocation2 + $0x81] sm:$0xff] }
  0xdc   : > { %5114 = vrot.lane.b32.xlu0 %v5113_v35, %s5712_s7  ;;  %v1569_v11 = vsel %vm1466_vm3, %v1537_v14, %v4821_v59  ;;  %v1473_v51 = vsel %vm1466_vm3, %v1440_v10, %v4822_v0  ;;  %v355_v48 = vld [vmem:[#allocation2 + $0x80] sm:$0xff] }
  0xdd   : > { %v4830_v57 = vpop.permute.xlu1 %4829  ;;  %1828 = vmatprep.mubr.f32.mxu0 %v1569_v11  ;;  %v1506_v37 = vsel %vm223_vm0, %v479_v55, %v4826_v54  ;;  %v1507_v25 = vsel %vm223_vm0, %v480_v43, %v4827_v22  ;;  %v353_v54 = vld [vmem:[#allocation2 + $0x68] sm:$0xff]  ;;  %v483_v43 = vld [vmem:[#allocation2 + $0x99] sm:$0xff] }
  0xde   : > { %v4832_v41 = vunpack.i.h.bf16 %v4830_v57  ;;  %v4831_v17 = vunpack.i.l.bf16 %v4830_v57  ;;  %v4835_v19 = vpop.permute.xlu0 %4834  ;;  %1829 = vmatmul.mubr.f32.gmra.mrb[12].mxu0 %v1473_v51  ;;  %v5153_v51 = vpack.i.bf16 %v6335_v40, %v568_v62 }
  0xdf   : > { %v4837_v31 = vunpack.i.h.bf16 %v4835_v19  ;;  %v4836_v56 = vunpack.i.l.bf16 %v4835_v19  ;;  %5119 = vrot.lane.b32.xlu1 %v5118_v60, %s5710_s10  ;;  %v4707_v60 = vunpack.i.h.bf16 %v6269_v24  ;;  %v5148_v24 = vpack.i.bf16 %v6435_v12, %v6358_v13 }
  0xe0   : > { %5124 = vrot.lane.b32.xlu0 %v5123_v44, %s5711_s23  ;;  %v1538_v26 = vsel %vm1433_vm2, %v1506_v37, %v4831_v17  ;;  %v1441_v29 = vsel %vm1433_vm2, %v1408_v38, %v4832_v41  ;;  %v600_v44 = vld [vmem:[#allocation2 + $0x1a1] sm:$0xff] }
  0xe1   : > { %v4840_v34 = vpop.permute.xlu1 %4839  ;;  %v1570_v36 = vsel %vm1466_vm3, %v1538_v26, %v4836_v56  ;;  %v1474_v33 = vsel %vm1466_vm3, %v1441_v29, %v4837_v31  ;;  %v1410_v37 = vsel %vm223_vm0, %v353_v54, %v4707_v60  ;;  %v5158_v40 = vpack.i.bf16 %v6462_v61, %v600_v44  ;;  %v354_v31 = vld [vmem:[#allocation2 + $0x78] sm:$0xff] }
  0xe2   : > { %v4842_v53 = vunpack.i.h.bf16 %v4840_v34  ;;  %v4841_v21 = vunpack.i.l.bf16 %v4840_v34  ;;  %v4845_v8 = vpop.permute.xlu0 %4844  ;;  %1833 = vmatprep.mubr.f32.mxu0 %v1570_v36  ;;  %v4712_v61 = vunpack.i.h.bf16 %v6277_v45  ;;  %v484_v45 = vld [vmem:[#allocation2 + $0xa9] sm:$0xff] }
  0xe3   : > { %v4847_v49 = vunpack.i.h.bf16 %v4845_v8  ;;  %v4846_v58 = vunpack.i.l.bf16 %v4845_v8  ;;  %5129 = vrot.lane.b32.xlu1 %v5128_v16, %s5712_s7  ;;  %1834 = vmatmul.mubr.f32.gmra.mrb[14].mxu0 %v1474_v33 }
  0xe4   : > { %5134 = vrot.lane.b32.xlu0 %v5133_v30, %s5710_s10  ;;  %v1539_v50 = vsel %vm1433_vm2, %v1507_v25, %v4841_v21  ;;  %v1442_v35 = vsel %vm1433_vm2, %v1409_v52, %v4842_v53  ;;  %v1411_v30 = vsel %vm223_vm0, %v354_v31, %v4711_v20  ;;  %v4716_v25 = vunpack.i.l.bf16 %v6281_v28 }
  0xe5   : > { %v4850_v42 = vpop.permute.xlu1 %4849  ;;  %v1571_v0 = vsel %vm1466_vm3, %v1539_v50, %v4846_v58  ;;  %v1475_v59 = vsel %vm1466_vm3, %v1442_v35, %v4847_v49  ;;  %v1412_v35 = vsel %vm223_vm0, %v355_v48, %v4712_v61  ;;  %v4721_v31 = vunpack.i.l.bf16 %v6292_v32 }
  0xe6   : > { %v4852_v63 = vunpack.i.h.bf16 %v4850_v42  ;;  %v4851_v55 = vunpack.i.l.bf16 %v4850_v42  ;;  %v4855_v5 = vpop.permute.xlu0 %4854  ;;  %1838 = vmatprep.mubr.f32.mxu0 %v1571_v0  ;;  %v356_v42 = vld [vmem:[#allocation2 + $0x90] sm:$0xff] }
  0xe7   : > { %v4857_v14 = vunpack.i.h.bf16 %v4855_v5  ;;  %v4856_v10 = vunpack.i.l.bf16 %v4855_v5  ;;  %5139 = vrot.lane.b32.xlu1 %v5138_v27, %s5711_s23  ;;  %1839 = vmatmul.mubr.f32.gmra.mrb[16].mxu0 %v1475_v59 }
  0xe8   : > { %5144 = vrot.lane.b32.xlu0 %v5143_v9, %s5712_s7  ;;  %v1508_v11 = vsel %vm223_vm0, %v481_v3, %v4851_v55  ;;  %v1509_v13 = vsel %vm223_vm0, %v482_v23, %v4852_v63 }
  0xe9   : > { %v4860_v15 = vpop.permute.xlu1 %4859  ;;  %v1540_v57 = vsel %vm1433_vm2, %v1508_v11, %v4856_v10  ;;  %v1443_v22 = vsel %vm1433_vm2, %v1410_v37, %v4857_v14  ;;  %v1413_v10 = vsel %vm223_vm0, %v356_v42, %v4716_v25  ;;  %v4717_v11 = vunpack.i.h.bf16 %v6281_v28  ;;  %v359_v25 = vld [vmem:[#allocation2 + $0xb0] sm:$0xff] }
  0xea   : > { %v4862_v41 = vunpack.i.h.bf16 %v4860_v15  ;;  %v4861_v17 = vunpack.i.l.bf16 %v4860_v15  ;;  %v4865_v19 = vpop.permute.xlu0 %4864 }
  0xeb   : > { %v4867_v12 = vunpack.i.h.bf16 %v4865_v19  ;;  %v4866_v16 = vunpack.i.l.bf16 %v4865_v19  ;;  %5149 = vrot.lane.b32.xlu1 %v5148_v24, %s5710_s10 }
  0xec   : > { %v1572_v56 = vsel %vm1466_vm3, %v1540_v57, %v4861_v17  ;;  %5154 = vrot.lane.b32.xlu0 %v5153_v51, %s5711_s23  ;;  %v1476_v38 = vsel %vm1466_vm3, %v1443_v22, %v4862_v41  ;;  %v485_v57 = vld [vmem:[#allocation2 + $0xb1] sm:$0xff] }
  0xed   : > { %v4870_v18 = vpop.permute.xlu1 %4869  ;;  %1843 = vmatprep.mubr.f32.mxu0 %v1572_v56  ;;  %v1541_v7 = vsel %vm1433_vm2, %v1509_v13, %v4866_v16  ;;  %v1444_v34 = vsel %vm1433_vm2, %v1411_v30, %v4867_v12  ;;  %v357_v17 = vld [vmem:[#allocation2 + $0x98] sm:$0xff]  ;;  %v486_v12 = vld [vmem:[#allocation2 + $0xc1] sm:$0xff] }
  0xee   : > { %v4872_v39 = vunpack.i.h.bf16 %v4870_v18  ;;  %v4871_v26 = vunpack.i.l.bf16 %v4870_v18  ;;  %v4875_v29 = vpop.permute.xlu0 %4874  ;;  %1844 = vmatmul.mubr.f32.gmra.mrb[18].mxu0 %v1476_v38  ;;  %v358_v30 = vld [vmem:[#allocation2 + $0xa8] sm:$0xff] }
  0xef   : > { %v4876_v2 = vunpack.i.l.bf16 %v4875_v29  ;;  %5159 = vrot.lane.b32.xlu1 %v5158_v40, %s5712_s7  ;;  %v4877_v53 = vunpack.i.h.bf16 %v4875_v29  ;;  %v1414_v40 = vsel %vm223_vm0, %v357_v17, %v4717_v11 }
  0xf0   : > { %v1573_v36 = vsel %vm1466_vm3, %v1541_v7, %v4871_v26  ;;  %v1477_v33 = vsel %vm1466_vm3, %v1444_v34, %v4872_v39 }
  0xf1   : > { %v4880_v21 = vpop.permute.xlu1 %4879  ;;  %1848 = vmatprep.mubr.f32.mxu0 %v1573_v36  ;;  %v1510_v8 = vsel %vm223_vm0, %v483_v43, %v4876_v2  ;;  %v1511_v62 = vsel %vm223_vm0, %v484_v45, %v4877_v53  ;;  %v1415_v53 = vsel %vm223_vm0, %v358_v30, %v4721_v31 }
  0xf2   : > { %v4882_v27 = vunpack.i.h.bf16 %v4880_v21  ;;  %v4881_v49 = vunpack.i.l.bf16 %v4880_v21  ;;  %v4885_v58 = vpop.permute.xlu0 %4884  ;;  %1849 = vmatmul.mubr.f32.gmra.mrb[20].mxu0 %v1477_v33  ;;  %v487_v21 = vld [vmem:[#allocation2 + $0xc9] sm:$0xff] }
  0xf3   : > { %v4887_v52 = vunpack.i.h.bf16 %v4885_v58  ;;  %v4886_v50 = vunpack.i.l.bf16 %v4885_v58 }
  0xf4   : > { %v1542_v9 = vsel %vm1433_vm2, %v1510_v8, %v4881_v49  ;;  %v1445_v60 = vsel %vm1433_vm2, %v1412_v35, %v4882_v27  ;;  %v4722_v8 = vunpack.i.h.bf16 %v6292_v32  ;;  %v4726_v32 = vunpack.i.l.bf16 %v6300_v47 }
  0xf5   : > { %v4890_v0 = vpop.permute.xlu1 %4889  ;;  %v1574_v59 = vsel %vm1466_vm3, %v1542_v9, %v4886_v50  ;;  %v1478_v3 = vsel %vm1466_vm3, %v1445_v60, %v4887_v52 }
  0xf6   : > { %v4892_v63 = vunpack.i.h.bf16 %v4890_v0  ;;  %v4891_v55 = vunpack.i.l.bf16 %v4890_v0  ;;  %v4895_v5 = vpop.permute.xlu0 %4894  ;;  %1853 = vmatprep.mubr.f32.mxu0 %v1574_v59  ;;  %v488_v0 = vld [vmem:[#allocation2 + $0xd9] sm:$0xff] }
  0xf7   : > { %v4897_v54 = vunpack.i.h.bf16 %v4895_v5  ;;  %v4896_v14 = vunpack.i.l.bf16 %v4895_v5  ;;  %1854 = vmatmul.mubr.f32.gmra.mrb[22].mxu0 %v1478_v3  ;;  %v360_v5 = vld [vmem:[#allocation2 + $0xc0] sm:$0xff] }
  0xf8   : > { %v1543_v24 = vsel %vm1433_vm2, %v1511_v62, %v4891_v55  ;;  %v1446_v23 = vsel %vm1433_vm2, %v1413_v10, %v4892_v63  ;;  %v1416_v62 = vsel %vm223_vm0, %v359_v25, %v4722_v8  ;;  %v491_v25 = vld [vmem:[#allocation2 + $0xf9] sm:$0xff] }
  0xf9   : > { %v4900_v51 = vpop.permute.xlu1 %4899  ;;  %v1575_v44 = vsel %vm1466_vm3, %v1543_v24, %v4896_v14  ;;  %v1479_v15 = vsel %vm1466_vm3, %v1446_v23, %v4897_v54 }
  0xfa   : > { %v4902_v37 = vunpack.i.h.bf16 %v4900_v51  ;;  %v4901_v20 = vunpack.i.l.bf16 %v4900_v51  ;;  %v4905_v41 = vpop.permute.xlu0 %4904  ;;  %1858 = vmatprep.mubr.f32.mxu0 %v1575_v44 }
  0xfb   : > { %v4907_v19 = vunpack.i.h.bf16 %v4905_v41  ;;  %v4906_v13 = vunpack.i.l.bf16 %v4905_v41  ;;  %1859 = vmatmul.mubr.f32.gmra.mrb[24].mxu0 %v1479_v15  ;;  %v4727_v41 = vunpack.i.h.bf16 %v6300_v47 }
  0xfc   : > { %v1512_v16 = vsel %vm223_vm0, %v485_v57, %v4901_v20  ;;  %v1513_v7 = vsel %vm223_vm0, %v486_v12, %v4902_v37  ;;  %v1417_v57 = vsel %vm223_vm0, %v360_v5, %v4726_v32  ;;  %v489_v12 = vld [vmem:[#allocation2 + $0xe1] sm:$0xff] }
  0xfd   : > { %v4910_v22 = vpop.permute.xlu1 %4909  ;;  %v1544_v28 = vsel %vm1433_vm2, %v1512_v16, %v4906_v13  ;;  %v1447_v29 = vsel %vm1433_vm2, %v1414_v40, %v4907_v19  ;;  %v361_v40 = vld [vmem:[#allocation2 + $0xc8] sm:$0xff] }
  0xfe   : > { %v4912_v56 = vunpack.i.h.bf16 %v4910_v22  ;;  %v4911_v38 = vunpack.i.l.bf16 %v4910_v22  ;;  %v4915_v18 = vpop.permute.xlu0 %4914 }
  0xff   : > { %v4917_v39 = vunpack.i.h.bf16 %v4915_v18  ;;  %v4916_v26 = vunpack.i.l.bf16 %v4915_v18 }
 0x100   : > { %v1576_v43 = vsel %vm1466_vm3, %v1544_v28, %v4911_v38  ;;  %v1480_v61 = vsel %vm1466_vm3, %v1447_v29, %v4912_v56  ;;  %v490_v38 = vld [vmem:[#allocation2 + $0xf1] sm:$0xff] }
 0x101   : > { %v4920_v2 = vpop.permute.xlu1 %4919  ;;  %1863 = vmatprep.mubr.f32.mxu0 %v1576_v43  ;;  %v1545_v34 = vsel %vm1433_vm2, %v1513_v7, %v4916_v26  ;;  %v1448_v49 = vsel %vm1433_vm2, %v1415_v53, %v4917_v39  ;;  %v1418_v39 = vsel %vm223_vm0, %v361_v40, %v4727_v41  ;;  %v4731_v26 = vunpack.i.l.bf16 %v6313_v4  ;;  %v365_v40 = vld [vmem:[#allocation2 + $0xf8] sm:$0xff] }
 0x102   : > { %v4922_v36 = vunpack.i.h.bf16 %v4920_v2  ;;  %v4921_v33 = vunpack.i.l.bf16 %v4920_v2  ;;  %v4925_v48 = vpop.permute.xlu0 %4924  ;;  %1864 = vmatmul.mubr.f32.gmra.mrb[26].mxu0 %v1480_v61 }
 0x103   : > { %v4926_v27 = vunpack.i.l.bf16 %v4925_v48  ;;  %v4927_v52 = vunpack.i.h.bf16 %v4925_v48 }
 0x104   : > { %v1577_v58 = vsel %vm1466_vm3, %v1545_v34, %v4921_v33  ;;  %v1481_v45 = vsel %vm1466_vm3, %v1448_v49, %v4922_v36  ;;  %v362_v33 = vld [vmem:[#allocation2 + $0xd8] sm:$0xff] }
 0x105   : > { %v4930_v50 = vpop.permute.xlu1 %4929  ;;  %1868 = vmatprep.mubr.f32.mxu0 %v1577_v58  ;;  %v1514_v35 = vsel %vm223_vm0, %v487_v21, %v4926_v27  ;;  %v1515_v24 = vsel %vm223_vm0, %v488_v0, %v4927_v52  ;;  %v4732_v52 = vunpack.i.h.bf16 %v6313_v4  ;;  %v4736_v4 = vunpack.i.l.bf16 %v6321_v46 }
 0x106   : > { %v4932_v9 = vunpack.i.h.bf16 %v4930_v50  ;;  %v4931_v60 = vunpack.i.l.bf16 %v4930_v50  ;;  %v4935_v42 = vpop.permute.xlu0 %4934  ;;  %1869 = vmatmul.mubr.f32.gmra.mrb[28].mxu0 %v1481_v45  ;;  %v1419_v45 = vsel %vm223_vm0, %v362_v33, %v4731_v26 }
 0x107   : > { %v4937_v59 = vunpack.i.h.bf16 %v4935_v42  ;;  %v4936_v3 = vunpack.i.l.bf16 %v4935_v42  ;;  %v363_v42 = vld [vmem:[#allocation2 + $0xe0] sm:$0xff] }
 0x108   : > { %v1546_v63 = vsel %vm1433_vm2, %v1514_v35, %v4931_v60  ;;  %v1449_v55 = vsel %vm1433_vm2, %v1416_v62, %v4932_v9 }
 0x109   : > { %v4940_v54 = vpop.permute.xlu1 %4939  ;;  %v1578_v14 = vsel %vm1466_vm3, %v1546_v63, %v4936_v3  ;;  %v1482_v10 = vsel %vm1466_vm3, %v1449_v55, %v4937_v59  ;;  %v492_v55 = vld [vmem:[#allocation2 + $0x109] sm:$0xff] }
 0x10a   : > { %v4942_v23 = vunpack.i.h.bf16 %v4940_v54  ;;  %v4941_v11 = vunpack.i.l.bf16 %v4940_v54  ;;  %v4945_v51 = vpop.permute.xlu0 %4944  ;;  %1873 = vmatprep.mubr.f32.mxu0 %v1578_v14  ;;  %v1420_v14 = vsel %vm223_vm0, %v363_v42, %v4732_v52 }
 0x10b   : > { %v4947_v44 = vunpack.i.h.bf16 %v4945_v51  ;;  %v4946_v15 = vunpack.i.l.bf16 %v4945_v51  ;;  %1874 = vmatmul.mubr.f32.gmra.mrb[30].mxu0 %v1482_v10 }
 0x10c   : > { %v1547_v37 = vsel %vm1433_vm2, %v1515_v24, %v4941_v11  ;;  %v1450_v20 = vsel %vm1433_vm2, %v1417_v57, %v4942_v23  ;;  %v364_v23 = vld [vmem:[#allocation2 + $0xf0] sm:$0xff] }
 0x10d   : > { %v4950_v17 = vpop.permute.xlu1 %4949  ;;  %v1579_v19 = vsel %vm1466_vm3, %v1547_v37, %v4946_v15  ;;  %v1483_v13 = vsel %vm1466_vm3, %v1450_v20, %v4947_v44 }
 0x10e   : > { %v4952_v16 = vunpack.i.h.bf16 %v4950_v17  ;;  %v4951_v22 = vunpack.i.l.bf16 %v4950_v17  ;;  %v4955_v28 = vpop.permute.xlu0 %4954  ;;  %1878 = vmatprep.mubr.f32.mxu0 %v1579_v19  ;;  %v1421_v17 = vsel %vm223_vm0, %v364_v23, %v4736_v4 }
 0x10f   : > { %v4957_v31 = vunpack.i.h.bf16 %v4955_v28  ;;  %v4956_v56 = vunpack.i.l.bf16 %v4955_v28  ;;  %1879 = vmatmul.mubr.f32.gmra.mrb[32].mxu0 %v1483_v13  ;;  %v493_v28 = vld [vmem:[#allocation2 + $0x111] sm:$0xff] }
 0x110   : > { %v1516_v18 = vsel %vm223_vm0, %v489_v12, %v4951_v22  ;;  %v1517_v61 = vsel %vm223_vm0, %v490_v38, %v4952_v16 }
 0x111   : > { %v4960_v7 = vpop.permute.xlu1 %4959  ;;  %v1548_v47 = vsel %vm1433_vm2, %v1516_v18, %v4956_v56  ;;  %v1451_v36 = vsel %vm1433_vm2, %v1418_v39, %v4957_v31 }
 0x112   : > { %v4962_v29 = vunpack.i.h.bf16 %v4960_v7  ;;  %v4961_v30 = vunpack.i.l.bf16 %v4960_v7  ;;  %v4965_v43 = vpop.permute.xlu0 %4964 }
 0x113   : > { %v4967_v2 = vunpack.i.h.bf16 %v4965_v43  ;;  %v4966_v34 = vunpack.i.l.bf16 %v4965_v43 }
 0x114   : > { %v1580_v48 = vsel %vm1466_vm3, %v1548_v47, %v4961_v30  ;;  %v1484_v53 = vsel %vm1466_vm3, %v1451_v36, %v4962_v29  ;;  %v366_v36 = vld [vmem:[#allocation2 + $0x108] sm:$0xff] }
 0x115   : > { %v4970_v21 = vpop.permute.xlu1 %4969  ;;  %1883 = vmatprep.mubr.f32.mxu0 %v1580_v48  ;;  %v1549_v8 = vsel %vm1433_vm2, %v1517_v61, %v4966_v34  ;;  %v1452_v35 = vsel %vm1433_vm2, %v1419_v45, %v4967_v2  ;;  %v494_v34 = vld [vmem:[#allocation2 + $0x121] sm:$0xff] }
 0x116   : > { %v4972_v27 = vunpack.i.h.bf16 %v4970_v21  ;;  %v4971_v49 = vunpack.i.l.bf16 %v4970_v21  ;;  %v4975_v58 = vpop.permute.xlu0 %4974  ;;  %1884 = vmatmul.mubr.f32.gmra.mrb[34].mxu0 %v1484_v53 }
 0x117   : > { %v4976_v50 = vunpack.i.l.bf16 %v4975_v58  ;;  %v4977_v0 = vunpack.i.h.bf16 %v4975_v58 }
 0x118   : > { %v1581_v9 = vsel %vm1466_vm3, %v1549_v8, %v4971_v49  ;;  %v1485_v60 = vsel %vm1466_vm3, %v1452_v35, %v4972_v27  ;;  %v3528_v8 = vld [vmem:[%s7820_s3 + $0x100] sm:$0xff]  ;;  %v3529_v27 = vld [vmem:[%s7820_s3 + $0x108] sm:$0xff] }
 0x119   : > { %v4980_v32 = vpop.permute.xlu1 %4979  ;;  %1888 = vmatprep.mubr.f32.mxu0 %v1581_v9  ;;  %v1518_v59 = vsel %vm223_vm0, %v491_v25, %v4976_v50  ;;  %v1519_v15 = vsel %vm223_vm0, %v492_v55, %v4977_v0  ;;  %v6609_v25 = vpack.c.bf16 %v3529_v27, %v3528_v8  ;;  %v369_v8 = vld [vmem:[#allocation2 + $0x128] sm:$0xff] }
 0x11a   : > { %v4982_v3 = vunpack.i.h.bf16 %v4980_v32  ;;  %v4981_v62 = vunpack.i.l.bf16 %v4980_v32  ;;  %v4985_v63 = vpop.permute.xlu0 %4984  ;;  %1889 = vmatmul.mubr.f32.gmra.mrb[36].mxu0 %v1485_v60 }
 0x11b   : > { %v4987_v5 = vunpack.i.h.bf16 %v4985_v63  ;;  %v4986_v54 = vunpack.i.l.bf16 %v4985_v63  ;;  %v6611_v42 = vpop.f32.mrb[0].mxu1  ;;  %4626 = vmatprep.subr.bf16.mxu0 %v6609_v25 }
 0x11c   : > { %v1550_v10 = vsel %vm1433_vm2, %v1518_v59, %v4981_v62  ;;  %v1453_v24 = vsel %vm1433_vm2, %v1420_v14, %v4982_v3  ;;  %v6616_v59 = vpop.f32.mrb[1].mxu1  ;;  %4628 = vmatpush3.bf16.msra.mxu0 %v6609_v25  ;;  %v3530_v3 = vld [vmem:[%s7820_s3 + $0x110] sm:$0xff]  ;;  %v3531_v62 = vld [vmem:[%s7820_s3 + $0x118] sm:$0xff] }
 0x11d   : > { %v4990_v11 = vpop.permute.xlu1 %4989  ;;  %v1582_v51 = vsel %vm1466_vm3, %v1550_v10, %v4986_v54  ;;  %v1486_v44 = vsel %vm1466_vm3, %v1453_v24, %v4987_v5  ;;  %v495_v5 = vld [vmem:[#allocation2 + $0x129] sm:$0xff]  ;;  %v6627_v14 = vpack.c.bf16 %v3531_v62, %v3530_v3 }
 0x11e   : > { %v4992_v57 = vunpack.i.h.bf16 %v4990_v11  ;;  %v4991_v37 = vunpack.i.l.bf16 %v4990_v11  ;;  %v4995_v20 = vpop.permute.xlu0 %4994  ;;  %1893 = vmatprep.mubr.f32.mxu0 %v1582_v51  ;;  %v367_v54 = vld [vmem:[#allocation2 + $0x110] sm:$0xff] }
 0x11f   : > { %v4997_v46 = vunpack.i.h.bf16 %v4995_v20  ;;  %v4996_v41 = vunpack.i.l.bf16 %v4995_v20  ;;  %1894 = vmatmul.mubr.f32.gmra.mrb[38].mxu0 %v1486_v44  ;;  %v6629_v44 = vpop.f32.mrb[2].mxu1  ;;  %4630 = vmatprep.subr.bf16.mxu0 %v6627_v14 }
 0x120   : > { %v1551_v19 = vsel %vm1433_vm2, %v1519_v15, %v4991_v37  ;;  %v1454_v13 = vsel %vm1433_vm2, %v1421_v17, %v4992_v57  ;;  %v6634_v37 = vpop.f32.mrb[3].mxu1  ;;  %4632 = vmatpush3.bf16.msra.mxu0 %v6627_v14 }
 0x121   : > { %v5000_v12 = vpop.permute.xlu1 %4999  ;;  %v1583_v16 = vsel %vm1466_vm3, %v1551_v19, %v4996_v41  ;;  %v1487_v22 = vsel %vm1466_vm3, %v1454_v13, %v4997_v46 }
 0x122   : > { %v5002_v31 = vunpack.i.h.bf16 %v5000_v12  ;;  %v5001_v56 = vunpack.i.l.bf16 %v5000_v12  ;;  %v5005_v38 = vpop.permute.xlu0 %5004  ;;  %1898 = vmatprep.mubr.f32.mxu0 %v1583_v16  ;;  %v496_v12 = vld [vmem:[#allocation2 + $0x139] sm:$0xff] }
 0x123   : > { %v5007_v18 = vunpack.i.h.bf16 %v5005_v38  ;;  %v5006_v7 = vunpack.i.l.bf16 %v5005_v38  ;;  %1899 = vmatmul.mubr.f32.gmra.mrb[40].mxu0 %v1487_v22  ;;  %v368_v16 = vld [vmem:[#allocation2 + $0x120] sm:$0xff] }
 0x124   : > { %v1520_v47 = vsel %vm223_vm0, %v493_v28, %v5001_v56  ;;  %v1422_v39 = vsel %vm223_vm0, %v365_v40, %v5002_v31  ;;  %v6639_v40 = vpop.f32.mrb[4].mxu1 }
 0x125   : > { %v5010_v26 = vpop.permute.xlu1 %5009  ;;  %v1552_v29 = vsel %vm1433_vm2, %v1520_v47, %v5006_v7  ;;  %v1455_v30 = vsel %vm1433_vm2, %v1422_v39, %v5007_v18  ;;  %v6643_v38 = vpop.f32.mrb[5].mxu1 }
 0x126   : > { %v5012_v43 = vunpack.i.h.bf16 %v5010_v26  ;;  %v5011_v61 = vunpack.i.l.bf16 %v5010_v26  ;;  %v5015_v2 = vpop.permute.xlu0 %5014 }
 0x127   : > { %v5017_v33 = vunpack.i.h.bf16 %v5015_v2  ;;  %v5016_v48 = vunpack.i.l.bf16 %v5015_v2 }
 0x128   : > { %v1584_v53 = vsel %vm1466_vm3, %v1552_v29, %v5011_v61  ;;  %v1488_v21 = vsel %vm1466_vm3, %v1455_v30, %v5012_v43  ;;  %v6647_v61 = vpop.f32.mrb[6].mxu1 }
 0x129   : > { %v5020_v49 = vpop.permute.xlu1 %5019  ;;  %1903 = vmatprep.mubr.f32.mxu0 %v1584_v53  ;;  %v1521_v58 = vsel %vm223_vm0, %v494_v34, %v5016_v48  ;;  %v1423_v45 = vsel %vm223_vm0, %v366_v36, %v5017_v33  ;;  %v6651_v36 = vpop.f32.mrb[7].mxu1 }
 0x12a   : > { %v5022_v52 = vunpack.i.h.bf16 %v5020_v49  ;;  %v5021_v50 = vunpack.i.l.bf16 %v5020_v49  ;;  %v5025_v35 = vpop.permute.xlu0 %5024  ;;  %1904 = vmatmul.mubr.f32.gmra.mrb[42].mxu0 %v1488_v21  ;;  %v497_v21 = vld [vmem:[#allocation2 + $0x141] sm:$0xff] }
 0x12b   : > { %v5027_v9 = vunpack.i.h.bf16 %v5025_v35  ;;  %v5026_v60 = vunpack.i.l.bf16 %v5025_v35 }
 0x12c   : > { %v1553_v0 = vsel %vm1433_vm2, %v1521_v58, %v5021_v50  ;;  %v1456_v32 = vsel %vm1433_vm2, %v1423_v45, %v5022_v52 }
 0x12d   : > { %v5030_v63 = vpop.permute.xlu1 %5029  ;;  %v1585_v55 = vsel %vm1466_vm3, %v1553_v0, %v5026_v60  ;;  %v1489_v4 = vsel %vm1466_vm3, %v1456_v32, %v5027_v9  ;;  %v6657_v9 = vpop.f32.mrb[8].mxu1 }
 0x12e   : > { %v5032_v10 = vunpack.i.h.bf16 %v5030_v63  ;;  %v5031_v24 = vunpack.i.l.bf16 %v5030_v63  ;;  %v5035_v23 = vpop.permute.xlu0 %5034  ;;  %1908 = vmatprep.mubr.f32.mxu0 %v1585_v55  ;;  %v6661_v3 = vpop.f32.mrb[9].mxu1 }
 0x12f   : > { %v5037_v11 = vunpack.i.h.bf16 %v5035_v23  ;;  %v5036_v51 = vunpack.i.l.bf16 %v5035_v23  ;;  %1909 = vmatmul.mubr.f32.gmra.mrb[44].mxu0 %v1489_v4  ;;  %v498_v4 = vld [vmem:[#allocation2 + $0x151] sm:$0xff] }
 0x130   : > { %v1522_v15 = vsel %vm223_vm0, %v495_v5, %v5031_v24  ;;  %v1424_v57 = vsel %vm223_vm0, %v367_v54, %v5032_v10  ;;  %v370_v5 = vld [vmem:[#allocation2 + $0x138] sm:$0xff] }
 0x131   : > { %v5040_v20 = vpop.permute.xlu1 %5039  ;;  %v1554_v46 = vsel %vm1433_vm2, %v1522_v15, %v5036_v51  ;;  %v1457_v41 = vsel %vm1433_vm2, %v1424_v57, %v5037_v11 }
 0x132   : > { %v5042_v17 = vunpack.i.h.bf16 %v5040_v20  ;;  %v5041_v19 = vunpack.i.l.bf16 %v5040_v20  ;;  %v5045_v13 = vpop.permute.xlu0 %5044 }
 0x133   : > { %v5047_v22 = vunpack.i.h.bf16 %v5045_v13  ;;  %v5046_v28 = vunpack.i.l.bf16 %v5045_v13 }
 0x134   : > { %v1586_v31 = vsel %vm1466_vm3, %v1554_v46, %v5041_v19  ;;  %v1490_v56 = vsel %vm1466_vm3, %v1457_v41, %v5042_v17 }
 0x135   : > { %v5050_v18 = vpop.permute.xlu1 %5049  ;;  %1913 = vmatprep.mubr.f32.mxu0 %v1586_v31  ;;  %v1523_v7 = vsel %vm223_vm0, %v496_v12, %v5046_v28  ;;  %v1425_v47 = vsel %vm223_vm0, %v368_v16, %v5047_v22  ;;  %v499_v28 = vld [vmem:[#allocation2 + $0x159] sm:$0xff] }
 0x136   : > { %v5052_v39 = vunpack.i.h.bf16 %v5050_v18  ;;  %v5051_v26 = vunpack.i.l.bf16 %v5050_v18  ;;  %v5055_v29 = vpop.permute.xlu0 %5054  ;;  %1914 = vmatmul.mubr.f32.gmra.mrb[46].mxu0 %v1490_v56  ;;  %v371_v31 = vld [vmem:[#allocation2 + $0x140] sm:$0xff] }
 0x137   : > { %v5057_v30 = vunpack.i.h.bf16 %v5055_v29  ;;  %v5056_v43 = vunpack.i.l.bf16 %v5055_v29 }
 0x138   : > { %v1555_v2 = vsel %vm1433_vm2, %v1523_v7, %v5051_v26  ;;  %v1458_v34 = vsel %vm1433_vm2, %v1425_v47, %v5052_v39  ;;  %v6671_v26 = vpop.f32.mrb[10].mxu1 }
 0x139   : > { %v5060_v33 = vpop.permute.xlu1 %5059  ;;  %v1587_v48 = vsel %vm1466_vm3, %v1555_v2, %v5056_v43  ;;  %v1491_v53 = vsel %vm1466_vm3, %v1458_v34, %v5057_v30  ;;  %v6675_v43 = vpop.f32.mrb[11].mxu1 }
 0x13a   : > { %v5062_v27 = vunpack.i.h.bf16 %v5060_v33  ;;  %v5061_v49 = vunpack.i.l.bf16 %v5060_v33  ;;  %v5065_v58 = vpop.permute.xlu0 %5064  ;;  %1918 = vmatprep.mubr.f32.mxu0 %v1587_v48 }
 0x13b   : > { %v5067_v45 = vunpack.i.h.bf16 %v5065_v58  ;;  %v5066_v52 = vunpack.i.l.bf16 %v5065_v58  ;;  %1919 = vmatmul.mubr.f32.gmra.mrb[48].mxu0 %v1491_v53 }
 0x13c   : > { %v1524_v50 = vsel %vm223_vm0, %v497_v21, %v5061_v49  ;;  %v1426_v35 = vsel %vm223_vm0, %v369_v8, %v5062_v27  ;;  %v500_v8 = vld [vmem:[#allocation2 + $0x169] sm:$0xff] }
 0x13d   : > { %v5070_v60 = vpop.permute.xlu1 %5069  ;;  %v1556_v0 = vsel %vm1433_vm2, %v1524_v50, %v5066_v52  ;;  %v1459_v32 = vsel %vm1433_vm2, %v1426_v35, %v5067_v45  ;;  %v372_v27 = vld [vmem:[#allocation2 + $0x150] sm:$0xff] }
 0x13e   : > { %v5072_v62 = vunpack.i.h.bf16 %v5070_v60  ;;  %v5071_v63 = vunpack.i.l.bf16 %v5070_v60  ;;  %v5075_v55 = vpop.permute.xlu0 %5074 }
 0x13f   : > { %v5077_v54 = vunpack.i.h.bf16 %v5075_v55  ;;  %v5076_v10 = vunpack.i.l.bf16 %v5075_v55 }
 0x140   : > { %v1588_v24 = vsel %vm1466_vm3, %v1556_v0, %v5071_v63  ;;  %v1492_v23 = vsel %vm1466_vm3, %v1459_v32, %v5072_v62 }
 0x141   : > { %v5080_v11 = vpop.permute.xlu1 %5079  ;;  %1923 = vmatprep.mubr.f32.mxu0 %v1588_v24  ;;  %v1525_v51 = vsel %vm223_vm0, %v498_v4, %v5076_v10  ;;  %v1427_v15 = vsel %vm223_vm0, %v370_v5, %v5077_v54  ;;  %v6685_v54 = vpop.f32.mrb[12].mxu1 }
 0x142   : > { %v5082_v57 = vunpack.i.h.bf16 %v5080_v11  ;;  %v5081_v20 = vunpack.i.l.bf16 %v5080_v11  ;;  %v5085_v46 = vpop.permute.xlu0 %5084  ;;  %1924 = vmatmul.mubr.f32.gmra.mrb[50].mxu0 %v1492_v23  ;;  %v501_v11 = vld [vmem:[#allocation2 + $0x171] sm:$0xff] }
 0x143   : > { %v5087_v41 = vunpack.i.h.bf16 %v5085_v46  ;;  %v5086_v17 = vunpack.i.l.bf16 %v5085_v46 }
 0x144   : > { %v1557_v19 = vsel %vm1433_vm2, %v1525_v51, %v5081_v20  ;;  %v1460_v13 = vsel %vm1433_vm2, %v1427_v15, %v5082_v57  ;;  %v373_v51 = vld [vmem:[#allocation2 + $0x158] sm:$0xff]  ;;  %v6689_v15 = vpop.f32.mrb[13].mxu1 }
 0x145   : > { %v5090_v12 = vpop.permute.xlu1 %5089  ;;  %v1589_v16 = vsel %vm1466_vm3, %v1557_v19, %v5086_v17  ;;  %v1493_v22 = vsel %vm1466_vm3, %v1460_v13, %v5087_v41 }
 0x146   : > { %v5092_v56 = vunpack.i.h.bf16 %v5090_v12  ;;  %v5091_v18 = vunpack.i.l.bf16 %v5090_v12  ;;  %v5095_v7 = vpop.permute.xlu0 %5094  ;;  %1928 = vmatprep.mubr.f32.mxu0 %v1589_v16 }
 0x147   : > { %v5097_v47 = vunpack.i.h.bf16 %v5095_v7  ;;  %v5096_v39 = vunpack.i.l.bf16 %v5095_v7  ;;  %1929 = vmatmul.mubr.f32.gmra.mrb[52].mxu0 %v1493_v22  ;;  %v374_v7 = vld [vmem:[#allocation2 + $0x168] sm:$0xff] }
 0x148   : > { %v1526_v29 = vsel %vm223_vm0, %v499_v28, %v5091_v18  ;;  %v1428_v30 = vsel %vm223_vm0, %v371_v31, %v5092_v56  ;;  %v502_v18 = vld [vmem:[#allocation2 + $0x181] sm:$0xff] }
 0x149   : > { %v5100_v2 = vpop.permute.xlu1 %5099  ;;  %v1558_v34 = vsel %vm1433_vm2, %v1526_v29, %v5096_v39  ;;  %v1461_v33 = vsel %vm1433_vm2, %v1428_v30, %v5097_v47 }
 0x14a   : > { %v5102_v48 = vunpack.i.h.bf16 %v5100_v2  ;;  %v5101_v53 = vunpack.i.l.bf16 %v5100_v2  ;;  %v5105_v21 = vpop.permute.xlu0 %5104 }
 0x14b   : > { %v5107_v49 = vunpack.i.h.bf16 %v5105_v21  ;;  %v5106_v58 = vunpack.i.l.bf16 %v5105_v21 }
 0x14c   : > { %v1590_v45 = vsel %vm1466_vm3, %v1558_v34, %v5101_v53  ;;  %v1494_v52 = vsel %vm1466_vm3, %v1461_v33, %v5102_v48 }
 0x14d   : > { %v5110_v50 = vpop.permute.xlu1 %5109  ;;  %1933 = vmatprep.mubr.f32.mxu0 %v1590_v45  ;;  %v1527_v35 = vsel %vm223_vm0, %v500_v8, %v5106_v58  ;;  %v1429_v60 = vsel %vm223_vm0, %v372_v27, %v5107_v49  ;;  %v6699_v49 = vpop.f32.mrb[14].mxu1 }
 0x14e   : > { %v5112_v0 = vunpack.i.h.bf16 %v5110_v50  ;;  %v5111_v32 = vunpack.i.l.bf16 %v5110_v50  ;;  %v5115_v62 = vpop.permute.xlu0 %5114  ;;  %1934 = vmatmul.mubr.f32.gmra.mrb[54].mxu0 %v1494_v52  ;;  %v6703_v52 = vpop.f32.mrb[15].mxu1 }
 0x14f   : > { %v5117_v63 = vunpack.i.h.bf16 %v5115_v62  ;;  %v5116_v55 = vunpack.i.l.bf16 %v5115_v62 }
 0x150   : > { %v1559_v4 = vsel %vm1433_vm2, %v1527_v35, %v5111_v32  ;;  %v1462_v5 = vsel %vm1433_vm2, %v1429_v60, %v5112_v0  ;;  %v375_v0 = vld [vmem:[#allocation2 + $0x170] sm:$0xff] }
 0x151   : > { %v5120_v10 = vpop.permute.xlu1 %5119  ;;  %v1591_v24 = vsel %vm1466_vm3, %v1559_v4, %v5116_v55  ;;  %v1495_v23 = vsel %vm1466_vm3, %v1462_v5, %v5117_v63 }
 0x152   : > { %v5122_v57 = vunpack.i.h.bf16 %v5120_v10  ;;  %v5121_v20 = vunpack.i.l.bf16 %v5120_v10  ;;  %v5125_v46 = vpop.permute.xlu0 %5124  ;;  %1938 = vmatprep.mubr.f32.mxu0 %v1591_v24 }
 0x153   : > { %v5127_v41 = vunpack.i.h.bf16 %v5125_v46  ;;  %v5126_v17 = vunpack.i.l.bf16 %v5125_v46  ;;  %1939 = vmatmul.mubr.f32.gmra.mrb[56].mxu0 %v1495_v23 }
 0x154   : > { %v1528_v19 = vsel %vm223_vm0, %v501_v11, %v5121_v20  ;;  %v1430_v13 = vsel %vm223_vm0, %v373_v51, %v5122_v57 }
 0x155   : > { %v5130_v12 = vpop.permute.xlu1 %5129  ;;  %v1560_v16 = vsel %vm1433_vm2, %v1528_v19, %v5126_v17  ;;  %v1463_v22 = vsel %vm1433_vm2, %v1430_v13, %v5127_v41  ;;  %v6714_v41 = vpop.f32.mrb[16].mxu1  ;;  %v3497_v19 = vld [vmem:[%s7820_s3 + $0x8] sm:$0xff] }
 0x156   : > { %v5132_v28 = vunpack.i.h.bf16 %v5130_v12  ;;  %v5131_v31 = vunpack.i.l.bf16 %v5130_v12  ;;  %v5135_v56 = vpop.permute.xlu0 %5134  ;;  %v6716_v17 = vpop.f32.mrb[17].mxu1  ;;  %v3498_v12 = vld [vmem:[%s7820_s3 + $0x10] sm:$0xff] }
 0x157   : > { %v5137_v47 = vunpack.i.h.bf16 %v5135_v56  ;;  %v5136_v39 = vunpack.i.l.bf16 %v5135_v56 }
 0x158   : > { %v1592_v29 = vsel %vm1466_vm3, %v1560_v16, %v5131_v31  ;;  %v1496_v30 = vsel %vm1466_vm3, %v1463_v22, %v5132_v28  ;;  %v3499_v16 = vld [vmem:[%s7820_s3 + $0x18] sm:$0xff]  ;;  %v3500_v28 = vld [vmem:[%s7820_s3 + $0x20] sm:$0xff]  ;;  %v3501_v31 = vld [vmem:[%s7820_s3 + $0x28] sm:$0xff] }
 0x159   : > { %v5140_v2 = vpop.permute.xlu1 %5139  ;;  %1943 = vmatprep.mubr.f32.mxu0 %v1592_v29  ;;  %v1529_v34 = vsel %vm223_vm0, %v502_v18, %v5136_v39  ;;  %v1431_v33 = vsel %vm223_vm0, %v374_v7, %v5137_v47  ;;  %v4581_v22 = vpack.c.bf16 %v3499_v16, %v3498_v12  ;;  %v4584_v56 = vpack.c.bf16 %v3501_v31, %v3500_v28  ;;  %v6738_v18 = vpop.f32.mrb[18].mxu1  ;;  %v3502_v47 = vld [vmem:[%s7820_s3 + $0x30] sm:$0xff]  ;;  %v3503_v39 = vld [vmem:[%s7820_s3 + $0x38] sm:$0xff]  ;;  %v3520_v28 = vld [vmem:[%s7820_s3 + $0xc0] sm:$0xff] }
 0x15a   : > { %v5142_v48 = vunpack.i.h.bf16 %v5140_v2  ;;  %v5141_v53 = vunpack.i.l.bf16 %v5140_v2  ;;  %v5145_v21 = vpop.permute.xlu0 %5144  ;;  %1944 = vmatmul.mubr.f32.gmra.mrb[58].mxu0 %v1496_v30  ;;  %v6740_v7 = vpop.f32.mrb[19].mxu1  ;;  %v4587_v29 = vpack.c.bf16 %v3503_v39, %v3502_v47  ;;  %v3504_v30 = vld [vmem:[%s7820_s3 + $0x40] sm:$0xff]  ;;  %v3505_v2 = vld [vmem:[%s7820_s3 + $0x48] sm:$0xff] }
 0x15b   : > { %v5147_v8 = vunpack.i.h.bf16 %v5145_v21  ;;  %v5146_v27 = vunpack.i.l.bf16 %v5145_v21  ;;  %v3507_v21 = vld [vmem:[%s7820_s3 + $0x58] sm:$0xff]  ;;  %v3521_v31 = vld [vmem:[%s7820_s3 + $0xc8] sm:$0xff] }
 0x15c   : > { %v1561_v58 = vsel %vm1433_vm2, %v1529_v34, %v5141_v53  ;;  %v1464_v45 = vsel %vm1433_vm2, %v1431_v33, %v5142_v48  ;;  %v4590_v34 = vpack.c.bf16 %v3505_v2, %v3504_v30  ;;  %v6756_v33 = vpop.f32.mrb[20].mxu1  ;;  %v3506_v53 = vld [vmem:[%s7820_s3 + $0x50] sm:$0xff] }
 0x15d   : > { %v5150_v50 = vpop.permute.xlu1 %5149  ;;  %v1593_v35 = vsel %vm1466_vm3, %v1561_v58, %v5146_v27  ;;  %v1497_v60 = vsel %vm1466_vm3, %v1464_v45, %v5147_v8  ;;  %v6758_v48 = vpop.f32.mrb[21].mxu1  ;;  %v4593_v8 = vpack.c.bf16 %v3507_v21, %v3506_v53  ;;  %v3508_v27 = vld [vmem:[%s7820_s3 + $0x60] sm:$0xff]  ;;  %v3509_v58 = vld [vmem:[%s7820_s3 + $0x68] sm:$0xff] }
 0x15e   : > { %v5152_v32 = vunpack.i.h.bf16 %v5150_v50  ;;  %v5151_v62 = vunpack.i.l.bf16 %v5150_v50  ;;  %1948 = vmatprep.mubr.f32.mxu0 %v1593_v35  ;;  %v5155_v63 = vpop.permute.xlu0 %5154  ;;  %v4596_v45 = vpack.c.bf16 %v3509_v58, %v3508_v27  ;;  %v3510_v50 = vld [vmem:[%s7820_s3 + $0x70] sm:$0xff]  ;;  %v3511_v35 = vld [vmem:[%s7820_s3 + $0x78] sm:$0xff]  ;;  %v3524_v58 = vld [vmem:[%s7820_s3 + $0xe0] sm:$0xff] }
 0x15f   : > { %1949 = vmatmul.mubr.f32.gmra.mrb[60].mxu0 %v1497_v60  ;;  %v5157_v55 = vunpack.i.h.bf16 %v5155_v63  ;;  %v5156_v4 = vunpack.i.l.bf16 %v5155_v63  ;;  %v4599_v60 = vpack.c.bf16 %v3511_v35, %v3510_v50  ;;  %v3513_v63 = vld [vmem:[%s7820_s3 + $0x88] sm:$0xff] }
 0x160   : > { %v1530_v5 = vsel %vm223_vm0, %v6470_v6, %v5151_v62  ;;  %v1432_v10 = vsel %vm223_vm0, %v375_v0, %v5152_v32  ;;  %v3496_v6 = vld [vmem:[%s7820_s3] sm:$0xff]  ;;  %v6781_v0 = vpop.f32.mrb[22].mxu1 }
 0x161   : > { %v5160_v24 = vpop.permute.xlu1 %5159  ;;  %v1562_v23 = vsel %vm1433_vm2, %v1530_v5, %v5156_v4  ;;  %v1465_v11 = vsel %vm1433_vm2, %v1432_v10, %v5157_v55  ;;  %v4578_v13 = vpack.c.bf16 %v3497_v19, %v3496_v6  ;;  %v6783_v32 = vpop.f32.mrb[23].mxu1  ;;  %v3512_v62 = vld [vmem:[%s7820_s3 + $0x80] sm:$0xff]  ;;  %v3514_v4 = vld [vmem:[%s7820_s3 + $0x90] sm:$0xff]  ;;  %v3515_v5 = vld [vmem:[%s7820_s3 + $0x98] sm:$0xff] }
 0x162   : > { %v5162_v51 = vunpack.i.h.bf16 %v5160_v24  ;;  %v5161_v57 = vunpack.i.l.bf16 %v5160_v24  ;;  %v4602_v55 = vpack.c.bf16 %v3513_v63, %v3512_v62  ;;  %v4605_v10 = vpack.c.bf16 %v3515_v5, %v3514_v4  ;;  %v3516_v24 = vld [vmem:[%s7820_s3 + $0xa0] sm:$0xff]  ;;  %v3519_v6 = vld [vmem:[%s7820_s3 + $0xb8] sm:$0xff]  ;;  %v3526_v63 = vld [vmem:[%s7820_s3 + $0xf0] sm:$0xff] }
 0x163   : > { %4579 = vmatpush1.bf16.msra.mxu1 %v4578_v13 }
 0x164   : > { %v1594_v20 = vsel %vm1466_vm3, %v1562_v23, %v5161_v57  ;;  %v1498_v46 = vsel %vm1466_vm3, %v1465_v11, %v5162_v51  ;;  %4580 = vmatprep.subr.bf16.mxu1 %v5709_v1  ;;  %v3517_v23 = vld [vmem:[%s7820_s3 + $0xa8] sm:$0xff]  ;;  %v6809_v51 = vld [vmem:[%s7819_s2] ss:$0 sm:$0xff]  ;;  %v6811_v57 = vpop.f32.mrb[24].mxu1 }
 0x165   : > { %1953 = vmatprep.mubr.f32.mxu0 %v1594_v20  ;;  %v4608_v11 = vpack.c.bf16 %v3517_v23, %v3516_v24  ;;  %v6813_v20 = vpop.f32.mrb[25].mxu1 }
 0x166   : > { %1954 = vmatmul.mubr.f32.gmra.mrb[62].mxu0 %v1498_v46  ;;  %v3518_v46 = vld [vmem:[%s7820_s3 + $0xb0] sm:$0xff] }
 0x167   : > { %4582 = vmatpush1.bf16.msra.mxu1 %v4581_v22  ;;  %v4611_v13 = vpack.c.bf16 %v3519_v6, %v3518_v46 }
 0x168   : > { %4583 = vmatprep.subr.bf16.mxu1 %v5709_v1 }
 0x16b   : > { %4585 = vmatpush1.bf16.msra.mxu1 %v4584_v56  ;;  %v4614_v56 = vpack.c.bf16 %v3521_v31, %v3520_v28 }
 0x16c   : > { %4586 = vmatprep.subr.bf16.mxu1 %v5709_v1 }
 0x16f   : > { %4588 = vmatpush1.bf16.msra.mxu1 %v4587_v29  ;;  %v3523_v29 = vld [vmem:[%s7820_s3 + $0xd8] sm:$0xff]  ;;  %v6841_v21 = vpop.f32.mrb[26].mxu1 }
 0x170   : > { %4589 = vmatprep.subr.bf16.mxu1 %v5709_v1  ;;  %v6843_v27 = vpop.f32.mrb[27].mxu1 }
 0x173   : > { %4591 = vmatpush1.bf16.msra.mxu1 %v4590_v34  ;;  %v6873_v31 = vpop.f32.mrb[28].mxu1 }
 0x174   : > { %4592 = vmatprep.subr.bf16.mxu1 %v5709_v1 }
 0x177   : > { %4594 = vmatpush1.bf16.msra.mxu1 %v4593_v8 }
 0x178   : > { %4595 = vmatprep.subr.bf16.mxu1 %v5709_v1 }
 0x17b   : > { %4597 = vmatpush1.bf16.msra.mxu1 %v4596_v45  ;;  %v3525_v45 = vld [vmem:[%s7820_s3 + $0xe8] sm:$0xff] }
 0x17c   : > { %4598 = vmatprep.subr.bf16.mxu1 %v5709_v1 }
 0x17f   : > { %4600 = vmatpush1.bf16.msra.mxu1 %v4599_v60  ;;  %v4620_v60 = vpack.c.bf16 %v3525_v45, %v3524_v58  ;;  %v2313_v58 = vld [vmem:[#allocation2 + $0xa] sm:$0xff] }
 0x180   : > { %4601 = vmatprep.subr.bf16.mxu1 %v5709_v1 }
 0x183   : > { %4603 = vmatpush1.bf16.msra.mxu1 %v4602_v55  ;;  %v3527_v55 = vld [vmem:[%s7820_s3 + $0xf8] sm:$0xff] }
 0x184   : > { %4604 = vmatprep.subr.bf16.mxu1 %v5709_v1 }
 0x187   : > { %4606 = vmatpush1.bf16.msra.mxu1 %v4605_v10  ;;  %v4623_v10 = vpack.c.bf16 %v3527_v55, %v3526_v63 }
 0x188   : > { %4607 = vmatprep.subr.bf16.mxu1 %v5709_v1 }
 0x18b   : > { %4609 = vmatpush1.bf16.msra.mxu1 %v4608_v11  ;;  %v2280_v11 = vld [vmem:[#allocation2 + $0x1] sm:$0xff] }
 0x18c   : > { %4610 = vmatprep.subr.bf16.mxu1 %v5709_v1 }
 0x18f   : > { %4612 = vmatpush1.bf16.msra.mxu1 %v4611_v13 }
 0x190   : > { %4613 = vmatprep.subr.bf16.mxu1 %v5709_v1 }
 0x192   : > { %v1800_v19 = vpop.f32.mrb[0].mxu0 }
 0x193   : > { %v1801_v12 = vadd.f32 %v6809_v51, %v1800_v19  ;;  %v1802_v16 = vpop.f32.mrb[1].mxu0  ;;  %4615 = vmatpush1.bf16.msra.mxu1 %v4614_v56  ;;  %v2312_v56 = vld [vmem:[#allocation2 + $0x2] sm:$0xff] }
 0x194   : > { %4616 = vmatprep.subr.bf16.mxu1 %v5709_v1 }
 0x195   : > { %v2026_v22 = vadd.f32 %v6616_v59, %v1801_v12  ;;  %v3522_v59 = vld [vmem:[%s7820_s3 + $0xd0] sm:$0xff] }
 0x196   : > { %v4617_v34 = vpack.c.bf16 %v3523_v29, %v3522_v59 }
 0x197   : > { %v2184_v47 = vmax.f32 %v2026_v22, 0.0 }
 0x198   : > { %4618 = vmatpush1.bf16.msra.mxu1 %v4617_v34 }
 0x199   : > { %2216 = vst.msk [vmem:[#allocation2 + $0x19] sm:$0xff] %vm223_vm0, %v2184_v47  ;;  %v1805_v39 = vpop.f32.mrb[2].mxu0  ;;  %4619 = vmatprep.subr.bf16.mxu1 %v5709_v1  ;;  %v6877_v47 = vpop.f32.mrb[29].mxu1 }
 0x19a   : > { %v1806_v30 = vadd.f32 %v6809_v51, %v1805_v39  ;;  %v1807_v2 = vpop.f32.mrb[3].mxu0 }
 0x19c   : > { %v2031_v53 = vadd.f32 %v6611_v42, %v1806_v30  ;;  %4621 = vmatpush1.bf16.msra.mxu1 %v4620_v60 }
 0x19d   : > { %v1810_v8 = vpop.f32.mrb[4].mxu0  ;;  %4622 = vmatprep.subr.bf16.mxu1 %v5709_v1  ;;  %v2281_v1 = vld [vmem:[#allocation2 + $0x9] sm:$0xff] }
 0x19e   : > { %v2185_v50 = vmax.f32 %v2031_v53, 0.0  ;;  %v1811_v35 = vadd.f32 %v6809_v51, %v1810_v8  ;;  %v1812_v42 = vpop.f32.mrb[5].mxu0 }
 0x1a0   : > { %2217 = vst.msk [vmem:[#allocation2 + $0x21] sm:$0xff] %vm223_vm0, %v2185_v50  ;;  %v2036_v62 = vadd.f32 %v6634_v37, %v1811_v35  ;;  %4624 = vmatpush1.bf16.msra.mxu1 %v4623_v10  ;;  %v2344_v59 = vld [vmem:[#allocation2 + $0x18] sm:$0xff] }
 0x1a1   : > { %4633 = vmatprep.subr.bf16.mxu1 %v6609_v25 }
 0x1a2   : > { %v2186_v4 = vmax.f32 %v2036_v62, 0.0  ;;  %v1815_v5 = vpop.f32.mrb[6].mxu0 }
 0x1a3   : > { %v1816_v24 = vadd.f32 %v6809_v51, %v1815_v5  ;;  %v1817_v23 = vpop.f32.mrb[7].mxu0 }
 0x1a4   : > { %2218 = vst.msk [vmem:[#allocation2 + $0x31] sm:$0xff] %vm223_vm0, %v2186_v4  ;;  %v6902_v23 = vld [vmem:[#allocation2 + $0x19] sm:$0xff] }
 0x1a5   : > { %v2041_v37 = vadd.f32 %v6629_v44, %v1816_v24 }
 0x1a6   : > { %v1820_v46 = vpop.f32.mrb[8].mxu0 }
 0x1a7   : > { %v2187_v6 = vmax.f32 %v2041_v37, 0.0  ;;  %v1821_v19 = vadd.f32 %v6809_v51, %v1820_v46  ;;  %v1822_v13 = vpop.f32.mrb[9].mxu0  ;;  %v6867_v12 = vld [vmem:[#allocation2 + $0x22] sm:$0xff]  ;;  %v6869_v16 = vld [vmem:[#allocation2 + $0x1a] sm:$0xff] }
 0x1a8   : > { %v5168_v22 = vpack.i.bf16 %v2281_v1, %v6867_v12  ;;  %v5163_v28 = vpack.i.bf16 %v2280_v11, %v6869_v16  ;;  %v2345_v63 = vld [vmem:[#allocation2 + $0x20] sm:$0xff] }
 0x1a9   : > { %2219 = vst.msk [vmem:[#allocation2 + $0x39] sm:$0xff] %vm223_vm0, %v2187_v6  ;;  %v2046_v44 = vadd.f32 %v6643_v38, %v1821_v19  ;;  %v2283_v1 = vld [vmem:[#allocation2 + $0x21] sm:$0xff] }
 0x1aa   : > { %5169 = vrot.lane.b32.xlu1 %v5168_v22, %s5710_s10  ;;  %5164 = vrot.lane.b32.xlu0 %v5163_v28, %s5710_s10 }
 0x1ab   : > { %v2188_v39 = vmax.f32 %v2046_v44, 0.0  ;;  %v6881_v29 = vld [vmem:[#allocation2 + $0x31] sm:$0xff] }
 0x1ac   : > { %v2440_v30 = vld [vmem:[#allocation2 + $0x30] sm:$0xff]  ;;  %v5178_v2 = vpack.i.bf16 %v2344_v59, %v6881_v29  ;;  %v6904_v37 = vpop.f32.mrb[30].mxu1 }
 0x1ad   : > { %v5173_v34 = vpack.i.bf16 %v2312_v56, %v2440_v30  ;;  %2220 = vst.msk [vmem:[#allocation2 + $0x49] sm:$0xff] %vm223_vm0, %v2188_v39  ;;  %v1825_v53 = vpop.f32.mrb[10].mxu0  ;;  %v6908_v46 = vpop.f32.mrb[31].mxu1 }
 0x1ae   : > { %v1826_v38 = vadd.f32 %v6809_v51, %v1825_v53  ;;  %v1827_v8 = vpop.f32.mrb[11].mxu0  ;;  %5179 = vrot.lane.b32.xlu0 %v5178_v2, %s5712_s7 }
 0x1af   : > { %5174 = vrot.lane.b32.xlu1 %v5173_v34, %s5711_s23 }
 0x1b0   : > { %v2051_v45 = vadd.f32 %v6639_v40, %v1826_v38  ;;  %v6889_v50 = vld [vmem:[#allocation2 + $0x32] sm:$0xff]  ;;  %v6891_v35 = vld [vmem:[#allocation2 + $0x3a] sm:$0xff] }
 0x1b1   : > { %v2441_v42 = vld [vmem:[#allocation2 + $0x38] sm:$0xff]  ;;  %v1830_v60 = vpop.f32.mrb[12].mxu0  ;;  %4473 = vmatprep.mubr.msk.f32.mxu0 %vm223_vm0, %v6889_v50  ;;  %v5193_v11 = vpack.i.bf16 %v6902_v23, %v6889_v50  ;;  %v5198_v13 = vpack.i.bf16 %v2283_v1, %v6891_v35 }
 0x1b2   : > { %v5183_v62 = vpack.i.bf16 %v2313_v58, %v2441_v42  ;;  %v2473_v55 = vld [vmem:[#allocation2 + $0x39] sm:$0xff]  ;;  %v2189_v4 = vmax.f32 %v2051_v45, 0.0  ;;  %v1831_v5 = vadd.f32 %v6809_v51, %v1830_v60  ;;  %v1832_v10 = vpop.f32.mrb[13].mxu0  ;;  %4474 = vmatmul.mubr.msk.f32.vlgmr.msra.gmra.mrb[64].mxu0 %vm223_vm0, %v6891_v35 }
 0x1b3   : > { %v5188_v40 = vpack.i.bf16 %v2345_v63, %v2473_v55 }
 0x1b4   : > { %5184 = vrot.lane.b32.xlu0 %v5183_v62, %s5711_s23  ;;  %2221 = vst.msk [vmem:[#allocation2 + $0x51] sm:$0xff] %vm223_vm0, %v2189_v4  ;;  %v2056_v24 = vadd.f32 %v6651_v36, %v1831_v5  ;;  %v6911_v22 = vld [vmem:[#allocation2 + $0x49] sm:$0xff] }
 0x1b5   : > { %5189 = vrot.lane.b32.xlu1 %v5188_v40, %s5712_s7  ;;  %v2442_v44 = vld [vmem:[#allocation2 + $0x48] sm:$0xff]  ;;  %v5208_v39 = vpack.i.bf16 %v2440_v30, %v6911_v22 }
 0x1b6   : > { %v2190_v6 = vmax.f32 %v2056_v24, 0.0  ;;  %v1835_v19 = vpop.f32.mrb[14].mxu0  ;;  %v5203_v2 = vpack.i.bf16 %v6869_v16, %v2442_v44 }
 0x1b7   : > { %v1836_v36 = vadd.f32 %v6809_v51, %v1835_v19  ;;  %v1837_v28 = vpop.f32.mrb[15].mxu0 }
 0x1b8   : > { %5194 = vrot.lane.b32.xlu0 %v5193_v11, %s5710_s10  ;;  %2222 = vst.msk [vmem:[#allocation2 + $0x61] sm:$0xff] %vm223_vm0, %v2190_v6 }
 0x1b9   : > { %5199 = vrot.lane.b32.xlu1 %v5198_v13, %s5710_s10  ;;  %v2061_v56 = vadd.f32 %v6647_v61, %v1836_v36 }
 0x1ba   : > { %v1840_v59 = vpop.f32.mrb[16].mxu0 }
 0x1bb   : > { %v2191_v34 = vmax.f32 %v2061_v56, 0.0  ;;  %v1841_v53 = vadd.f32 %v6809_v51, %v1840_v59  ;;  %v1842_v38 = vpop.f32.mrb[17].mxu0  ;;  %v6922_v8 = vld [vmem:[#allocation2 + $0x4a] sm:$0xff]  ;;  %v6924_v58 = vld [vmem:[#allocation2 + $0x52] sm:$0xff] }
 0x1bc   : > { %5209 = vrot.lane.b32.xlu0 %v5208_v39, %s5712_s7  ;;  %v2475_v45 = vld [vmem:[#allocation2 + $0x51] sm:$0xff]  ;;  %4476 = vmatprep.mubr.msk.f32.mxu0 %vm223_vm0, %v6922_v8 }
 0x1bd   : > { %5204 = vrot.lane.b32.xlu1 %v5203_v2, %s5711_s23  ;;  %v5218_v61 = vpack.i.bf16 %v2441_v42, %v2475_v45  ;;  %v2443_v30 = vld [vmem:[#allocation2 + $0x50] sm:$0xff]  ;;  %2223 = vst.msk [vmem:[#allocation2 + $0x69] sm:$0xff] %vm223_vm0, %v2191_v34  ;;  %v2066_v16 = vadd.f32 %v6661_v3, %v1841_v53  ;;  %4477 = vmatmul.mubr.msk.f32.gmra.mrb[66].mxu0 %vm223_vm0, %v6924_v58 }
 0x1be   : > { %v5213_v60 = vpack.i.bf16 %v6867_v12, %v2443_v30  ;;  %v5223_v42 = vpack.i.bf16 %v6881_v29, %v6922_v8  ;;  %v5228_v3 = vpack.i.bf16 %v2473_v55, %v6924_v58 }
 0x1bf   : > { %v2192_v62 = vmax.f32 %v2066_v16, 0.0  ;;  %v6941_v10 = vld [vmem:[#allocation2 + $0x61] sm:$0xff] }
 0x1c0   : > { %5214 = vrot.lane.b32.xlu0 %v5213_v60, %s5711_s23  ;;  %v2444_v12 = vld [vmem:[#allocation2 + $0x60] sm:$0xff]  ;;  %v5238_v29 = vpack.i.bf16 %v2442_v44, %v6941_v10 }
 0x1c1   : > { %5219 = vrot.lane.b32.xlu1 %v5218_v61, %s5712_s7  ;;  %2224 = vst.msk [vmem:[#allocation2 + $0x79] sm:$0xff] %vm223_vm0, %v2192_v62  ;;  %v1845_v63 = vpop.f32.mrb[18].mxu0 }
 0x1c2   : > { %v1846_v4 = vadd.f32 %v6809_v51, %v1845_v63  ;;  %v1847_v5 = vpop.f32.mrb[19].mxu0 }
 0x1c4   : > { %5224 = vrot.lane.b32.xlu0 %v5223_v42, %s5710_s10  ;;  %v2071_v40 = vadd.f32 %v6657_v9, %v1846_v4  ;;  %v6946_v24 = vld [vmem:[#allocation2 + $0x62] sm:$0xff]  ;;  %v6948_v1 = vld [vmem:[#allocation2 + $0x6a] sm:$0xff]  ;;  %v5233_v9 = vpack.i.bf16 %v6889_v50, %v2444_v12 }
 0x1c5   : > { %5229 = vrot.lane.b32.xlu1 %v5228_v3, %s5710_s10  ;;  %v1850_v11 = vpop.f32.mrb[20].mxu0  ;;  %4479 = vmatprep.mubr.msk.f32.mxu0 %vm223_vm0, %v6946_v24  ;;  %v2445_v13 = vld [vmem:[#allocation2 + $0x68] sm:$0xff] }
 0x1c6   : > { %v2193_v55 = vmax.f32 %v2071_v40, 0.0  ;;  %v1851_v6 = vadd.f32 %v6809_v51, %v1850_v11  ;;  %v1852_v19 = vpop.f32.mrb[21].mxu0  ;;  %4480 = vmatmul.mubr.msk.f32.gmra.mrb[68].mxu0 %vm223_vm0, %v6948_v1  ;;  %v2477_v36 = vld [vmem:[#allocation2 + $0x69] sm:$0xff]  ;;  %v5243_v44 = vpack.i.bf16 %v6891_v35, %v2445_v13  ;;  %v5258_v35 = vpack.i.bf16 %v2475_v45, %v6948_v1 }
 0x1c7   : > { %v5248_v59 = vpack.i.bf16 %v2443_v30, %v2477_v36 }
 0x1c8   : > { %5239 = vrot.lane.b32.xlu0 %v5238_v29, %s5712_s7  ;;  %2225 = vst.msk [vmem:[#allocation2 + $0x81] sm:$0xff] %vm223_vm0, %v2193_v55  ;;  %v2076_v28 = vadd.f32 %v6675_v43, %v1851_v6  ;;  %v5253_v43 = vpack.i.bf16 %v6911_v22, %v6946_v24  ;;  %v6970_v38 = vld [vmem:[#allocation2 + $0x79] sm:$0xff] }
 0x1c9   : > { %5234 = vrot.lane.b32.xlu1 %v5233_v9, %s5711_s23  ;;  %v2446_v63 = vld [vmem:[#allocation2 + $0x78] sm:$0xff]  ;;  %v5268_v22 = vpack.i.bf16 %v2444_v12, %v6970_v38 }
 0x1ca   : > { %v2194_v56 = vmax.f32 %v2076_v28, 0.0  ;;  %v1855_v39 = vpop.f32.mrb[22].mxu0  ;;  %v5263_v45 = vpack.i.bf16 %v6922_v8, %v2446_v63 }
 0x1cb   : > { %v1856_v2 = vadd.f32 %v6809_v51, %v1855_v39  ;;  %v1857_v34 = vpop.f32.mrb[23].mxu0 }
 0x1cc   : > { %5244 = vrot.lane.b32.xlu0 %v5243_v44, %s5711_s23  ;;  %2226 = vst.msk [vmem:[#allocation2 + $0x91] sm:$0xff] %vm223_vm0, %v2194_v56 }
 0x1cd   : > { %5249 = vrot.lane.b32.xlu1 %v5248_v59, %s5712_s7  ;;  %v2081_v50 = vadd.f32 %v6671_v26, %v1856_v2 }
 0x1ce   : > { %v1860_v53 = vpop.f32.mrb[24].mxu0 }
 0x1cf   : > { %v2195_v61 = vmax.f32 %v2081_v50, 0.0  ;;  %v1861_v30 = vadd.f32 %v6809_v51, %v1860_v53  ;;  %v1862_v16 = vpop.f32.mrb[25].mxu0  ;;  %v6974_v60 = vld [vmem:[#allocation2 + $0x7a] sm:$0xff]  ;;  %v6976_v62 = vld [vmem:[#allocation2 + $0x82] sm:$0xff] }
 0x1d0   : > { %5254 = vrot.lane.b32.xlu0 %v5253_v43, %s5710_s10  ;;  %4482 = vmatprep.mubr.msk.f32.mxu0 %vm223_vm0, %v6974_v60  ;;  %v2447_v42 = vld [vmem:[#allocation2 + $0x80] sm:$0xff] }
 0x1d1   : > { %5259 = vrot.lane.b32.xlu1 %v5258_v35, %s5710_s10  ;;  %2227 = vst.msk [vmem:[#allocation2 + $0x99] sm:$0xff] %vm223_vm0, %v2195_v61  ;;  %v2086_v26 = vadd.f32 %v6689_v15, %v1861_v30  ;;  %4483 = vmatmul.mubr.msk.f32.gmra.mrb[70].mxu0 %vm223_vm0, %v6976_v62  ;;  %v2479_v5 = vld [vmem:[#allocation2 + $0x81] sm:$0xff]  ;;  %v5273_v40 = vpack.i.bf16 %v6924_v58, %v2447_v42 }
 0x1d2   : > { %v5278_v29 = vpack.i.bf16 %v2445_v13, %v2479_v5  ;;  %v5283_v58 = vpack.i.bf16 %v6941_v10, %v6974_v60 }
 0x1d3   : > { %v2196_v4 = vmax.f32 %v2086_v26, 0.0  ;;  %v7007_v28 = vld [vmem:[#allocation2 + $0x91] sm:$0xff] }
 0x1d4   : > { %5269 = vrot.lane.b32.xlu0 %v5268_v22, %s5712_s7  ;;  %v2448_v44 = vld [vmem:[#allocation2 + $0x90] sm:$0xff]  ;;  %v5298_v10 = vpack.i.bf16 %v2446_v63, %v7007_v28 }
 0x1d5   : > { %5264 = vrot.lane.b32.xlu1 %v5263_v45, %s5711_s23  ;;  %2228 = vst.msk [vmem:[#allocation2 + $0xa9] sm:$0xff] %vm223_vm0, %v2196_v4  ;;  %v1865_v3 = vpop.f32.mrb[26].mxu0  ;;  %v5293_v2 = vpack.i.bf16 %v6946_v24, %v2448_v44 }
 0x1d6   : > { %v1866_v15 = vadd.f32 %v6809_v51, %v1865_v3  ;;  %v1867_v11 = vpop.f32.mrb[27].mxu0 }
 0x1d8   : > { %5274 = vrot.lane.b32.xlu0 %v5273_v40, %s5711_s23  ;;  %v2091_v8 = vadd.f32 %v6685_v54, %v1866_v15  ;;  %v6995_v12 = vld [vmem:[#allocation2 + $0x92] sm:$0xff]  ;;  %v6997_v55 = vld [vmem:[#allocation2 + $0x9a] sm:$0xff]  ;;  %v5288_v54 = vpack.i.bf16 %v2477_v36, %v6976_v62 }
 0x1d9   : > { %5279 = vrot.lane.b32.xlu1 %v5278_v29, %s5712_s7  ;;  %v1870_v6 = vpop.f32.mrb[28].mxu0  ;;  %4485 = vmatprep.mubr.msk.f32.mxu0 %vm223_vm0, %v6995_v12  ;;  %v2449_v34 = vld [vmem:[#allocation2 + $0x98] sm:$0xff]  ;;  %v5318_v22 = vpack.i.bf16 %v2479_v5, %v6997_v55 }
 0x1da   : > { %v2197_v19 = vmax.f32 %v2091_v8, 0.0  ;;  %v1871_v9 = vadd.f32 %v6809_v51, %v1870_v6  ;;  %v1872_v13 = vpop.f32.mrb[29].mxu0  ;;  %4486 = vmatmul.mubr.msk.f32.gmra.mrb[72].mxu0 %vm223_vm0, %v6997_v55  ;;  %v2481_v43 = vld [vmem:[#allocation2 + $0x99] sm:$0xff]  ;;  %v5303_v53 = vpack.i.bf16 %v6948_v1, %v2449_v34  ;;  %v5313_v1 = vpack.i.bf16 %v6970_v38, %v6995_v12 }
 0x1db   : > { %v5308_v61 = vpack.i.bf16 %v2447_v42, %v2481_v43 }
 0x1dc   : > { %5284 = vrot.lane.b32.xlu0 %v5283_v58, %s5710_s10  ;;  %2229 = vst.msk [vmem:[#allocation2 + $0xb1] sm:$0xff] %vm223_vm0, %v2197_v19  ;;  %v2096_v56 = vadd.f32 %v6703_v52, %v1871_v9  ;;  %v7037_v45 = vld [vmem:[#allocation2 + $0xa9] sm:$0xff] }
 0x1dd   : > { %5289 = vrot.lane.b32.xlu1 %v5288_v54, %s5710_s10  ;;  %v2450_v4 = vld [vmem:[#allocation2 + $0xa8] sm:$0xff] }
 0x1de   : > { %v2198_v39 = vmax.f32 %v2096_v56, 0.0  ;;  %v1875_v59 = vpop.f32.mrb[30].mxu0  ;;  %v5323_v38 = vpack.i.bf16 %v6974_v60, %v2450_v4 }
 0x1df   : > { %v1876_v36 = vadd.f32 %v6809_v51, %v1875_v59  ;;  %v1877_v50 = vpop.f32.mrb[31].mxu0 }
 0x1e0   : > { %5299 = vrot.lane.b32.xlu0 %v5298_v10, %s5712_s7  ;;  %2230 = vst.msk [vmem:[#allocation2 + $0xc1] sm:$0xff] %vm223_vm0, %v2198_v39 }
 0x1e1   : > { %5294 = vrot.lane.b32.xlu1 %v5293_v2, %s5711_s23  ;;  %v2101_v52 = vadd.f32 %v6699_v49, %v1876_v36 }
 0x1e2   : > { %v1880_v35 = vpop.f32.mrb[32].mxu0 }
 0x1e3   : > { %v2199_v30 = vmax.f32 %v2101_v52, 0.0  ;;  %v1881_v24 = vadd.f32 %v6809_v51, %v1880_v35  ;;  %v1882_v16 = vpop.f32.mrb[33].mxu0  ;;  %v7023_v63 = vld [vmem:[#allocation2 + $0xaa] sm:$0xff]  ;;  %v7025_v26 = vld [vmem:[#allocation2 + $0xb2] sm:$0xff] }
 0x1e4   : > { %5304 = vrot.lane.b32.xlu0 %v5303_v53, %s5711_s23  ;;  %4488 = vmatprep.mubr.msk.f32.mxu0 %vm223_vm0, %v7023_v63  ;;  %v2451_v11 = vld [vmem:[#allocation2 + $0xb0] sm:$0xff]  ;;  %v5348_v10 = vpack.i.bf16 %v2481_v43, %v7025_v26 }
 0x1e5   : > { %5309 = vrot.lane.b32.xlu1 %v5308_v61, %s5712_s7  ;;  %2231 = vst.msk [vmem:[#allocation2 + $0xc9] sm:$0xff] %vm223_vm0, %v2199_v30  ;;  %v2106_v49 = vadd.f32 %v6716_v17, %v1881_v24  ;;  %4489 = vmatmul.mubr.msk.f32.gmra.mrb[74].mxu0 %vm223_vm0, %v7025_v26  ;;  %v5328_v17 = vpack.i.bf16 %v2448_v44, %v7037_v45  ;;  %v2483_v5 = vld [vmem:[#allocation2 + $0xb1] sm:$0xff] }
 0x1e6   : > { %v5333_v19 = vpack.i.bf16 %v6976_v62, %v2451_v11  ;;  %v5343_v44 = vpack.i.bf16 %v7007_v28, %v7023_v63 }
 0x1e7   : > { %v2200_v42 = vmax.f32 %v2106_v49, 0.0  ;;  %v7065_v39 = vld [vmem:[#allocation2 + $0xc1] sm:$0xff] }
 0x1e8   : > { %5314 = vrot.lane.b32.xlu0 %v5313_v1, %s5710_s10  ;;  %v5358_v28 = vpack.i.bf16 %v2450_v4, %v7065_v39 }
 0x1e9   : > { %5319 = vrot.lane.b32.xlu1 %v5318_v22, %s5710_s10  ;;  %2232 = vst.msk [vmem:[#allocation2 + $0xd9] sm:$0xff] %vm223_vm0, %v2200_v42  ;;  %v1885_v3 = vpop.f32.mrb[34].mxu0 }
 0x1ea   : > { %v1886_v40 = vadd.f32 %v6809_v51, %v1885_v3  ;;  %v1887_v15 = vpop.f32.mrb[35].mxu0 }
 0x1ec   : > { %5329 = vrot.lane.b32.xlu0 %v5328_v17, %s5712_s7  ;;  %v2111_v29 = vadd.f32 %v6714_v41, %v1886_v40  ;;  %v7048_v8 = vld [vmem:[#allocation2 + $0xc2] sm:$0xff]  ;;  %v7050_v6 = vld [vmem:[#allocation2 + $0xca] sm:$0xff]  ;;  %v5338_v41 = vpack.i.bf16 %v2449_v34, %v2483_v5 }
 0x1ed   : > { %5324 = vrot.lane.b32.xlu1 %v5323_v38, %s5711_s23  ;;  %v1890_v58 = vpop.f32.mrb[36].mxu0  ;;  %4491 = vmatprep.mubr.msk.f32.mxu0 %vm223_vm0, %v7048_v8  ;;  %v2452_v34 = vld [vmem:[#allocation2 + $0xc0] sm:$0xff]  ;;  %v2453_v43 = vld [vmem:[#allocation2 + $0xc8] sm:$0xff]  ;;  %v5373_v22 = vpack.i.bf16 %v7037_v45, %v7048_v8 }
 0x1ee   : > { %v2201_v9 = vmax.f32 %v2111_v29, 0.0  ;;  %v1891_v60 = vadd.f32 %v6809_v51, %v1890_v58  ;;  %v1892_v13 = vpop.f32.mrb[37].mxu0  ;;  %4492 = vmatmul.mubr.msk.f32.gmra.mrb[76].mxu0 %vm223_vm0, %v7050_v6  ;;  %v5353_v50 = vpack.i.bf16 %v6995_v12, %v2452_v34  ;;  %v2485_v24 = vld [vmem:[#allocation2 + $0xc9] sm:$0xff]  ;;  %v5363_v12 = vpack.i.bf16 %v6997_v55, %v2453_v43 }
 0x1ef   : > { %v5368_v16 = vpack.i.bf16 %v2451_v11, %v2485_v24 }
 0x1f0   : > { %5334 = vrot.lane.b32.xlu0 %v5333_v19, %s5711_s23  ;;  %2233 = vst.msk [vmem:[#allocation2 + $0xe1] sm:$0xff] %vm223_vm0, %v2201_v9  ;;  %v2116_v54 = vadd.f32 %v6740_v7, %v1891_v60  ;;  %v2486_v3 = vld [vmem:[#allocation2 + $0xd9] sm:$0xff] }
 0x1f1   : > { %5339 = vrot.lane.b32.xlu1 %v5338_v41, %s5712_s7  ;;  %v2454_v55 = vld [vmem:[#allocation2 + $0xd8] sm:$0xff]  ;;  %v5388_v45 = vpack.i.bf16 %v2452_v34, %v2486_v3 }
 0x1f2   : > { %v2202_v62 = vmax.f32 %v2116_v54, 0.0  ;;  %v1895_v56 = vpop.f32.mrb[38].mxu0 }
 0x1f3   : > { %v1896_v59 = vadd.f32 %v6809_v51, %v1895_v56  ;;  %v1897_v2 = vpop.f32.mrb[39].mxu0 }
 0x1f4   : > { %5344 = vrot.lane.b32.xlu0 %v5343_v44, %s5710_s10  ;;  %2234 = vst.msk [vmem:[#allocation2 + $0xf1] sm:$0xff] %vm223_vm0, %v2202_v62 }
 0x1f5   : > { %5349 = vrot.lane.b32.xlu1 %v5348_v10, %s5710_s10  ;;  %v2121_v7 = vadd.f32 %v6738_v18, %v1896_v59 }
 0x1f6   : > { %v1900_v36 = vpop.f32.mrb[40].mxu0 }
 0x1f7   : > { %v2203_v52 = vmax.f32 %v2121_v7, 0.0  ;;  %v1901_v53 = vadd.f32 %v6809_v51, %v1900_v36  ;;  %v1902_v35 = vpop.f32.mrb[41].mxu0  ;;  %v7076_v61 = vld [vmem:[#allocation2 + $0xda] sm:$0xff]  ;;  %v7078_v30 = vld [vmem:[#allocation2 + $0xe2] sm:$0xff] }
 0x1f8   : > { %5359 = vrot.lane.b32.xlu0 %v5358_v28, %s5712_s7  ;;  %4494 = vmatprep.mubr.msk.f32.mxu0 %vm223_vm0, %v7076_v61  ;;  %v2455_v29 = vld [vmem:[#allocation2 + $0xe0] sm:$0xff]  ;;  %v5403_v54 = vpack.i.bf16 %v7065_v39, %v7076_v61  ;;  %v5408_v62 = vpack.i.bf16 %v2485_v24, %v7078_v30 }
 0x1f9   : > { %5354 = vrot.lane.b32.xlu1 %v5353_v50, %s5711_s23  ;;  %2235 = vst.msk [vmem:[#allocation2 + $0xf9] sm:$0xff] %vm223_vm0, %v2203_v52  ;;  %v2126_v18 = vadd.f32 %v6758_v48, %v1901_v53  ;;  %4495 = vmatmul.mubr.msk.f32.gmra.mrb[78].mxu0 %vm223_vm0, %v7078_v30  ;;  %v5378_v48 = vpack.i.bf16 %v2483_v5, %v7050_v6  ;;  %v2487_v58 = vld [vmem:[#allocation2 + $0xe1] sm:$0xff] }
 0x1fa   : > { %v5383_v5 = vpack.i.bf16 %v7023_v63, %v2454_v55  ;;  %v5393_v60 = vpack.i.bf16 %v7025_v26, %v2455_v29  ;;  %v5398_v13 = vpack.i.bf16 %v2453_v43, %v2487_v58 }
 0x1fb   : > { %v2204_v49 = vmax.f32 %v2126_v18, 0.0  ;;  %v2456_v26 = vld [vmem:[#allocation2 + $0xf0] sm:$0xff] }
 0x1fc   : > { %5364 = vrot.lane.b32.xlu0 %v5363_v12, %s5711_s23  ;;  %v5413_v39 = vpack.i.bf16 %v7048_v8, %v2456_v26 }
 0x1fd   : > { %5369 = vrot.lane.b32.xlu1 %v5368_v16, %s5712_s7  ;;  %2236 = vst.msk [vmem:[#allocation2 + $0x109] sm:$0xff] %vm223_vm0, %v2204_v49  ;;  %v1905_v1 = vpop.f32.mrb[42].mxu0 }
 0x1fe   : > { %v1906_v42 = vadd.f32 %v6809_v51, %v1905_v1  ;;  %v1907_v4 = vpop.f32.mrb[43].mxu0 }
 0x200   : > { %5374 = vrot.lane.b32.xlu0 %v5373_v22, %s5710_s10  ;;  %v2131_v17 = vadd.f32 %v6756_v33, %v1906_v42  ;;  %v7098_v40 = vld [vmem:[#allocation2 + $0xf2] sm:$0xff]  ;;  %v7100_v15 = vld [vmem:[#allocation2 + $0xfa] sm:$0xff] }
 0x201   : > { %5379 = vrot.lane.b32.xlu1 %v5378_v48, %s5710_s10  ;;  %4497 = vmatprep.mubr.msk.f32.mxu0 %vm223_vm0, %v7098_v40  ;;  %v2457_v7 = vld [vmem:[#allocation2 + $0xf8] sm:$0xff]  ;;  %v5433_v35 = vpack.i.bf16 %v2486_v3, %v7098_v40  ;;  %v5438_v18 = vpack.i.bf16 %v2487_v58, %v7100_v15 }
 0x202   : > { %v2205_v38 = vmax.f32 %v2131_v17, 0.0  ;;  %v1910_v11 = vpop.f32.mrb[44].mxu0  ;;  %4498 = vmatmul.mubr.msk.f32.gmra.mrb[80].mxu0 %vm223_vm0, %v7100_v15  ;;  %v7129_v36 = vld [vmem:[#allocation2 + $0xf9] sm:$0xff]  ;;  %v5423_v43 = vpack.i.bf16 %v7050_v6, %v2457_v7 }
 0x203   : > { %v1911_v33 = vadd.f32 %v6809_v51, %v1910_v11  ;;  %v1912_v19 = vpop.f32.mrb[45].mxu0  ;;  %v5428_v52 = vpack.i.bf16 %v2455_v29, %v7129_v36 }
 0x204   : > { %5389 = vrot.lane.b32.xlu0 %v5388_v45, %s5712_s7  ;;  %2237 = vst.msk [vmem:[#allocation2 + $0x111] sm:$0xff] %vm223_vm0, %v2205_v38  ;;  %v7145_v6 = vld [vmem:[#allocation2 + $0x108] sm:$0xff]  ;;  %v2248_v19 = vld [vmem:[#allocation2] sm:$0xff] }
 0x205   : > { %5384 = vrot.lane.b32.xlu1 %v5383_v5, %s5711_s23  ;;  %v2136_v9 = vadd.f32 %v6783_v32, %v1911_v33  ;;  %v7120_v32 = vld [vmem:[#allocation2 + $0xf1] sm:$0xff]  ;;  %v5443_v42 = vpack.i.bf16 %v7076_v61, %v7145_v6 }
 0x206   : > { %v5418_v59 = vpack.i.bf16 %v2454_v55, %v7120_v32 }
 0x207   : > { %v2206_v41 = vmax.f32 %v2136_v9, 0.0 }
 0x208   : > { %5394 = vrot.lane.b32.xlu0 %v5393_v60, %s5711_s23 }
 0x209   : > { %5399 = vrot.lane.b32.xlu1 %v5398_v13, %s5712_s7  ;;  %2238 = vst.msk [vmem:[#allocation2 + $0x121] sm:$0xff] %vm223_vm0, %v2206_v41  ;;  %v1915_v63 = vpop.f32.mrb[46].mxu0 }
 0x20a   : > { %v1916_v44 = vadd.f32 %v6809_v51, %v1915_v63  ;;  %v1917_v56 = vpop.f32.mrb[47].mxu0 }
 0x20b   : > { %v7152_v48 = vld [vmem:[#allocation2 + $0x110] sm:$0xff] }
 0x20c   : > { %5404 = vrot.lane.b32.xlu0 %v5403_v54, %s5710_s10  ;;  %v2141_v10 = vadd.f32 %v6781_v0, %v1916_v44  ;;  %v7156_v3 = vld [vmem:[#allocation2 + $0x111] sm:$0xff]  ;;  %v5453_v61 = vpack.i.bf16 %v7078_v30, %v7152_v48 }
 0x20d   : > { %5409 = vrot.lane.b32.xlu1 %v5408_v62, %s5710_s10  ;;  %v7163_v38 = vld [vmem:[#allocation2 + $0x112] sm:$0xff]  ;;  %v7165_v11 = vld [vmem:[#allocation2 + $0x10a] sm:$0xff]  ;;  %v5458_v33 = vpack.i.bf16 %v2457_v7, %v7156_v3 }
 0x20e   : > { %v2207_v2 = vmax.f32 %v2141_v10, 0.0  ;;  %v1920_v34 = vpop.f32.mrb[48].mxu0  ;;  %v5463_v30 = vpack.i.bf16 %v7120_v32, %v7165_v11 }
 0x20f   : > { %v1921_v28 = vadd.f32 %v6809_v51, %v1920_v34  ;;  %v1922_v50 = vpop.f32.mrb[49].mxu0 }
 0x210   : > { %5419 = vrot.lane.b32.xlu0 %v5418_v59, %s5712_s7  ;;  %2239 = vst.msk [vmem:[#allocation2 + $0x129] sm:$0xff] %vm223_vm0, %v2207_v2  ;;  %v7179_v2 = vld [vmem:[#allocation2 + $0x120] sm:$0xff] }
 0x211   : > { %5414 = vrot.lane.b32.xlu1 %v5413_v39, %s5711_s23  ;;  %v2146_v0 = vadd.f32 %v6813_v20, %v1921_v28  ;;  %v7142_v20 = vld [vmem:[#allocation2 + $0x109] sm:$0xff]  ;;  %v7181_v34 = vld [vmem:[#allocation2 + $0x121] sm:$0xff] }
 0x212   : > { %v5448_v49 = vpack.i.bf16 %v2456_v26, %v7142_v20 }
 0x213   : > { %v2208_v53 = vmax.f32 %v2146_v0, 0.0 }
 0x214   : > { %5424 = vrot.lane.b32.xlu0 %v5423_v43, %s5711_s23  ;;  %v5473_v43 = vpack.i.bf16 %v7098_v40, %v7179_v2 }
 0x215   : > { %5429 = vrot.lane.b32.xlu1 %v5428_v52, %s5712_s7  ;;  %2240 = vst.msk [vmem:[#allocation2 + $0x139] sm:$0xff] %vm223_vm0, %v2208_v53  ;;  %v1925_v8 = vpop.f32.mrb[50].mxu0  ;;  %v5478_v52 = vpack.i.bf16 %v7145_v6, %v7181_v34  ;;  %v2377_v53 = vld [vmem:[#allocation2 + $0x21] sm:$0xff] }
 0x216   : > { %v1926_v24 = vadd.f32 %v6809_v51, %v1925_v8  ;;  %v1927_v12 = vpop.f32.mrb[51].mxu0 }
 0x217   : > { %v7200_v6 = vld [vmem:[#allocation2 + $0x129] sm:$0xff] }
 0x218   : > { %5434 = vrot.lane.b32.xlu0 %v5433_v35, %s5710_s10  ;;  %v2151_v16 = vadd.f32 %v6811_v57, %v1926_v24 }
 0x219   : > { %5439 = vrot.lane.b32.xlu1 %v5438_v18, %s5710_s10 }
 0x21a   : > { %v2209_v1 = vmax.f32 %v2151_v16, 0.0  ;;  %v1930_v22 = vpop.f32.mrb[52].mxu0  ;;  %v7195_v16 = vld [vmem:[#allocation2 + $0x128] sm:$0xff] }
 0x21b   : > { %v1931_v4 = vadd.f32 %v6809_v51, %v1930_v22  ;;  %v1932_v55 = vpop.f32.mrb[53].mxu0 }
 0x21c   : > { %5449 = vrot.lane.b32.xlu0 %v5448_v49, %s5712_s7  ;;  %2241 = vst.msk [vmem:[#allocation2 + $0x141] sm:$0xff] %vm223_vm0, %v2209_v1  ;;  %v5170_v57 = vpop.permute.xlu1 %5169  ;;  %v5165_v17 = vpop.permute.xlu0 %5164 }
 0x21d   : > { %5444 = vrot.lane.b32.xlu1 %v5443_v42, %s5711_s23  ;;  %v2156_v45 = vadd.f32 %v6843_v27, %v1931_v4  ;;  %v5167_v5 = vunpack.i.h.bf16 %v5165_v17  ;;  %v5166_v29 = vunpack.i.l.bf16 %v5165_v17  ;;  %v5468_v27 = vpack.i.bf16 %v7129_v36, %v7163_v38 }
 0x21e   : > { %v5171_v62 = vunpack.i.l.bf16 %v5170_v57  ;;  %v5172_v32 = vunpack.i.h.bf16 %v5170_v57 }
 0x21f   : > { %v2210_v58 = vmax.f32 %v2156_v45, 0.0  ;;  %v3304_v56 = vsel %vm223_vm0, %v2248_v19, %v5167_v5  ;;  %v3400_v59 = vsel %vm223_vm0, %v6902_v23, %v5166_v29  ;;  %v2249_v23 = vld [vmem:[#allocation2 + $0x8] sm:$0xff]  ;;  %v5488_v29 = vpack.i.bf16 %v7152_v48, %v7200_v6 }
 0x220   : > { %5454 = vrot.lane.b32.xlu0 %v5453_v61, %s5711_s23  ;;  %v5180_v9 = vpop.permute.xlu0 %5179  ;;  %v3401_v12 = vsel %vm223_vm0, %v2377_v53, %v5171_v62  ;;  %v3305_v40 = vsel %vm223_vm0, %v2249_v23, %v5172_v32  ;;  %v2250_v32 = vld [vmem:[#allocation2 + $0x18] sm:$0xff] }
 0x221   : > { %5459 = vrot.lane.b32.xlu1 %v5458_v33, %s5712_s7  ;;  %v5175_v60 = vpop.permute.xlu1 %5174  ;;  %2242 = vst.msk [vmem:[#allocation2 + $0x151] sm:$0xff] %vm223_vm0, %v2210_v58  ;;  %v5182_v13 = vunpack.i.h.bf16 %v5180_v9  ;;  %v5181_v41 = vunpack.i.l.bf16 %v5180_v9  ;;  %v1935_v44 = vpop.f32.mrb[54].mxu0  ;;  %v7215_v33 = vld [vmem:[#allocation2 + $0x122] sm:$0xff] }
 0x222   : > { %v5177_v63 = vunpack.i.h.bf16 %v5175_v60  ;;  %v5176_v54 = vunpack.i.l.bf16 %v5175_v60  ;;  %v1936_v26 = vadd.f32 %v6809_v51, %v1935_v44  ;;  %v1937_v10 = vpop.f32.mrb[55].mxu0  ;;  %v7221_v60 = vld [vmem:[#allocation2 + $0x138] sm:$0xff] }
 0x224   : > { %v3336_v39 = vsel %vm1433_vm2, %v3304_v56, %v5177_v63  ;;  %5464 = vrot.lane.b32.xlu0 %v5463_v30, %s5710_s10  ;;  %v3432_v7 = vsel %vm1433_vm2, %v3400_v59, %v5176_v54  ;;  %v2161_v28 = vadd.f32 %v6841_v21, %v1936_v26  ;;  %v2378_v59 = vld [vmem:[#allocation2 + $0x31] sm:$0xff] }
 0x225   : > { %5469 = vrot.lane.b32.xlu1 %v5468_v27, %s5710_s10  ;;  %v3464_v36 = vsel %vm1466_vm3, %v3432_v7, %v5181_v41  ;;  %v3368_v50 = vsel %vm1466_vm3, %v3336_v39, %v5182_v13  ;;  %v5493_v13 = vpack.i.bf16 %v7142_v20, %v7215_v33  ;;  %v7227_v41 = vld [vmem:[#allocation2 + $0x139] sm:$0xff]  ;;  %v5503_v20 = vpack.i.bf16 %v7165_v11, %v7221_v60 }
 0x226   : > { %v5185_v0 = vpop.permute.xlu0 %5184  ;;  %3699 = vmatprep.mubr.f32.mxu1 %v3464_v36  ;;  %v2211_v8 = vmax.f32 %v2161_v28, 0.0  ;;  %v1940_v18 = vpop.f32.mrb[56].mxu0  ;;  %v2379_v28 = vld [vmem:[#allocation2 + $0x39] sm:$0xff] }
 0x227   : > { %v5187_v35 = vunpack.i.h.bf16 %v5185_v0  ;;  %v5186_v24 = vunpack.i.l.bf16 %v5185_v0  ;;  %v5190_v21 = vpop.permute.xlu1 %5189  ;;  %3700 = vmatmul.mubr.f32.vlgmr.msra.gmra.mrb[32].mxu1 %v3368_v50  ;;  %v1941_v22 = vadd.f32 %v6809_v51, %v1940_v18  ;;  %v1942_v42 = vpop.f32.mrb[57].mxu0  ;;  %v2251_v36 = vld [vmem:[#allocation2 + $0x20] sm:$0xff] }
 0x228   : > { %v5192_v49 = vunpack.i.h.bf16 %v5190_v21  ;;  %v5191_v1 = vunpack.i.l.bf16 %v5190_v21  ;;  %5479 = vrot.lane.b32.xlu0 %v5478_v52, %s5712_s7  ;;  %4635 = vmatpush3.bf16.msra.mxu1 %v6609_v25  ;;  %2243 = vst.msk [vmem:[#allocation2 + $0x159] sm:$0xff] %vm223_vm0, %v2211_v8  ;;  %v5483_v25 = vpack.i.bf16 %v7100_v15, %v7195_v16  ;;  %v7246_v21 = vld [vmem:[#allocation2 + $0x140] sm:$0xff] }
 0x229   : > { %5474 = vrot.lane.b32.xlu1 %v5473_v43, %s5711_s23  ;;  %v3433_v4 = vsel %vm1433_vm2, %v3401_v12, %v5186_v24  ;;  %v3337_v55 = vsel %vm1433_vm2, %v3305_v40, %v5187_v35  ;;  %4634 = vmatprep.subr.bf16.mxu1 %v6627_v14  ;;  %v2166_v57 = vadd.f32 %v6877_v47, %v1941_v22  ;;  %v7218_v47 = vld [vmem:[#allocation2 + $0x12a] sm:$0xff]  ;;  %v5643_v12 = vld [vmem:[%s7819_s2] ss:$0 sm:$0xff]  ;;  %v7253_v22 = vld [vmem:[#allocation2 + $0x141] sm:$0xff] }
 0x22a   : > { %v5195_v17 = vpop.permute.xlu0 %5194  ;;  %v3465_v45 = vsel %vm1466_vm3, %v3433_v4, %v5191_v1  ;;  %v3369_v61 = vsel %vm1466_vm3, %v3337_v55, %v5192_v49  ;;  %v5498_v62 = vpack.i.bf16 %v7156_v3, %v7218_v47  ;;  %v5508_v3 = vpack.i.bf16 %v7179_v2, %v7227_v41 }
 0x22b   : > { %v5200_v5 = vpop.permute.xlu1 %5199  ;;  %3704 = vmatprep.mubr.f32.mxu1 %v3465_v45  ;;  %v2212_v58 = vmax.f32 %v2166_v57, 0.0  ;;  %v5197_v19 = vunpack.i.h.bf16 %v5195_v17  ;;  %v5196_v9 = vunpack.i.l.bf16 %v5195_v17 }
 0x22c   : > { %3705 = vmatmul.mubr.f32.gmra.mrb[34].mxu1 %v3369_v61  ;;  %5484 = vrot.lane.b32.xlu0 %v5483_v25, %s5711_s23  ;;  %v5202_v15 = vunpack.i.h.bf16 %v5200_v5  ;;  %v5201_v48 = vunpack.i.l.bf16 %v5200_v5  ;;  %v5513_v61 = vpack.i.bf16 %v7163_v38, %v7246_v21  ;;  %v5518_v5 = vpack.i.bf16 %v7195_v16, %v7253_v22 }
 0x22d   : > { %5489 = vrot.lane.b32.xlu1 %v5488_v29, %s5712_s7  ;;  %4636 = vmatpush3.bf16.msra.mxu1 %v6627_v14  ;;  %2244 = vst.msk [vmem:[#allocation2 + $0x169] sm:$0xff] %vm223_vm0, %v2212_v58  ;;  %v1945_v27 = vpop.f32.mrb[58].mxu0  ;;  %v3306_v7 = vsel %vm223_vm0, %v2250_v32, %v5197_v19  ;;  %v7266_v29 = vld [vmem:[#allocation2 + $0x13a] sm:$0xff]  ;;  %v7269_v19 = vld [vmem:[#allocation2 + $0x142] sm:$0xff]  ;;  %v2252_v32 = vld [vmem:[#allocation2 + $0x30] sm:$0xff] }
 0x22e   : > { %v5210_v30 = vpop.permute.xlu0 %5209  ;;  %v1946_v63 = vadd.f32 %v6809_v51, %v1945_v27  ;;  %v1947_v56 = vpop.f32.mrb[59].mxu0  ;;  %v3402_v51 = vsel %vm223_vm0, %v2378_v59, %v5196_v9  ;;  %v3403_v11 = vsel %vm223_vm0, %v2379_v28, %v5201_v48  ;;  %v5523_v16 = vpack.i.bf16 %v7181_v34, %v7266_v29  ;;  %v7275_v27 = vld [vmem:[#allocation2 + $0x150] sm:$0xff] }
 0x22f   : > { %v5205_v54 = vpop.permute.xlu1 %5204  ;;  %v5211_v44 = vunpack.i.l.bf16 %v5210_v30  ;;  %v5212_v10 = vunpack.i.h.bf16 %v5210_v30  ;;  %v2380_v59 = vld [vmem:[#allocation2 + $0x49] sm:$0xff] }
 0x230   : > { %v5207_v14 = vunpack.i.h.bf16 %v5205_v54  ;;  %v5206_v26 = vunpack.i.l.bf16 %v5205_v54  ;;  %5494 = vrot.lane.b32.xlu0 %v5493_v13, %s5710_s10  ;;  %v2171_v39 = vadd.f32 %v6873_v31, %v1946_v63  ;;  %v3307_v31 = vsel %vm223_vm0, %v2251_v36, %v5202_v15 }
 0x231   : > { %5499 = vrot.lane.b32.xlu1 %v5498_v62, %s5710_s10  ;;  %v5528_v54 = vpack.i.bf16 %v7200_v6, %v7269_v19  ;;  %v5533_v6 = vpack.i.bf16 %v7215_v33, %v7275_v27  ;;  %v7294_v33 = vld [vmem:[#allocation2 + $0x158] sm:$0xff] }
 0x232   : > { %v5215_v50 = vpop.permute.xlu0 %5214  ;;  %v3434_v23 = vsel %vm1433_vm2, %v3402_v51, %v5206_v26  ;;  %v3338_v0 = vsel %vm1433_vm2, %v3306_v7, %v5207_v14  ;;  %v2213_v43 = vmax.f32 %v2171_v39, 0.0  ;;  %v1950_v35 = vpop.f32.mrb[60].mxu0  ;;  %v2381_v51 = vld [vmem:[#allocation2 + $0x51] sm:$0xff] }
 0x233   : > { %v5220_v52 = vpop.permute.xlu1 %5219  ;;  %v5217_v53 = vunpack.i.h.bf16 %v5215_v50  ;;  %v5216_v8 = vunpack.i.l.bf16 %v5215_v50  ;;  %v3466_v24 = vsel %vm1466_vm3, %v3434_v23, %v5211_v44  ;;  %v1951_v49 = vadd.f32 %v5643_v12, %v1950_v35  ;;  %v1952_v40 = vpop.f32.mrb[61].mxu0  ;;  %v7279_v44 = vld [vmem:[#allocation2 + $0x151] sm:$0xff] }
 0x234   : > { %v5222_v2 = vunpack.i.h.bf16 %v5220_v52  ;;  %v5221_v18 = vunpack.i.l.bf16 %v5220_v52  ;;  %3709 = vmatprep.mubr.f32.mxu1 %v3466_v24  ;;  %v3370_v1 = vsel %vm1466_vm3, %v3338_v0, %v5212_v10  ;;  %5509 = vrot.lane.b32.xlu0 %v5508_v3, %s5712_s7  ;;  %2245 = vst.msk [vmem:[#allocation2 + $0x171] sm:$0xff] %vm223_vm0, %v2213_v43  ;;  %v5538_v28 = vpack.i.bf16 %v7221_v60, %v7279_v44  ;;  %v2253_v43 = vld [vmem:[#allocation2 + $0x38] sm:$0xff] }
 0x235   : > { %3710 = vmatmul.mubr.f32.gmra.mrb[36].mxu1 %v3370_v1  ;;  %5504 = vrot.lane.b32.xlu1 %v5503_v20, %s5711_s23  ;;  %v3435_v42 = vsel %vm1433_vm2, %v3403_v11, %v5216_v8  ;;  %v3339_v4 = vsel %vm1433_vm2, %v3307_v31, %v5217_v53  ;;  %v2176_v55 = vadd.f32 %v6908_v46, %v1951_v49  ;;  %v7298_v8 = vld [vmem:[#allocation2 + $0x159] sm:$0xff] }
 0x236   : > { %v5225_v57 = vpop.permute.xlu0 %5224  ;;  %v3467_v17 = vsel %vm1466_vm3, %v3435_v42, %v5221_v18  ;;  %v3371_v45 = vsel %vm1466_vm3, %v3339_v4, %v5222_v2  ;;  %v5543_v49 = vpack.i.bf16 %v7218_v47, %v7294_v33  ;;  %v5548_v42 = vpack.i.bf16 %v7246_v21, %v7298_v8  ;;  %v7311_v4 = vld [vmem:[#allocation2 + $0x152] sm:$0xff] }
 0x237   : > { %v5230_v25 = vpop.permute.xlu1 %5229  ;;  %3714 = vmatprep.mubr.f32.mxu1 %v3467_v17  ;;  %v2214_v58 = vmax.f32 %v2176_v55, 0.0  ;;  %v5227_v46 = vunpack.i.h.bf16 %v5225_v57  ;;  %v5226_v9 = vunpack.i.l.bf16 %v5225_v57  ;;  %v7314_v55 = vld [vmem:[#allocation2 + $0x15a] sm:$0xff]  ;;  %v5553_v47 = vpack.i.bf16 %v7227_v41, %v7311_v4 }
 0x238   : > { %5514 = vrot.lane.b32.xlu0 %v5513_v61, %s5711_s23  ;;  %v5231_v38 = vunpack.i.l.bf16 %v5230_v25  ;;  %v5232_v56 = vunpack.i.h.bf16 %v5230_v25  ;;  %v5558_v21 = vpack.i.bf16 %v7253_v22, %v7314_v55 }
 0x239   : > { %3715 = vmatmul.mubr.f32.gmra.mrb[38].mxu1 %v3371_v45  ;;  %5519 = vrot.lane.b32.xlu1 %v5518_v5, %s5712_s7  ;;  %2246 = vst.msk [vmem:[#allocation2 + $0x181] sm:$0xff] %vm223_vm0, %v2214_v58  ;;  %v1955_v15 = vpop.f32.mrb[62].mxu0  ;;  %v3404_v20 = vsel %vm223_vm0, %v2380_v59, %v5226_v9  ;;  %v3308_v39 = vsel %vm223_vm0, %v2252_v32, %v5227_v46  ;;  %v7321_v58 = vld [vmem:[#allocation2 + $0x168] sm:$0xff] }
 0x23a   : > { %v5240_v48 = vpop.permute.xlu0 %5239  ;;  %v1956_v30 = vadd.f32 %v5643_v12, %v1955_v15  ;;  %v1957_v62 = vpop.f32.mrb[63].mxu0  ;;  %v3309_v35 = vsel %vm223_vm0, %v2253_v43, %v5232_v56  ;;  %v7323_v46 = vld [vmem:[#allocation2 + $0x169] sm:$0xff] }
 0x23b   : > { %v5235_v13 = vpop.permute.xlu1 %5234  ;;  %v5241_v63 = vunpack.i.l.bf16 %v5240_v48  ;;  %v5242_v10 = vunpack.i.h.bf16 %v5240_v48  ;;  %v5568_v62 = vpack.i.bf16 %v7275_v27, %v7323_v46  ;;  %v7341_v27 = vld [vmem:[#allocation2 + $0x171] sm:$0xff] }
 0x23c   : > { %v5237_v14 = vunpack.i.h.bf16 %v5235_v13  ;;  %v5236_v26 = vunpack.i.l.bf16 %v5235_v13  ;;  %5524 = vrot.lane.b32.xlu0 %v5523_v16, %s5710_s10  ;;  %v2181_v34 = vadd.f32 %v6904_v37, %v1956_v30  ;;  %v3405_v37 = vsel %vm223_vm0, %v2381_v51, %v5231_v38  ;;  %v2382_v16 = vld [vmem:[#allocation2 + $0x61] sm:$0xff]  ;;  %v7354_v43 = vld [vmem:[#allocation2 + $0x172] sm:$0xff] }
 0x23d   : > { %5529 = vrot.lane.b32.xlu1 %v5528_v54, %s5710_s10  ;;  %v2254_v30 = vld [vmem:[#allocation2 + $0x48] sm:$0xff]  ;;  %v5563_v54 = vpack.i.bf16 %v7266_v29, %v7321_v58 }
 0x23e   : > { %v5245_v7 = vpop.permute.xlu0 %5244  ;;  %v3436_v3 = vsel %vm1433_vm2, %v3404_v20, %v5236_v26  ;;  %v3340_v36 = vsel %vm1433_vm2, %v3308_v39, %v5237_v14  ;;  %v2215_v50 = vmax.f32 %v2181_v34, 0.0  ;;  %v2383_v34 = vld [vmem:[#allocation2 + $0x69] sm:$0xff] }
 0x23f   : > { %v5250_v23 = vpop.permute.xlu1 %5249  ;;  %v5247_v0 = vunpack.i.h.bf16 %v5245_v7  ;;  %v5246_v11 = vunpack.i.l.bf16 %v5245_v7  ;;  %v3468_v31 = vsel %vm1466_vm3, %v3436_v3, %v5241_v63  ;;  %v3372_v60 = vsel %vm1466_vm3, %v3340_v36, %v5242_v10  ;;  %v7337_v20 = vld [vmem:[#allocation2 + $0x170] sm:$0xff] }
 0x240   : > { %v5252_v52 = vunpack.i.h.bf16 %v5250_v23  ;;  %v5251_v53 = vunpack.i.l.bf16 %v5250_v23  ;;  %3719 = vmatprep.mubr.f32.mxu1 %v3468_v31  ;;  %5539 = vrot.lane.b32.xlu0 %v5538_v28, %s5712_s7  ;;  %2247 = vst.msk [vmem:[#allocation2 + $0x189] sm:$0xff] %vm223_vm0, %v2215_v50  ;;  %v5573_v50 = vpack.i.bf16 %v7269_v19, %v7337_v20  ;;  %v2436_v31 = vld [vmem:[#allocation2 + $0x16a] sm:$0xff] }
 0x241   : > { %5534 = vrot.lane.b32.xlu1 %v5533_v6, %s5711_s23  ;;  %3720 = vmatmul.mubr.f32.gmra.mrb[40].mxu1 %v3372_v60  ;;  %v3437_v24 = vsel %vm1433_vm2, %v3405_v37, %v5246_v11  ;;  %v3341_v2 = vsel %vm1433_vm2, %v3309_v35, %v5247_v0  ;;  %v2255_v6 = vld [vmem:[#allocation2 + $0x50] sm:$0xff]  ;;  %v5578_v11 = vpack.i.bf16 %v7294_v33, %v7341_v27  ;;  %v7360_v33 = vld [vmem:[#allocation2 + $0x180] sm:$0xff] }
 0x242   : > { %v5255_v18 = vpop.permute.xlu0 %5254  ;;  %v3469_v12 = vsel %vm1466_vm3, %v3437_v24, %v5251_v53  ;;  %v3373_v1 = vsel %vm1466_vm3, %v3341_v2, %v5252_v52  ;;  %v5583_v19 = vpack.i.bf16 %v7279_v44, %v2436_v31 }
 0x243   : > { %v5260_v40 = vpop.permute.xlu1 %5259  ;;  %3724 = vmatprep.mubr.f32.mxu1 %v3469_v12  ;;  %v5257_v57 = vunpack.i.h.bf16 %v5255_v18  ;;  %v5256_v17 = vunpack.i.l.bf16 %v5255_v18  ;;  %v5588_v18 = vpack.i.bf16 %v7298_v8, %v7354_v43  ;;  %v7362_v12 = vld [vmem:[#allocation2 + $0x181] sm:$0xff] }
 0x244   : > { %5544 = vrot.lane.b32.xlu0 %v5543_v49, %s5711_s23  ;;  %v5262_v9 = vunpack.i.h.bf16 %v5260_v40  ;;  %v5261_v38 = vunpack.i.l.bf16 %v5260_v40 }
 0x245   : > { %5549 = vrot.lane.b32.xlu1 %v5548_v42, %s5712_s7  ;;  %3725 = vmatmul.mubr.f32.gmra.mrb[42].mxu1 %v3373_v1  ;;  %v3406_v41 = vsel %vm223_vm0, %v2382_v16, %v5256_v17  ;;  %v3310_v13 = vsel %vm223_vm0, %v2254_v30, %v5257_v57  ;;  %v2384_v57 = vld [vmem:[#allocation2 + $0x79] sm:$0xff]  ;;  %v2385_v30 = vld [vmem:[#allocation2 + $0x81] sm:$0xff] }
 0x246   : > { %v5270_v45 = vpop.permute.xlu0 %5269  ;;  %v3407_v29 = vsel %vm223_vm0, %v2383_v34, %v5261_v38  ;;  %v3311_v7 = vsel %vm223_vm0, %v2255_v6, %v5262_v9  ;;  %v2256_v17 = vld [vmem:[#allocation2 + $0x60] sm:$0xff] }
 0x247   : > { %v5265_v61 = vpop.permute.xlu1 %5264  ;;  %v5272_v25 = vunpack.i.h.bf16 %v5270_v45  ;;  %v5271_v5 = vunpack.i.l.bf16 %v5270_v45  ;;  %v7388_v6 = vld [vmem:[#allocation2 + $0x182] sm:$0xff] }
 0x248   : > { %v5267_v15 = vunpack.i.h.bf16 %v5265_v61  ;;  %v5266_v48 = vunpack.i.l.bf16 %v5265_v61  ;;  %5554 = vrot.lane.b32.xlu0 %v5553_v47, %s5710_s10 }
 0x249   : > { %5559 = vrot.lane.b32.xlu1 %v5558_v21, %s5710_s10 }
 0x24a   : > { %v5275_v63 = vpop.permute.xlu0 %5274  ;;  %v3438_v22 = vsel %vm1433_vm2, %v3406_v41, %v5266_v48  ;;  %v3342_v56 = vsel %vm1433_vm2, %v3310_v13, %v5267_v15  ;;  %v7376_v41 = vld [vmem:[#allocation2 + $0x188] sm:$0xff] }
 0x24b   : > { %v5280_v14 = vpop.permute.xlu1 %5279  ;;  %v5277_v26 = vunpack.i.h.bf16 %v5275_v63  ;;  %v5276_v10 = vunpack.i.l.bf16 %v5275_v63  ;;  %v3470_v59 = vsel %vm1466_vm3, %v3438_v22, %v5271_v5  ;;  %v3374_v32 = vsel %vm1466_vm3, %v3342_v56, %v5272_v25  ;;  %v2257_v13 = vld [vmem:[#allocation2 + $0x68] sm:$0xff] }
 0x24c   : > { %v5282_v39 = vunpack.i.h.bf16 %v5280_v14  ;;  %v5281_v51 = vunpack.i.l.bf16 %v5280_v14  ;;  %3729 = vmatprep.mubr.f32.mxu1 %v3470_v59  ;;  %5569 = vrot.lane.b32.xlu0 %v5568_v62, %s5712_s7  ;;  %v5593_v25 = vpack.i.bf16 %v7311_v4, %v7360_v33  ;;  %v5603_v5 = vpack.i.bf16 %v7321_v58, %v7362_v12  ;;  %v2470_v58 = vld [vmem:[#allocation2 + $0x198] sm:$0xff] }
 0x24d   : > { %5564 = vrot.lane.b32.xlu1 %v5563_v54, %s5711_s23  ;;  %3730 = vmatmul.mubr.f32.gmra.mrb[44].mxu1 %v3374_v32  ;;  %v3439_v3 = vsel %vm1433_vm2, %v3407_v29, %v5276_v10  ;;  %v3343_v28 = vsel %vm1433_vm2, %v3311_v7, %v5277_v26  ;;  %v5608_v10 = vpack.i.bf16 %v7314_v55, %v7376_v41 }
 0x24e   : > { %v5285_v36 = vpop.permute.xlu0 %5284  ;;  %v3471_v37 = vsel %vm1466_vm3, %v3439_v3, %v5281_v51  ;;  %v3375_v23 = vsel %vm1466_vm3, %v3343_v28, %v5282_v39  ;;  %v5598_v34 = vpack.i.bf16 %v2436_v31, %v2470_v58  ;;  %v7391_v39 = vld [vmem:[#allocation2 + $0x189] sm:$0xff]  ;;  %v5618_v55 = vpack.i.bf16 %v7323_v46, %v7388_v6 }
 0x24f   : > { %v5290_v0 = vpop.permute.xlu1 %5289  ;;  %3734 = vmatprep.mubr.f32.mxu1 %v3471_v37  ;;  %v5287_v52 = vunpack.i.h.bf16 %v5285_v36  ;;  %v5286_v53 = vunpack.i.l.bf16 %v5285_v36  ;;  %v5613_v37 = vpack.i.bf16 %v7337_v20, %v7391_v39 }
 0x250   : > { %5574 = vrot.lane.b32.xlu0 %v5573_v50, %s5711_s23  ;;  %v5292_v49 = vunpack.i.h.bf16 %v5290_v0  ;;  %v5291_v1 = vunpack.i.l.bf16 %v5290_v0  ;;  %v7398_v50 = vld [vmem:[#allocation2 + $0x18a] sm:$0xff] }
 0x251   : > { %5579 = vrot.lane.b32.xlu1 %v5578_v11, %s5712_s7  ;;  %3735 = vmatmul.mubr.f32.gmra.mrb[46].mxu1 %v3375_v23  ;;  %v3408_v44 = vsel %vm223_vm0, %v2384_v57, %v5286_v53  ;;  %v3312_v45 = vsel %vm223_vm0, %v2256_v17, %v5287_v52  ;;  %v2502_v23 = vld [vmem:[#allocation2 + $0x199] sm:$0xff]  ;;  %v2386_v53 = vld [vmem:[#allocation2 + $0x91] sm:$0xff] }
 0x252   : > { %v5300_v60 = vpop.permute.xlu0 %5299  ;;  %v3409_v4 = vsel %vm223_vm0, %v2385_v30, %v5291_v1  ;;  %v3313_v54 = vsel %vm223_vm0, %v2257_v13, %v5292_v49 }
 0x253   : > { %v5295_v35 = vpop.permute.xlu1 %5294  ;;  %v5302_v24 = vunpack.i.h.bf16 %v5300_v60  ;;  %v5301_v2 = vunpack.i.l.bf16 %v5300_v60  ;;  %v2258_v60 = vld [vmem:[#allocation2 + $0x78] sm:$0xff] }
 0x254   : > { %v5297_v40 = vunpack.i.h.bf16 %v5295_v35  ;;  %v5296_v42 = vunpack.i.l.bf16 %v5295_v35  ;;  %5584 = vrot.lane.b32.xlu0 %v5583_v19, %s5710_s10 }
 0x255   : > { %5589 = vrot.lane.b32.xlu1 %v5588_v18, %s5710_s10  ;;  %v5623_v18 = vpack.i.bf16 %v7360_v33, %v2502_v23  ;;  %v2503_v33 = vld [vmem:[#allocation2 + $0x1a1] sm:$0xff]  ;;  %v2389_v23 = vld [vmem:[#allocation2 + $0xb1] sm:$0xff] }
 0x256   : > { %v5305_v47 = vpop.permute.xlu0 %5304  ;;  %v3440_v61 = vsel %vm1433_vm2, %v3408_v44, %v5296_v42  ;;  %v3344_v21 = vsel %vm1433_vm2, %v3312_v45, %v5297_v40  ;;  %v2387_v44 = vld [vmem:[#allocation2 + $0x99] sm:$0xff] }
 0x257   : > { %v5310_v9 = vpop.permute.xlu1 %5309  ;;  %v5307_v38 = vunpack.i.h.bf16 %v5305_v47  ;;  %v5306_v15 = vunpack.i.l.bf16 %v5305_v47  ;;  %v3472_v48 = vsel %vm1466_vm3, %v3440_v61, %v5301_v2  ;;  %v3376_v16 = vsel %vm1466_vm3, %v3344_v21, %v5302_v24  ;;  %v2471_v45 = vld [vmem:[#allocation2 + $0x1a0] sm:$0xff] }
 0x258   : > { %v5312_v63 = vunpack.i.h.bf16 %v5310_v9  ;;  %v5311_v22 = vunpack.i.l.bf16 %v5310_v9  ;;  %3739 = vmatprep.mubr.f32.mxu1 %v3472_v48  ;;  %5604 = vrot.lane.b32.xlu0 %v5603_v5, %s5712_s7  ;;  %v5628_v2 = vpack.i.bf16 %v7341_v27, %v7398_v50  ;;  %v2259_v47 = vld [vmem:[#allocation2 + $0x80] sm:$0xff] }
 0x259   : > { %5594 = vrot.lane.b32.xlu1 %v5593_v25, %s5711_s23  ;;  %3740 = vmatmul.mubr.f32.gmra.mrb[48].mxu1 %v3376_v16  ;;  %v3441_v62 = vsel %vm1433_vm2, %v3409_v4, %v5306_v15  ;;  %v3345_v56 = vsel %vm1433_vm2, %v3313_v54, %v5307_v38  ;;  %v5633_v16 = vpack.i.bf16 %v7354_v43, %v2471_v45 }
 0x25a   : > { %v5315_v14 = vpop.permute.xlu0 %5314  ;;  %v3473_v26 = vsel %vm1466_vm3, %v3441_v62, %v5311_v22  ;;  %v3377_v59 = vsel %vm1466_vm3, %v3345_v56, %v5312_v63  ;;  %v5638_v63 = vpack.i.bf16 %v7376_v41, %v2503_v33 }
 0x25b   : > { %v5320_v32 = vpop.permute.xlu1 %5319  ;;  %3744 = vmatprep.mubr.f32.mxu1 %v3473_v26  ;;  %v5317_v51 = vunpack.i.h.bf16 %v5315_v14  ;;  %v5316_v29 = vunpack.i.l.bf16 %v5315_v14 }
 0x25c   : > { %5609 = vrot.lane.b32.xlu0 %v5608_v10, %s5711_s23  ;;  %v5322_v0 = vunpack.i.h.bf16 %v5320_v32  ;;  %v5321_v11 = vunpack.i.l.bf16 %v5320_v32  ;;  %v2260_v32 = vld [vmem:[#allocation2 + $0x90] sm:$0xff] }
 0x25d   : > { %5599 = vrot.lane.b32.xlu1 %v5598_v34, %s5711_s23  ;;  %3745 = vmatmul.mubr.f32.gmra.mrb[50].mxu1 %v3377_v59  ;;  %v3410_v19 = vsel %vm223_vm0, %v2386_v53, %v5316_v29  ;;  %v3314_v35 = vsel %vm223_vm0, %v2258_v60, %v5317_v51  ;;  %v2388_v59 = vld [vmem:[#allocation2 + $0xa9] sm:$0xff] }
 0x25e   : > { %v5330_v7 = vpop.permute.xlu0 %5329  ;;  %v3411_v5 = vsel %vm223_vm0, %v2387_v44, %v5321_v11  ;;  %v3315_v21 = vsel %vm223_vm0, %v2259_v47, %v5322_v0  ;;  %v2261_v0 = vld [vmem:[#allocation2 + $0x98] sm:$0xff] }
 0x25f   : > { %v5325_v3 = vpop.permute.xlu1 %5324  ;;  %v5332_v28 = vunpack.i.h.bf16 %v5330_v7  ;;  %v5331_v36 = vunpack.i.l.bf16 %v5330_v7 }
 0x260   : > { %v5327_v31 = vunpack.i.h.bf16 %v5325_v3  ;;  %v5326_v52 = vunpack.i.l.bf16 %v5325_v3  ;;  %5619 = vrot.lane.b32.xlu0 %v5618_v55, %s5710_s10 }
 0x261   : > { %5614 = vrot.lane.b32.xlu1 %v5613_v37, %s5712_s7 }
 0x262   : > { %v5335_v24 = vpop.permute.xlu0 %5334  ;;  %v3442_v20 = vsel %vm1433_vm2, %v3410_v19, %v5326_v52  ;;  %v3346_v49 = vsel %vm1433_vm2, %v3314_v35, %v5327_v31 }
 0x263   : > { %v5340_v1 = vpop.permute.xlu1 %5339  ;;  %v5337_v40 = vunpack.i.h.bf16 %v5335_v24  ;;  %v5336_v42 = vunpack.i.l.bf16 %v5335_v24  ;;  %v3474_v57 = vsel %vm1466_vm3, %v3442_v20, %v5331_v36  ;;  %v3378_v17 = vsel %vm1466_vm3, %v3346_v49, %v5332_v28 }
 0x264   : > { %v5342_v61 = vunpack.i.h.bf16 %v5340_v1  ;;  %v5341_v25 = vunpack.i.l.bf16 %v5340_v1  ;;  %3749 = vmatprep.mubr.f32.mxu1 %v3474_v57  ;;  %5624 = vrot.lane.b32.xlu0 %v5623_v18, %s5712_s7 }
 0x265   : > { %5629 = vrot.lane.b32.xlu1 %v5628_v2, %s5710_s10  ;;  %3750 = vmatmul.mubr.f32.gmra.mrb[52].mxu1 %v3378_v17  ;;  %v3443_v9 = vsel %vm1433_vm2, %v3411_v5, %v5336_v42  ;;  %v3347_v38 = vsel %vm1433_vm2, %v3315_v21, %v5337_v40  ;;  %s215_s10 = sand.u32 1, %s5698_s19  }
 0x266   : > { %v5345_v15 = vpop.permute.xlu0 %5344  ;;  %v3475_v48 = vsel %vm1466_vm3, %v3443_v9, %v5341_v25  ;;  %v3379_v30 = vsel %vm1466_vm3, %v3347_v38, %v5342_v61  ;;  %v2390_v61 = vld [vmem:[#allocation2 + $0xc1] sm:$0xff]  ;;  %s4261_s8 = sshll.u32 %s215_s10, 8  ;;  %s7776_s22 = scalar_lea.sflag [#allocation4], %s215_s10 }
 0x267   : > { %v5350_v13 = vpop.permute.xlu1 %5349  ;;  %3754 = vmatprep.mubr.f32.mxu1 %v3475_v48  ;;  %v5347_v22 = vunpack.i.h.bf16 %v5345_v15  ;;  %v5346_v4 = vunpack.i.l.bf16 %v5345_v15  ;;  %v2262_v25 = vld [vmem:[#allocation2 + $0xa8] sm:$0xff]  ;;  %s7612_s9 = scalar_lea.vmem [#allocation3], %s4261_s8 }
 0x268   : > { %5634 = vrot.lane.b32.xlu0 %v5633_v16, %s5711_s23  ;;  %v5352_v14 = vunpack.i.h.bf16 %v5350_v13  ;;  %v5351_v26 = vunpack.i.l.bf16 %v5350_v13  ;;  %s4195_s12 = sshll.u32 %s7612_s9, 4  ;;  %s7768_s12 = int_to_ptr.vmem [resolvable:$true] %s4195_s12 }
 0x269   : > { %5639 = vrot.lane.b32.xlu1 %v5638_v63, %s5712_s7  ;;  %3755 = vmatmul.mubr.f32.gmra.mrb[54].mxu1 %v3379_v30  ;;  %v3412_v34 = vsel %vm223_vm0, %v2388_v59, %v5346_v4  ;;  %v3316_v41 = vsel %vm223_vm0, %v2260_v32, %v5347_v22  ;;  %v2391_v63 = vld [vmem:[#allocation2 + $0xc9] sm:$0xff]  ;;  %p5651_p0 = scmp.lt.s32.totalorder %s7768_s12, %s5649_s25 }
 0x26a   : > { %v5360_v58 = vpop.permute.xlu0 %5359  ;;  %v3413_v52 = vsel %vm223_vm0, %v2389_v23, %v5351_v26  ;;  %v3317_v53 = vsel %vm223_vm0, %v2261_v0, %v5352_v14  ;;  %v2263_v22 = vld [vmem:[#allocation2 + $0xb0] sm:$0xff]  ;;  %v2264_v23 = vld [vmem:[#allocation2 + $0xc0] sm:$0xff] }
 0x26b   : > { %v5355_v54 = vpop.permute.xlu1 %5354  ;;  %v5362_v62 = vunpack.i.h.bf16 %v5360_v58  ;;  %v5361_v56 = vunpack.i.l.bf16 %v5360_v58 }
 0x26c   : > { %v5357_v43 = vunpack.i.h.bf16 %v5355_v54  ;;  %v5356_v10 = vunpack.i.l.bf16 %v5355_v54 }
 0x26e   : > { %v5365_v51 = vpop.permute.xlu0 %5364  ;;  %v3444_v29 = vsel %vm1433_vm2, %v3412_v34, %v5356_v10  ;;  %v3348_v7 = vsel %vm1433_vm2, %v3316_v41, %v5357_v43 }
 0x26f   : > { %v5370_v55 = vpop.permute.xlu1 %5369  ;;  %v5367_v3 = vunpack.i.h.bf16 %v5365_v51  ;;  %v5366_v28 = vunpack.i.l.bf16 %v5365_v51  ;;  %v3476_v36 = vsel %vm1466_vm3, %v3444_v29, %v5361_v56  ;;  %v3380_v37 = vsel %vm1466_vm3, %v3348_v7, %v5362_v62 }
 0x270   : > { %v5372_v11 = vunpack.i.h.bf16 %v5370_v55  ;;  %v5371_v31 = vunpack.i.l.bf16 %v5370_v55  ;;  %3759 = vmatprep.mubr.f32.mxu1 %v3476_v36 }
 0x271   : > { %3760 = vmatmul.mubr.f32.gmra.mrb[56].mxu1 %v3380_v37  ;;  %v3445_v60 = vsel %vm1433_vm2, %v3413_v52, %v5366_v28  ;;  %v3349_v19 = vsel %vm1433_vm2, %v3317_v53, %v5367_v3  ;;  %v2392_v37 = vld [vmem:[#allocation2 + $0xd9] sm:$0xff] }
 0x272   : > { %v5375_v35 = vpop.permute.xlu0 %5374  ;;  %v3477_v24 = vsel %vm1466_vm3, %v3445_v60, %v5371_v31  ;;  %v3381_v20 = vsel %vm1466_vm3, %v3349_v19, %v5372_v11 }
 0x273   : > { %v5380_v2 = vpop.permute.xlu1 %5379  ;;  %3764 = vmatprep.mubr.f32.mxu1 %v3477_v24  ;;  %v5377_v18 = vunpack.i.h.bf16 %v5375_v35  ;;  %v5376_v49 = vunpack.i.l.bf16 %v5375_v35 }
 0x274   : > { %v5382_v17 = vunpack.i.h.bf16 %v5380_v2  ;;  %v5381_v44 = vunpack.i.l.bf16 %v5380_v2 }
 0x275   : > { %3765 = vmatmul.mubr.f32.gmra.mrb[58].mxu1 %v3381_v20  ;;  %v3414_v5 = vsel %vm223_vm0, %v2390_v61, %v5376_v49  ;;  %v3318_v33 = vsel %vm223_vm0, %v2262_v25, %v5377_v18  ;;  %v2393_v49 = vld [vmem:[#allocation2 + $0xe1] sm:$0xff] }
 0x276   : > { %v5390_v1 = vpop.permute.xlu0 %5389  ;;  %v3415_v54 = vsel %vm223_vm0, %v2391_v63, %v5381_v44  ;;  %v3319_v62 = vsel %vm223_vm0, %v2263_v22, %v5382_v17  ;;  %v2394_v22 = vld [vmem:[#allocation2 + $0xf1] sm:$0xff] }
 0x277   : > { %v5385_v40 = vpop.permute.xlu1 %5384  ;;  %v5392_v42 = vunpack.i.h.bf16 %v5390_v1  ;;  %v5391_v57 = vunpack.i.l.bf16 %v5390_v1  ;;  %v2265_v1 = vld [vmem:[#allocation2 + $0xc8] sm:$0xff] }
 0x278   : > { %v5387_v45 = vunpack.i.h.bf16 %v5385_v40  ;;  %v5386_v47 = vunpack.i.l.bf16 %v5385_v40 }
 0x27a   : > { %v5395_v21 = vpop.permute.xlu0 %5394  ;;  %v3446_v9 = vsel %vm1433_vm2, %v3414_v5, %v5386_v47  ;;  %v3350_v38 = vsel %vm1433_vm2, %v3318_v33, %v5387_v45 }
 0x27b   : > { %v5400_v15 = vpop.permute.xlu1 %5399  ;;  %v5397_v48 = vunpack.i.h.bf16 %v5395_v21  ;;  %v5396_v16 = vunpack.i.l.bf16 %v5395_v21  ;;  %v3478_v30 = vsel %vm1466_vm3, %v3446_v9, %v5391_v57  ;;  %v3382_v13 = vsel %vm1466_vm3, %v3350_v38, %v5392_v42 }
 0x27c   : > { %v5402_v4 = vunpack.i.h.bf16 %v5400_v15  ;;  %v5401_v58 = vunpack.i.l.bf16 %v5400_v15  ;;  %3769 = vmatprep.mubr.f32.mxu1 %v3478_v30 }
 0x27d   : > { %3770 = vmatmul.mubr.f32.gmra.mrb[60].mxu1 %v3382_v13  ;;  %v3447_v56 = vsel %vm1433_vm2, %v3415_v54, %v5396_v16  ;;  %v3351_v14 = vsel %vm1433_vm2, %v3319_v62, %v5397_v48 }
 0x27e   : > { %v5405_v26 = vpop.permute.xlu0 %5404  ;;  %v3479_v43 = vsel %vm1466_vm3, %v3447_v56, %v5401_v58  ;;  %v3383_v10 = vsel %vm1466_vm3, %v3351_v14, %v5402_v4  ;;  %v2266_v4 = vld [vmem:[#allocation2 + $0xd8] sm:$0xff] }
 0x27f   : > { %v5410_v59 = vpop.permute.xlu1 %5409  ;;  %3774 = vmatprep.mubr.f32.mxu1 %v3479_v43  ;;  %v5407_v32 = vunpack.i.h.bf16 %v5405_v26  ;;  %v5406_v34 = vunpack.i.l.bf16 %v5405_v26 }
 0x280   : > { %v5412_v55 = vunpack.i.h.bf16 %v5410_v59  ;;  %v5411_v3 = vunpack.i.l.bf16 %v5410_v59 }
 0x281   : > { %3775 = vmatmul.mubr.f32.gmra.mrb[62].mxu1 %v3383_v10  ;;  %v3416_v0 = vsel %vm223_vm0, %v2392_v37, %v5406_v34  ;;  %v3320_v11 = vsel %vm223_vm0, %v2264_v23, %v5407_v32 }
 0x282   : > { %v5420_v41 = vpop.permute.xlu0 %5419  ;;  %v3417_v57 = vsel %vm223_vm0, %v2393_v49, %v5411_v3  ;;  %v3321_v17 = vsel %vm223_vm0, %v2265_v1, %v5412_v55 }
 0x283   : > { %v5415_v51 = vpop.permute.xlu1 %5414  ;;  %v5422_v29 = vunpack.i.h.bf16 %v5420_v41  ;;  %v5421_v7 = vunpack.i.l.bf16 %v5420_v41 }
 0x284   : > { %v5417_v28 = vunpack.i.h.bf16 %v5415_v51  ;;  %v5416_v36 = vunpack.i.l.bf16 %v5415_v51  ;;  %v2395_v51 = vld [vmem:[#allocation2 + $0xf9] sm:$0xff] }
 0x285   : > { %v7449_v31 = vpop.f32.mrb[64].mxu0 }
 0x286   : > { %v5425_v52 = vpop.permute.xlu0 %5424  ;;  %v3448_v53 = vsel %vm1433_vm2, %v3416_v0, %v5416_v36  ;;  %v3352_v60 = vsel %vm1433_vm2, %v3320_v11, %v5417_v28  ;;  %v7454_v2 = vpop.f32.mrb[65].mxu0 }
 0x287   : > { %v5430_v19 = vpop.permute.xlu1 %5429  ;;  %v5427_v35 = vunpack.i.h.bf16 %v5425_v52  ;;  %v5426_v24 = vunpack.i.l.bf16 %v5425_v52  ;;  %v3480_v20 = vsel %vm1466_vm3, %v3448_v53, %v5421_v7  ;;  %v3384_v18 = vsel %vm1466_vm3, %v3352_v60, %v5422_v29  ;;  %v2267_v29 = vld [vmem:[#allocation2 + $0xe0] sm:$0xff] }
 0x288   : > { %v5432_v40 = vunpack.i.h.bf16 %v5430_v19  ;;  %v5431_v42 = vunpack.i.l.bf16 %v5430_v19  ;;  %3779 = vmatprep.mubr.f32.mxu1 %v3480_v20 }
 0x289   : > { %3780 = vmatmul.mubr.f32.gmra.mrb[64].mxu1 %v3384_v18  ;;  %v3449_v44 = vsel %vm1433_vm2, %v3417_v57, %v5426_v24  ;;  %v3353_v45 = vsel %vm1433_vm2, %v3321_v17, %v5427_v35  ;;  %v2396_v17 = vld [vmem:[#allocation2 + $0x109] sm:$0xff] }
 0x28a   : > { %v5435_v47 = vpop.permute.xlu0 %5434  ;;  %v3481_v61 = vsel %vm1466_vm3, %v3449_v44, %v5431_v42  ;;  %v3385_v25 = vsel %vm1466_vm3, %v3353_v45, %v5432_v40  ;;  %v2268_v44 = vld [vmem:[#allocation2 + $0xf0] sm:$0xff] }
 0x28b   : > { %v5440_v5 = vpop.permute.xlu1 %5439  ;;  %3784 = vmatprep.mubr.f32.mxu1 %v3481_v61  ;;  %v5437_v33 = vunpack.i.h.bf16 %v5435_v47  ;;  %v5436_v21 = vunpack.i.l.bf16 %v5435_v47 }
 0x28c   : > { %v5442_v16 = vunpack.i.h.bf16 %v5440_v5  ;;  %v5441_v30 = vunpack.i.l.bf16 %v5440_v5 }
 0x28d   : > { %3785 = vmatmul.mubr.f32.gmra.mrb[66].mxu1 %v3385_v25  ;;  %v3418_v54 = vsel %vm223_vm0, %v2394_v22, %v5436_v21  ;;  %v3322_v62 = vsel %vm223_vm0, %v2266_v4, %v5437_v33 }
 0x28e   : > { %v5450_v9 = vpop.permute.xlu0 %5449  ;;  %v3419_v3 = vsel %vm223_vm0, %v2395_v51, %v5441_v30  ;;  %v3323_v28 = vsel %vm223_vm0, %v2267_v29, %v5442_v16  ;;  %v2269_v16 = vld [vmem:[#allocation2 + $0xf8] sm:$0xff] }
 0x28f   : > { %v5445_v38 = vpop.permute.xlu1 %5444  ;;  %v5452_v15 = vunpack.i.h.bf16 %v5450_v9  ;;  %v5451_v48 = vunpack.i.l.bf16 %v5450_v9 }
 0x290   : > { %v5447_v13 = vunpack.i.h.bf16 %v5445_v38  ;;  %v5446_v63 = vunpack.i.l.bf16 %v5445_v38  ;;  %v7463_v58 = vpop.f32.mrb[66].mxu0 }
 0x291   : > { %v7467_v56 = vpop.f32.mrb[67].mxu0 }
 0x292   : > { %v5455_v14 = vpop.permute.xlu0 %5454  ;;  %v3450_v26 = vsel %vm1433_vm2, %v3418_v54, %v5446_v63  ;;  %v3354_v43 = vsel %vm1433_vm2, %v3322_v62, %v5447_v13 }
 0x293   : > { %v5460_v10 = vpop.permute.xlu1 %5459  ;;  %v5457_v59 = vunpack.i.h.bf16 %v5455_v14  ;;  %v5456_v32 = vunpack.i.l.bf16 %v5455_v14  ;;  %v3482_v34 = vsel %vm1466_vm3, %v3450_v26, %v5451_v48  ;;  %v3386_v41 = vsel %vm1466_vm3, %v3354_v43, %v5452_v15  ;;  %v2397_v48 = vld [vmem:[#allocation2 + $0x111] sm:$0xff] }
 0x294   : > { %v5462_v7 = vunpack.i.h.bf16 %v5460_v10  ;;  %v5461_v55 = vunpack.i.l.bf16 %v5460_v10  ;;  %3789 = vmatprep.mubr.f32.mxu1 %v3482_v34 }
 0x295   : > { %3790 = vmatmul.mubr.f32.gmra.mrb[68].mxu1 %v3386_v41  ;;  %v3451_v36 = vsel %vm1433_vm2, %v3419_v3, %v5456_v32  ;;  %v3355_v37 = vsel %vm1433_vm2, %v3323_v28, %v5457_v59 }
 0x296   : > { %v5465_v23 = vpop.permute.xlu0 %5464  ;;  %v3483_v0 = vsel %vm1466_vm3, %v3451_v36, %v5461_v55  ;;  %v3387_v11 = vsel %vm1466_vm3, %v3355_v37, %v5462_v7  ;;  %v2398_v37 = vld [vmem:[#allocation2 + $0x121] sm:$0xff] }
 0x297   : > { %v5470_v52 = vpop.permute.xlu1 %5469  ;;  %3794 = vmatprep.mubr.f32.mxu1 %v3483_v0  ;;  %v5467_v53 = vunpack.i.h.bf16 %v5465_v23  ;;  %v5466_v60 = vunpack.i.l.bf16 %v5465_v23  ;;  %v2270_v23 = vld [vmem:[#allocation2 + $0x108] sm:$0xff] }
 0x298   : > { %v5472_v1 = vunpack.i.h.bf16 %v5470_v52  ;;  %v5471_v40 = vunpack.i.l.bf16 %v5470_v52 }
 0x299   : > { %3795 = vmatmul.mubr.f32.gmra.mrb[70].mxu1 %v3387_v11  ;;  %v7479_v19 = vpop.f32.mrb[68].mxu0  ;;  %v3420_v45 = vsel %vm223_vm0, %v2396_v17, %v5466_v60  ;;  %v3324_v47 = vsel %vm223_vm0, %v2268_v44, %v5467_v53 }
 0x29a   : > { %v5480_v35 = vpop.permute.xlu0 %5479  ;;  %v7481_v49 = vpop.f32.mrb[69].mxu0  ;;  %v3421_v63 = vsel %vm223_vm0, %v2397_v48, %v5471_v40  ;;  %v3325_v22 = vsel %vm223_vm0, %v2269_v16, %v5472_v1  ;;  %v2399_v40 = vld [vmem:[#allocation2 + $0x129] sm:$0xff] }
 0x29b   : > { %v5475_v24 = vpop.permute.xlu1 %5474  ;;  %v5482_v20 = vunpack.i.h.bf16 %v5480_v35  ;;  %v5481_v18 = vunpack.i.l.bf16 %v5480_v35 }
 0x29c   : > { %v5477_v42 = vunpack.i.h.bf16 %v5475_v24  ;;  %v5476_v57 = vunpack.i.l.bf16 %v5475_v24 }
 0x29e   : > { %v5485_v61 = vpop.permute.xlu0 %5484  ;;  %v3452_v25 = vsel %vm1433_vm2, %v3420_v45, %v5476_v57  ;;  %v3356_v5 = vsel %vm1433_vm2, %v3324_v47, %v5477_v42  ;;  %v2271_v42 = vld [vmem:[#allocation2 + $0x110] sm:$0xff] }
 0x29f   : > { %v5490_v33 = vpop.permute.xlu1 %5489  ;;  %v5487_v21 = vunpack.i.h.bf16 %v5485_v61  ;;  %v5486_v9 = vunpack.i.l.bf16 %v5485_v61  ;;  %v3484_v38 = vsel %vm1466_vm3, %v3452_v25, %v5481_v18  ;;  %v3388_v15 = vsel %vm1466_vm3, %v3356_v5, %v5482_v20 }
 0x2a0   : > { %v5492_v30 = vunpack.i.h.bf16 %v5490_v33  ;;  %v5491_v13 = vunpack.i.l.bf16 %v5490_v33  ;;  %3799 = vmatprep.mubr.f32.mxu1 %v3484_v38 }
 0x2a1   : > { %3800 = vmatmul.mubr.f32.gmra.mrb[72].mxu1 %v3388_v15  ;;  %v3453_v4 = vsel %vm1433_vm2, %v3421_v63, %v5486_v9  ;;  %v3357_v54 = vsel %vm1433_vm2, %v3325_v22, %v5487_v21 }
 0x2a2   : > { %v5495_v62 = vpop.permute.xlu0 %5494  ;;  %v3485_v14 = vsel %vm1466_vm3, %v3453_v4, %v5491_v13  ;;  %v3389_v26 = vsel %vm1466_vm3, %v3357_v54, %v5492_v30 }
 0x2a3   : > { %v5500_v43 = vpop.permute.xlu1 %5499  ;;  %3804 = vmatprep.mubr.f32.mxu1 %v3485_v14  ;;  %v5497_v10 = vunpack.i.h.bf16 %v5495_v62  ;;  %v5496_v59 = vunpack.i.l.bf16 %v5495_v62  ;;  %v2400_v14 = vld [vmem:[#allocation2 + $0x139] sm:$0xff] }
 0x2a4   : > { %v7495_v32 = vpop.f32.mrb[70].mxu0  ;;  %v5502_v55 = vunpack.i.h.bf16 %v5500_v43  ;;  %v5501_v3 = vunpack.i.l.bf16 %v5500_v43 }
 0x2a5   : > { %3805 = vmatmul.mubr.f32.gmra.mrb[74].mxu1 %v3389_v26  ;;  %v7497_v34 = vpop.f32.mrb[71].mxu0  ;;  %v3422_v0 = vsel %vm223_vm0, %v2398_v37, %v5496_v59  ;;  %v3326_v11 = vsel %vm223_vm0, %v2270_v23, %v5497_v10  ;;  %v2272_v26 = vld [vmem:[#allocation2 + $0x120] sm:$0xff]  ;;  %v2273_v37 = vld [vmem:[#allocation2 + $0x128] sm:$0xff] }
 0x2a6   : > { %v5510_v41 = vpop.permute.xlu0 %5509  ;;  %v3423_v44 = vsel %vm223_vm0, %v2399_v40, %v5501_v3  ;;  %v3327_v45 = vsel %vm223_vm0, %v2271_v42, %v5502_v55 }
 0x2a7   : > { %v5505_v51 = vpop.permute.xlu1 %5504  ;;  %v5512_v29 = vunpack.i.h.bf16 %v5510_v41  ;;  %v5511_v7 = vunpack.i.l.bf16 %v5510_v41 }
 0x2a8   : > { %v5507_v28 = vunpack.i.h.bf16 %v5505_v51  ;;  %v5506_v36 = vunpack.i.l.bf16 %v5505_v51 }
 0x2aa   : > { %v5515_v52 = vpop.permute.xlu0 %5514  ;;  %v3454_v53 = vsel %vm1433_vm2, %v3422_v0, %v5506_v36  ;;  %v3358_v60 = vsel %vm1433_vm2, %v3326_v11, %v5507_v28  ;;  %v2401_v36 = vld [vmem:[#allocation2 + $0x141] sm:$0xff] }
 0x2ab   : > { %v5520_v35 = vpop.permute.xlu1 %5519  ;;  %v5517_v24 = vunpack.i.h.bf16 %v5515_v52  ;;  %v5516_v20 = vunpack.i.l.bf16 %v5515_v52  ;;  %v3486_v18 = vsel %vm1466_vm3, %v3454_v53, %v5511_v7  ;;  %v3390_v1 = vsel %vm1466_vm3, %v3358_v60, %v5512_v29 }
 0x2ac   : > { %v5522_v57 = vunpack.i.h.bf16 %v5520_v35  ;;  %v5521_v17 = vunpack.i.l.bf16 %v5520_v35  ;;  %3809 = vmatprep.mubr.f32.mxu1 %v3486_v18 }
 0x2ad   : > { %3810 = vmatmul.mubr.f32.gmra.mrb[76].mxu1 %v3390_v1  ;;  %v3455_v47 = vsel %vm1433_vm2, %v3423_v44, %v5516_v20  ;;  %v3359_v61 = vsel %vm1433_vm2, %v3327_v45, %v5517_v24  ;;  %v7509_v25 = vpop.f32.mrb[72].mxu0 }
 0x2ae   : > { %v5525_v5 = vpop.permute.xlu0 %5524  ;;  %v3487_v33 = vsel %vm1466_vm3, %v3455_v47, %v5521_v17  ;;  %v3391_v21 = vsel %vm1466_vm3, %v3359_v61, %v5522_v57  ;;  %v7513_v38 = vpop.f32.mrb[73].mxu0 }
 0x2af   : > { %v5530_v9 = vpop.permute.xlu1 %5529  ;;  %3814 = vmatprep.mubr.f32.mxu1 %v3487_v33  ;;  %v5527_v15 = vunpack.i.h.bf16 %v5525_v5  ;;  %v5526_v48 = vunpack.i.l.bf16 %v5525_v5 }
 0x2b0   : > { %v5532_v22 = vunpack.i.h.bf16 %v5530_v9  ;;  %v5531_v4 = vunpack.i.l.bf16 %v5530_v9  ;;  %v2402_v9 = vld [vmem:[#allocation2 + $0x151] sm:$0xff] }
 0x2b1   : > { %3815 = vmatmul.mubr.f32.gmra.mrb[78].mxu1 %v3391_v21  ;;  %v3424_v43 = vsel %vm223_vm0, %v2400_v14, %v5526_v48  ;;  %v3328_v10 = vsel %vm223_vm0, %v2272_v26, %v5527_v15  ;;  %v2274_v15 = vld [vmem:[#allocation2 + $0x138] sm:$0xff] }
 0x2b2   : > { %v5540_v16 = vpop.permute.xlu0 %5539  ;;  %v3425_v11 = vsel %vm223_vm0, %v2401_v36, %v5531_v4  ;;  %v3329_v52 = vsel %vm223_vm0, %v2273_v37, %v5532_v22 }
 0x2b3   : > { %v5535_v30 = vpop.permute.xlu1 %5534  ;;  %v5542_v13 = vunpack.i.h.bf16 %v5540_v16  ;;  %v5541_v63 = vunpack.i.l.bf16 %v5540_v16 }
 0x2b4   : > { %v5537_v54 = vunpack.i.h.bf16 %v5535_v30  ;;  %v5536_v62 = vunpack.i.l.bf16 %v5535_v30 }
 0x2b6   : > { %v5545_v59 = vpop.permute.xlu0 %5544  ;;  %v3456_v41 = vsel %vm1433_vm2, %v3424_v43, %v5536_v62  ;;  %v3360_v51 = vsel %vm1433_vm2, %v3328_v10, %v5537_v54  ;;  %v2275_v10 = vld [vmem:[#allocation2 + $0x140] sm:$0xff] }
 0x2b7   : > { %v5550_v29 = vpop.permute.xlu1 %5549  ;;  %v5547_v7 = vunpack.i.h.bf16 %v5545_v59  ;;  %v5546_v55 = vunpack.i.l.bf16 %v5545_v59  ;;  %v3488_v3 = vsel %vm1466_vm3, %v3456_v41, %v5541_v63  ;;  %v3392_v28 = vsel %vm1466_vm3, %v3360_v51, %v5542_v13 }
 0x2b8   : > { %v5552_v23 = vunpack.i.h.bf16 %v5550_v29  ;;  %v5551_v0 = vunpack.i.l.bf16 %v5550_v29  ;;  %3819 = vmatprep.mubr.f32.mxu1 %v3488_v3  ;;  %v7523_v53 = vpop.f32.mrb[74].mxu0 }
 0x2b9   : > { %3820 = vmatmul.mubr.f32.gmra.mrb[80].mxu1 %v3392_v28  ;;  %v3457_v60 = vsel %vm1433_vm2, %v3425_v11, %v5546_v55  ;;  %v3361_v35 = vsel %vm1433_vm2, %v3329_v52, %v5547_v7  ;;  %v7527_v24 = vpop.f32.mrb[75].mxu0 }
 0x2ba   : > { %v5555_v20 = vpop.permute.xlu0 %5554  ;;  %v3489_v18 = vsel %vm1466_vm3, %v3457_v60, %v5551_v0  ;;  %v3393_v1 = vsel %vm1466_vm3, %v3361_v35, %v5552_v23 }
 0x2bb   : > { %v5560_v40 = vpop.permute.xlu1 %5559  ;;  %3824 = vmatprep.mubr.f32.mxu1 %v3489_v18  ;;  %v5557_v42 = vunpack.i.h.bf16 %v5555_v20  ;;  %v5556_v57 = vunpack.i.l.bf16 %v5555_v20  ;;  %v2276_v18 = vld [vmem:[#allocation2 + $0x150] sm:$0xff] }
 0x2bc   : > { %v5562_v61 = vunpack.i.h.bf16 %v5560_v40  ;;  %v5561_v5 = vunpack.i.l.bf16 %v5560_v40 }
 0x2bd   : > { %3825 = vmatmul.mubr.f32.gmra.mrb[82].mxu1 %v3393_v1  ;;  %v3426_v48 = vsel %vm223_vm0, %v2402_v9, %v5556_v57  ;;  %v3330_v16 = vsel %vm223_vm0, %v2274_v15, %v5557_v42 }
 0x2be   : > { %v5570_v17 = vpop.permute.xlu0 %5569  ;;  %v3427_v51 = vsel %vm223_vm0, %v7298_v8, %v5561_v5  ;;  %v3331_v29 = vsel %vm223_vm0, %v2275_v10, %v5562_v61 }
 0x2bf   : > { %v5565_v44 = vpop.permute.xlu1 %5564  ;;  %v5572_v45 = vunpack.i.h.bf16 %v5570_v17  ;;  %v5571_v47 = vunpack.i.l.bf16 %v5570_v17 }
 0x2c0   : > { %v5567_v33 = vunpack.i.h.bf16 %v5565_v44  ;;  %v5566_v21 = vunpack.i.l.bf16 %v5565_v44 }
 0x2c1   : > { %v7533_v30 = vpop.f32.mrb[76].mxu0 }
 0x2c2   : > { %v5575_v13 = vpop.permute.xlu0 %5574  ;;  %v3458_v63 = vsel %vm1433_vm2, %v3426_v48, %v5566_v21  ;;  %v3362_v22 = vsel %vm1433_vm2, %v3330_v16, %v5567_v33  ;;  %v7538_v26 = vpop.f32.mrb[77].mxu0 }
 0x2c3   : > { %v5580_v4 = vpop.permute.xlu1 %5579  ;;  %v5577_v54 = vunpack.i.h.bf16 %v5575_v13  ;;  %v5576_v62 = vunpack.i.l.bf16 %v5575_v13  ;;  %v3490_v14 = vsel %vm1466_vm3, %v3458_v63, %v5571_v47  ;;  %v3394_v43 = vsel %vm1466_vm3, %v3362_v22, %v5572_v45  ;;  %v2277_v63 = vld [vmem:[#allocation2 + $0x158] sm:$0xff] }
 0x2c4   : > { %v5582_v59 = vunpack.i.h.bf16 %v5580_v4  ;;  %v5581_v41 = vunpack.i.l.bf16 %v5580_v4  ;;  %3829 = vmatprep.mubr.f32.mxu1 %v3490_v14  ;;  %v2278_v14 = vld [vmem:[#allocation2 + $0x168] sm:$0xff] }
 0x2c5   : > { %3830 = vmatmul.mubr.f32.gmra.mrb[84].mxu1 %v3394_v43  ;;  %v3459_v7 = vsel %vm1433_vm2, %v3427_v51, %v5576_v62  ;;  %v3363_v55 = vsel %vm1433_vm2, %v3331_v29, %v5577_v54 }
 0x2c6   : > { %v5585_v3 = vpop.permute.xlu0 %5584  ;;  %v3491_v28 = vsel %vm1466_vm3, %v3459_v7, %v5581_v41  ;;  %v3395_v36 = vsel %vm1466_vm3, %v3363_v55, %v5582_v59 }
 0x2c7   : > { %v5590_v37 = vpop.permute.xlu1 %5589  ;;  %3834 = vmatprep.mubr.f32.mxu1 %v3491_v28  ;;  %v5587_v23 = vunpack.i.h.bf16 %v5585_v3  ;;  %v5586_v0 = vunpack.i.l.bf16 %v5585_v3 }
 0x2c8   : > { %v5592_v33 = vunpack.i.h.bf16 %v5590_v37  ;;  %v5591_v21 = vunpack.i.l.bf16 %v5590_v37 }
 0x2c9   : > { %3835 = vmatmul.mubr.f32.gmra.mrb[86].mxu1 %v3395_v36  ;;  %v3428_v40 = vsel %vm223_vm0, %v7323_v46, %v5586_v0  ;;  %v3332_v42 = vsel %vm223_vm0, %v2276_v18, %v5587_v23 }
 0x2ca   : > { %v5605_v11 = vpop.permute.xlu0 %5604  ;;  %v3429_v54 = vsel %vm223_vm0, %v7341_v27, %v5591_v21  ;;  %v3333_v62 = vsel %vm223_vm0, %v2277_v63, %v5592_v33  ;;  %v2529_v63 = vld [vmem:[#allocation2 + $0x15a] sm:$0xff] }
 0x2cb   : > { %v5595_v52 = vpop.permute.xlu1 %5594  ;;  %v5607_v8 = vunpack.i.h.bf16 %v5605_v11  ;;  %v5606_v60 = vunpack.i.l.bf16 %v5605_v11 }
 0x2cc   : > { %v5597_v35 = vunpack.i.h.bf16 %v5595_v52  ;;  %v5596_v20 = vunpack.i.l.bf16 %v5595_v52  ;;  %v7548_v1 = vpop.f32.mrb[78].mxu0 }
 0x2cd   : > { %v7553_v57 = vpop.f32.mrb[79].mxu0 }
 0x2ce   : > { %v5610_v17 = vpop.permute.xlu0 %5609  ;;  %v3460_v44 = vsel %vm1433_vm2, %v3428_v40, %v5596_v20  ;;  %v3364_v45 = vsel %vm1433_vm2, %v3332_v42, %v5597_v35  ;;  %v2279_v42 = vld [vmem:[#allocation2 + $0x170] sm:$0xff] }
 0x2cf   : > { %v5600_v47 = vpop.permute.xlu1 %5599  ;;  %v3492_v61 = vsel %vm1466_vm3, %v3460_v44, %v5606_v60  ;;  %v3396_v5 = vsel %vm1466_vm3, %v3364_v45, %v5607_v8  ;;  %v5612_v9 = vunpack.i.h.bf16 %v5610_v17  ;;  %v5611_v15 = vunpack.i.l.bf16 %v5610_v17 }
 0x2d0   : > { %3839 = vmatprep.mubr.f32.mxu1 %v3492_v61  ;;  %v5602_v51 = vunpack.i.h.bf16 %v5600_v47  ;;  %v5601_v29 = vunpack.i.l.bf16 %v5600_v47 }
 0x2d1   : > { %3840 = vmatmul.mubr.f32.gmra.mrb[88].mxu1 %v3396_v5  ;;  %v3461_v43 = vsel %vm1433_vm2, %v3429_v54, %v5611_v15  ;;  %v3365_v10 = vsel %vm1433_vm2, %v3333_v62, %v5612_v9  ;;  %v2522_v9 = vld [vmem:[#allocation2 + $0x10a] sm:$0xff]  ;;  %v2523_v15 = vld [vmem:[#allocation2 + $0x112] sm:$0xff]  ;;  %v2534_v54 = vld [vmem:[#allocation2 + $0x19a] sm:$0xff] }
 0x2d2   : > { %v5620_v46 = vpop.permute.xlu0 %5619  ;;  %v7602_v62 = vld [vmem:[%s7821_s4] ss:$0 sm:$0xff] }
 0x2d3   : > { %v5615_v48 = vpop.permute.xlu1 %5614  ;;  %v5622_v16 = vunpack.i.h.bf16 %v5620_v46  ;;  %v5621_v13 = vunpack.i.l.bf16 %v5620_v46  ;;  %v2524_v46 = vld [vmem:[#allocation2 + $0x122] sm:$0xff] }
 0x2d4   : > { %v5617_v22 = vunpack.i.h.bf16 %v5615_v48  ;;  %v5616_v4 = vunpack.i.l.bf16 %v5615_v48  ;;  %v2526_v48 = vld [vmem:[#allocation2 + $0x13a] sm:$0xff] }
 0x2d5   : > { %v3430_v59 = vsel %vm223_vm0, %v7362_v12, %v5621_v13  ;;  %v3334_v41 = vsel %vm223_vm0, %v2278_v14, %v5622_v16  ;;  %v7567_v7 = vpop.f32.mrb[80].mxu0  ;;  %v2527_v16 = vld [vmem:[#allocation2 + $0x142] sm:$0xff]  ;;  %v2528_v13 = vld [vmem:[#allocation2 + $0x152] sm:$0xff] }
 0x2d6   : > { %v5625_v55 = vpop.permute.xlu0 %5624  ;;  %v3493_v3 = vsel %vm1466_vm3, %v3461_v43, %v5616_v4  ;;  %v3397_v27 = vsel %vm1466_vm3, %v3365_v10, %v5617_v22  ;;  %v7571_v23 = vpop.f32.mrb[81].mxu0  ;;  %v3462_v12 = vsel %vm1433_vm2, %v3430_v59, %v5601_v29  ;;  %v3366_v52 = vsel %vm1433_vm2, %v3334_v41, %v5602_v51  ;;  %v2530_v22 = vld [vmem:[#allocation2 + $0x16a] sm:$0xff]  ;;  %v2531_v4 = vld [vmem:[#allocation2 + $0x172] sm:$0xff]  ;;  %v2535_v14 = vld [vmem:[#allocation2 + $0x1a2] sm:$0xff] }
 0x2d7   : > { %v5630_v28 = vpop.permute.xlu1 %5629  ;;  %v5627_v36 = vunpack.i.h.bf16 %v5625_v55  ;;  %v5626_v37 = vunpack.i.l.bf16 %v5625_v55  ;;  %3844 = vmatprep.mubr.f32.mxu1 %v3493_v3  ;;  %v4085_v59 = vld [vmem:[%s5868_s17] sm:$0xff]  ;;  %v4086_v3 = vld [vmem:[%s5868_s17 + $0x8] sm:$0xff] }
 0x2d8   : > { %v5632_v0 = vunpack.i.h.bf16 %v5630_v28  ;;  %v5631_v11 = vunpack.i.l.bf16 %v5630_v28  ;;  %3845 = vmatmul.mubr.f32.gmra.mrb[90].mxu1 %v3397_v27 }
 0x2d9   : > { %v3494_v8 = vsel %vm1466_vm3, %v3462_v12, %v5626_v37  ;;  %v3398_v60 = vsel %vm1466_vm3, %v3366_v52, %v5627_v36 }
 0x2da   : > { %v5635_v35 = vpop.permute.xlu0 %5634  ;;  %3849 = vmatprep.mubr.f32.mxu1 %v3494_v8  ;;  %v3431_v45 = vsel %vm223_vm0, %v7391_v39, %v5631_v11  ;;  %v3335_v47 = vsel %vm223_vm0, %v2279_v42, %v5632_v0  ;;  %v2525_v39 = vld [vmem:[#allocation2 + $0x12a] sm:$0xff]  ;;  %v4089_v42 = vld [vmem:[%s5868_s17 + $0x20] sm:$0xff] }
 0x2db   : > { %v5640_v20 = vpop.permute.xlu1 %5639  ;;  %v5637_v18 = vunpack.i.h.bf16 %v5635_v35  ;;  %v5636_v40 = vunpack.i.l.bf16 %v5635_v35  ;;  %v4087_v0 = vld [vmem:[%s5868_s17 + $0x10] sm:$0xff] }
 0x2dc   : > { %v5642_v17 = vunpack.i.h.bf16 %v5640_v20  ;;  %v5641_v44 = vunpack.i.l.bf16 %v5640_v20  ;;  %3850 = vmatmul.mubr.f32.gmra.mrb[92].mxu1 %v3398_v60 }
 0x2dd   : > { %v3463_v61 = vsel %vm1433_vm2, %v3431_v45, %v5636_v40  ;;  %v3367_v5 = vsel %vm1433_vm2, %v3335_v47, %v5637_v18 }
 0x2de   : > { %v3495_v33 = vsel %vm1466_vm3, %v3463_v61, %v5641_v44  ;;  %v3399_v21 = vsel %vm1466_vm3, %v3367_v5, %v5642_v17 }
 0x2df   : > { %3854 = vmatprep.mubr.f32.mxu1 %v3495_v33 }
 0x2e0   : > { %3855 = vmatmul.mubr.f32.gmra.mrb[94].mxu1 %v3399_v21 }
 0x2e1   : > { %4500 = vmatprep.mubr.msk.f32.mxu1 %vm223_vm0, %v2522_v9 }
 0x2e4   : > { %4501 = vmatmul.mubr.msk.f32.vlgmr.msra.gmra.mrb[96].mxu1 %vm223_vm0, %v2523_v15  ;;  %v4091_v15 = vld [vmem:[%s5868_s17 + $0x30] sm:$0xff] }
 0x2e5   : > { %4503 = vmatprep.mubr.msk.f32.mxu1 %vm223_vm0, %v2524_v46 }
 0x2e8   : > { %4504 = vmatmul.mubr.msk.f32.gmra.mrb[98].mxu1 %vm223_vm0, %v2525_v39 }
 0x2e9   : > { %4506 = vmatprep.mubr.msk.f32.mxu1 %vm223_vm0, %v2526_v48 }
 0x2ec   : > { %4507 = vmatmul.mubr.msk.f32.gmra.mrb[100].mxu1 %vm223_vm0, %v2527_v16 }
 0x2ed   : > { %4509 = vmatprep.mubr.msk.f32.mxu1 %vm223_vm0, %v2528_v13 }
 0x2f0   : > { %4510 = vmatmul.mubr.msk.f32.gmra.mrb[102].mxu1 %vm223_vm0, %v2529_v63 }
 0x2f1   : > { %4512 = vmatprep.mubr.msk.f32.mxu1 %vm223_vm0, %v2530_v22 }
 0x2f4   : > { %4513 = vmatmul.mubr.msk.f32.gmra.mrb[104].mxu1 %vm223_vm0, %v2531_v4 }
 0x2f5   : > { %4515 = vmatprep.mubr.msk.f32.mxu1 %vm223_vm0, %v7388_v6 }
 0x2f8   : > { %4516 = vmatmul.mubr.msk.f32.gmra.mrb[106].mxu1 %vm223_vm0, %v7398_v50 }
 0x2f9   : > { %4518 = vmatprep.mubr.msk.f32.mxu1 %vm223_vm0, %v2534_v54 }
 0x2fa   : > { %v3701_v43 = vpop.f32.mrb[32].mxu1 }
 0x2fb   : > { %v3702_v10 = vadd.f32 %v7602_v62, %v3701_v43  ;;  %v3703_v6 = vpop.f32.mrb[33].mxu1 }
 0x2fc   : > { %4519 = vmatmul.mubr.msk.f32.gmra.mrb[108].mxu1 %vm223_vm0, %v2535_v14  ;;  %v4093_v14 = vld [vmem:[%s5868_s17 + $0x40] sm:$0xff] }
 0x2fd   : > { %v3927_v50 = vadd.f32 %v7454_v2, %v3702_v10 }
 0x2ff   : > { %v4117_v41 = vadd.f32 %v4085_v59, %v3927_v50  ;;  %v3706_v51 = vpop.f32.mrb[34].mxu1 }
 0x300   : > { %v3707_v29 = vadd.f32 %v7602_v62, %v3706_v51  ;;  %v3708_v55 = vpop.f32.mrb[35].mxu1 }
 0x301   : > { %4149 = vst.msk [vmem:[%s7612_s9] sm:$0xff] %vm223_vm0, %v4117_v41 }
 0x302   : > { %v3932_v27 = vadd.f32 %v7449_v31, %v3707_v29  ;;  %v4088_v31 = vld [vmem:[%s5868_s17 + $0x18] sm:$0xff] }
 0x304   : > { %v4118_v28 = vadd.f32 %v4086_v3, %v3932_v27  ;;  %v4095_v3 = vld [vmem:[%s5868_s17 + $0x50] sm:$0xff] }
 0x306   : > { %4150 = vst.msk [vmem:[%s7612_s9 + $0x8] sm:$0xff] %vm223_vm0, %v4118_v28 }
 0x308   : > { %v3711_v2 = vpop.f32.mrb[36].mxu1 }
 0x309   : > { %v3712_v36 = vadd.f32 %v7602_v62, %v3711_v2  ;;  %v3713_v37 = vpop.f32.mrb[37].mxu1 }
 0x30b   : > { %v3937_v11 = vadd.f32 %v7467_v56, %v3712_v36 }
 0x30c   : > { %v3716_v12 = vpop.f32.mrb[38].mxu1 }
 0x30d   : > { %v4119_v52 = vadd.f32 %v4087_v0, %v3937_v11  ;;  %v3717_v8 = vadd.f32 %v7602_v62, %v3716_v12  ;;  %v3718_v60 = vpop.f32.mrb[39].mxu1 }
 0x30f   : > { %4151 = vst.msk [vmem:[%s7612_s9 + $0x10] sm:$0xff] %vm223_vm0, %v4119_v52  ;;  %v3942_v35 = vadd.f32 %v7463_v58, %v3717_v8  ;;  %v4090_v58 = vld [vmem:[%s5868_s17 + $0x28] sm:$0xff]  ;;  %v4097_v8 = vld [vmem:[%s5868_s17 + $0x60] sm:$0xff] }
 0x311   : > { %v4120_v20 = vadd.f32 %v4088_v31, %v3942_v35 }
 0x313   : > { %4152 = vst.msk [vmem:[%s7612_s9 + $0x18] sm:$0xff] %vm223_vm0, %v4120_v20 }
 0x314   : > { %v3721_v18 = vpop.f32.mrb[40].mxu1 }
 0x315   : > { %v3722_v40 = vadd.f32 %v7602_v62, %v3721_v18  ;;  %v3723_v56 = vpop.f32.mrb[41].mxu1 }
 0x317   : > { %v3947_v17 = vadd.f32 %v7481_v49, %v3722_v40 }
 0x318   : > { %v3726_v44 = vpop.f32.mrb[42].mxu1 }
 0x319   : > { %v4121_v45 = vadd.f32 %v4089_v42, %v3947_v17  ;;  %v3727_v47 = vadd.f32 %v7602_v62, %v3726_v44  ;;  %v3728_v61 = vpop.f32.mrb[43].mxu1  ;;  %v4099_v44 = vld [vmem:[%s5868_s17 + $0x70] sm:$0xff] }
 0x31b   : > { %4153 = vst.msk [vmem:[%s7612_s9 + $0x20] sm:$0xff] %vm223_vm0, %v4121_v45  ;;  %v3952_v5 = vadd.f32 %v7479_v19, %v3727_v47  ;;  %v4092_v19 = vld [vmem:[%s5868_s17 + $0x38] sm:$0xff] }
 0x31d   : > { %v4122_v33 = vadd.f32 %v4090_v58, %v3952_v5 }
 0x31f   : > { %4154 = vst.msk [vmem:[%s7612_s9 + $0x28] sm:$0xff] %vm223_vm0, %v4122_v33 }
 0x320   : > { %v3731_v21 = vpop.f32.mrb[44].mxu1 }
 0x321   : > { %v3732_v9 = vadd.f32 %v7602_v62, %v3731_v21  ;;  %v3733_v49 = vpop.f32.mrb[45].mxu1 }
 0x323   : > { %v3957_v46 = vadd.f32 %v7497_v34, %v3732_v9 }
 0x324   : > { %v3736_v39 = vpop.f32.mrb[46].mxu1 }
 0x325   : > { %v4123_v48 = vadd.f32 %v4091_v15, %v3957_v46  ;;  %v3737_v16 = vadd.f32 %v7602_v62, %v3736_v39  ;;  %v3738_v13 = vpop.f32.mrb[47].mxu1  ;;  %v4101_v15 = vld [vmem:[%s5868_s17 + $0x80] sm:$0xff] }
 0x327   : > { %4155 = vst.msk [vmem:[%s7612_s9 + $0x30] sm:$0xff] %vm223_vm0, %v4123_v48  ;;  %v3962_v63 = vadd.f32 %v7495_v32, %v3737_v16  ;;  %v4094_v32 = vld [vmem:[%s5868_s17 + $0x48] sm:$0xff] }
 0x329   : > { %v4124_v22 = vadd.f32 %v4092_v19, %v3962_v63  ;;  %v4102_v19 = vld [vmem:[%s5868_s17 + $0x88] sm:$0xff] }
 0x32b   : > { %4156 = vst.msk [vmem:[%s7612_s9 + $0x38] sm:$0xff] %vm223_vm0, %v4124_v22 }
 0x32c   : > { %v3741_v4 = vpop.f32.mrb[48].mxu1 }
 0x32d   : > { %v3742_v54 = vadd.f32 %v7602_v62, %v3741_v4  ;;  %v3743_v34 = vpop.f32.mrb[49].mxu1 }
 0x32f   : > { %v3967_v43 = vadd.f32 %v7513_v38, %v3742_v54 }
 0x330   : > { %v3746_v10 = vpop.f32.mrb[50].mxu1 }
 0x331   : > { %v4125_v6 = vadd.f32 %v4093_v14, %v3967_v43  ;;  %v3747_v59 = vadd.f32 %v7602_v62, %v3746_v10  ;;  %v3748_v50 = vpop.f32.mrb[51].mxu1 }
 0x333   : > { %4157 = vst.msk [vmem:[%s7612_s9 + $0x40] sm:$0xff] %vm223_vm0, %v4125_v6  ;;  %v3972_v41 = vadd.f32 %v7509_v25, %v3747_v59  ;;  %v4096_v25 = vld [vmem:[%s5868_s17 + $0x58] sm:$0xff] }
 0x335   : > { %v4126_v51 = vadd.f32 %v4094_v32, %v3972_v41 }
 0x337   : > { %4158 = vst.msk [vmem:[%s7612_s9 + $0x48] sm:$0xff] %vm223_vm0, %v4126_v51 }
 0x338   : > { %v3751_v29 = vpop.f32.mrb[52].mxu1 }
 0x339   : > { %v3752_v55 = vadd.f32 %v7602_v62, %v3751_v29  ;;  %v3753_v38 = vpop.f32.mrb[53].mxu1 }
 0x33b   : > { %v3977_v27 = vadd.f32 %v7527_v24, %v3752_v55 }
 0x33c   : > { %v3756_v28 = vpop.f32.mrb[54].mxu1 }
 0x33d   : > { %v4127_v2 = vadd.f32 %v4095_v3, %v3977_v27  ;;  %v3757_v36 = vadd.f32 %v7602_v62, %v3756_v28  ;;  %v3758_v37 = vpop.f32.mrb[55].mxu1 }
 0x33f   : > { %4159 = vst.msk [vmem:[%s7612_s9 + $0x50] sm:$0xff] %vm223_vm0, %v4127_v2  ;;  %v3982_v0 = vadd.f32 %v7523_v53, %v3757_v36  ;;  %v4098_v53 = vld [vmem:[%s5868_s17 + $0x68] sm:$0xff] }
 0x341   : > { %v4128_v11 = vadd.f32 %v4096_v25, %v3982_v0 }
 0x343   : > { %4160 = vst.msk [vmem:[%s7612_s9 + $0x58] sm:$0xff] %vm223_vm0, %v4128_v11 }
 0x344   : > { %v3761_v12 = vpop.f32.mrb[56].mxu1 }
 0x345   : > { %v3762_v52 = vadd.f32 %v7602_v62, %v3761_v12  ;;  %v3763_v24 = vpop.f32.mrb[57].mxu1 }
 0x347   : > { %v3987_v60 = vadd.f32 %v7538_v26, %v3762_v52 }
 0x348   : > { %v3766_v31 = vpop.f32.mrb[58].mxu1 }
 0x349   : > { %v4129_v35 = vadd.f32 %v4097_v8, %v3987_v60  ;;  %v3767_v20 = vadd.f32 %v7602_v62, %v3766_v31  ;;  %v3768_v18 = vpop.f32.mrb[59].mxu1  ;;  %v4104_v60 = vld [vmem:[%s5868_s17 + $0x98] sm:$0xff] }
 0x34b   : > { %4161 = vst.msk [vmem:[%s7612_s9 + $0x60] sm:$0xff] %vm223_vm0, %v4129_v35  ;;  %v3992_v40 = vadd.f32 %v7533_v30, %v3767_v20  ;;  %v4100_v30 = vld [vmem:[%s5868_s17 + $0x78] sm:$0xff]  ;;  %v4103_v20 = vld [vmem:[%s5868_s17 + $0x90] sm:$0xff] }
 0x34d   : > { %v4130_v56 = vadd.f32 %v4098_v53, %v3992_v40 }
 0x34f   : > { %4162 = vst.msk [vmem:[%s7612_s9 + $0x68] sm:$0xff] %vm223_vm0, %v4130_v56 }
 0x350   : > { %v3771_v42 = vpop.f32.mrb[60].mxu1 }
 0x351   : > { %v3772_v17 = vadd.f32 %v7602_v62, %v3771_v42  ;;  %v3773_v26 = vpop.f32.mrb[61].mxu1 }
 0x352   : > { %v4106_v26 = vld [vmem:[%s5868_s17 + $0xa8] sm:$0xff] }
 0x353   : > { %v3997_v45 = vadd.f32 %v7553_v57, %v3772_v17 }
 0x354   : > { %v3776_v47 = vpop.f32.mrb[62].mxu1 }
 0x355   : > { %v4131_v61 = vadd.f32 %v4099_v44, %v3997_v45  ;;  %v3777_v58 = vadd.f32 %v7602_v62, %v3776_v47  ;;  %v3778_v5 = vpop.f32.mrb[63].mxu1  ;;  %v4105_v47 = vld [vmem:[%s5868_s17 + $0xa0] sm:$0xff] }
 0x357   : > { %4163 = vst.msk [vmem:[%s7612_s9 + $0x70] sm:$0xff] %vm223_vm0, %v4131_v61  ;;  %v4002_v33 = vadd.f32 %v7548_v1, %v3777_v58 }
 0x359   : > { %v4132_v21 = vadd.f32 %v4100_v30, %v4002_v33 }
 0x35b   : > { %4164 = vst.msk [vmem:[%s7612_s9 + $0x78] sm:$0xff] %vm223_vm0, %v4132_v21 }
 0x35c   : > { %v3781_v9 = vpop.f32.mrb[64].mxu1 }
 0x35d   : > { %v3782_v49 = vadd.f32 %v7602_v62, %v3781_v9  ;;  %v3783_v57 = vpop.f32.mrb[65].mxu1  ;;  %v4108_v9 = vld [vmem:[%s5868_s17 + $0xb8] sm:$0xff] }
 0x35f   : > { %v4007_v46 = vadd.f32 %v7571_v23, %v3782_v49 }
 0x360   : > { %v3786_v39 = vpop.f32.mrb[66].mxu1 }
 0x361   : > { %v4133_v48 = vadd.f32 %v4101_v15, %v4007_v46  ;;  %v3787_v16 = vadd.f32 %v7602_v62, %v3786_v39  ;;  %v3788_v13 = vpop.f32.mrb[67].mxu1  ;;  %v4107_v15 = vld [vmem:[%s5868_s17 + $0xb0] sm:$0xff] }
 0x363   : > { %4165 = vst.msk [vmem:[%s7612_s9 + $0x80] sm:$0xff] %vm223_vm0, %v4133_v48  ;;  %v4012_v1 = vadd.f32 %v7567_v7, %v3787_v16 }
 0x365   : > { %v4134_v63 = vadd.f32 %v4102_v19, %v4012_v1  ;;  %v4110_v1 = vld [vmem:[%s5868_s17 + $0xc8] sm:$0xff] }
 0x367   : > { %4166 = vst.msk [vmem:[%s7612_s9 + $0x88] sm:$0xff] %vm223_vm0, %v4134_v63 }
 0x368   : > { %v3791_v22 = vpop.f32.mrb[68].mxu1 }
 0x369   : > { %v3793_v4 = vpop.f32.mrb[69].mxu1  ;;  %v3792_v24 = vadd.f32 %v7602_v62, %v3791_v22 }
 0x36a   : > { %v4109_v4 = vld [vmem:[%s5868_s17 + $0xc0] sm:$0xff] }
 0x36c   : > { %v3796_v54 = vpop.f32.mrb[70].mxu1 }
 0x36d   : > { %v3798_v34 = vpop.f32.mrb[71].mxu1  ;;  %v3797_v52 = vadd.f32 %v7602_v62, %v3796_v54 }
 0x374   : > { %v3801_v14 = vpop.f32.mrb[72].mxu1 }
 0x375   : > { %v3803_v43 = vpop.f32.mrb[73].mxu1  ;;  %v3802_v56 = vadd.f32 %v7602_v62, %v3801_v14 }
 0x378   : > { %v3806_v23 = vpop.f32.mrb[74].mxu1 }
 0x379   : > { %v3808_v10 = vpop.f32.mrb[75].mxu1  ;;  %v3807_v53 = vadd.f32 %v7602_v62, %v3806_v23 }
 0x380   : > { %v3811_v6 = vpop.f32.mrb[76].mxu1 }
 0x381   : > { %v3813_v59 = vpop.f32.mrb[77].mxu1  ;;  %v3812_v30 = vadd.f32 %v7602_v62, %v3811_v6  ;;  %v4112_v6 = vld [vmem:[%s5868_s17 + $0xd8] sm:$0xff] }
 0x384   : > { %v3816_v50 = vpop.f32.mrb[78].mxu1 }
 0x385   : > { %v3818_v32 = vpop.f32.mrb[79].mxu1  ;;  %v3817_v58 = vadd.f32 %v7602_v62, %v3816_v50 }
 0x386   : > { %v4111_v32 = vld [vmem:[%s5868_s17 + $0xd0] sm:$0xff] }
 0x38c   : > { %v3821_v41 = vpop.f32.mrb[80].mxu1 }
 0x38d   : > { %v3823_v51 = vpop.f32.mrb[81].mxu1  ;;  %v3822_v16 = vadd.f32 %v7602_v62, %v3821_v41 }
 0x390   : > { %v3826_v29 = vpop.f32.mrb[82].mxu1 }
 0x391   : > { %v3828_v55 = vpop.f32.mrb[83].mxu1  ;;  %v3827_v39 = vadd.f32 %v7602_v62, %v3826_v29 }
 0x398   : > { %v3831_v7 = vpop.f32.mrb[84].mxu1 }
 0x399   : > { %v3833_v38 = vpop.f32.mrb[85].mxu1  ;;  %v3832_v43 = vadd.f32 %v7602_v62, %v3831_v7 }
 0x39c   : > { %v3836_v3 = vpop.f32.mrb[86].mxu1 }
 0x39d   : > { %v3838_v27 = vpop.f32.mrb[87].mxu1  ;;  %v3837_v34 = vadd.f32 %v7602_v62, %v3836_v3  ;;  %v4114_v3 = vld [vmem:[%s5868_s17 + $0xe8] sm:$0xff] }
 0x3a4   : > { %v7700_v28 = vpop.f32.mrb[88].mxu1 }
 0x3a5   : > { %v3843_v2 = vpop.f32.mrb[89].mxu1  ;;  %v3842_v55 = vadd.f32 %v7602_v62, %v7700_v28 }
 0x3ab   : > { %v3846_v36 = vpop.f32.mrb[90].mxu1 }
 0x3ac   : > { %v3848_v37 = vpop.f32.mrb[91].mxu1  ;;  %v3847_v51 = vadd.f32 %v7602_v62, %v3846_v36 }
 0x3ad   : > { %v4113_v37 = vld [vmem:[%s5868_s17 + $0xe0] sm:$0xff] }
 0x3af   : > { %v7702_v25 = vpop.f32.mrb[92].mxu1 }
 0x3b0   : > { %v3853_v0 = vpop.f32.mrb[93].mxu1 }
 0x3b3   : > { %v7704_v11 = vpop.f32.mrb[94].mxu1 }
 0x3b4   : > { %v3858_v12 = vpop.f32.mrb[95].mxu1  ;;  %v3857_v0 = vadd.f32 %v7602_v62, %v7704_v11 }
 0x3b5   : > { %v3852_v12 = vadd.f32 %v7602_v62, %v7702_v25 }
 0x3b7   : > { %v4502_v8 = vpop.f32.mrb[96].mxu1 }
 0x3b8   : > { %v4022_v31 = vadd.f32 %v4502_v8, %v3797_v52  ;;  %v4016_v35 = vpop.f32.mrb[97].mxu1  ;;  %v4116_v8 = vld [vmem:[%s5868_s17 + $0xf8] sm:$0xff] }
 0x3b9   : > { %v4017_v18 = vadd.f32 %v4016_v35, %v3792_v24  ;;  %v4115_v35 = vld [vmem:[%s5868_s17 + $0xf0] sm:$0xff]  ;;  %s5644_s17 = scalar_lea.vmem %s7768_s12, 4096 }
 0x3ba   : > { %v4136_v40 = vadd.f32 %v4104_v60, %v4022_v31  ;;  %p5645_p11 = scmp.ne.s32.totalorder %s7768_s12, %s5644_s17  ;;  %p5652_p1 = scmp.lt.s32.totalorder %s5650_s26, %s5644_s17 }
 0x3bb   : > { %v4135_v42 = vadd.f32 %v4103_v20, %v4017_v18  ;;  %v4505_v17 = vpop.f32.mrb[98].mxu1 }
 0x3bc   : > { %4168 = vst.msk [vmem:[%s7612_s9 + $0x98] sm:$0xff] %vm223_vm0, %v4136_v40  ;;  %v4032_v44 = vadd.f32 %v4505_v17, %v3807_v53  ;;  %v4026_v45 = vpop.f32.mrb[99].mxu1  ;;  %p5646_p12 = pnand %p5645_p11, %p5784_p5  ;;  %p5653_p2 = por %p5652_p1, %p5651_p0 }
 0x3bd   : > { %4167 = vst.msk [vmem:[%s7612_s9 + $0x90] sm:$0xff] %vm223_vm0, %v4135_v42  ;;  %v4027_v61 = vadd.f32 %v4026_v45, %v3802_v56 }
 0x3be   : > { %v4138_v5 = vadd.f32 %v4106_v26, %v4032_v44  ;;  %p5647_p13 = pneg %p5646_p12 }
 0x3bf   : > { %v4137_v33 = vadd.f32 %v4105_v47, %v4027_v61  ;;  %v4508_v21 = vpop.f32.mrb[100].mxu1 }
 0x3c0   : > { %4170 = vst.msk [vmem:[%s7612_s9 + $0xa8] sm:$0xff] %vm223_vm0, %v4138_v5  ;;  %v4042_v49 = vadd.f32 %v4508_v21, %v3817_v58  ;;  %v4036_v57 = vpop.f32.mrb[101].mxu1  ;;  %p5654_p3 = pnand %p5653_p2, %p5647_p13 }
 0x3c1   : > { %4169 = vst.msk [vmem:[%s7612_s9 + $0xa0] sm:$0xff] %vm223_vm0, %v4137_v33  ;;  %v4037_v46 = vadd.f32 %v4036_v57, %v3812_v30 }
 0x3c2   : > { %v4140_v48 = vadd.f32 %v4108_v9, %v4042_v49 }
 0x3c3   : > { %v4139_v13 = vadd.f32 %v4107_v15, %v4037_v46  ;;  %v4511_v19 = vpop.f32.mrb[102].mxu1 }
 0x3c4   : > { %4172 = vst.msk [vmem:[%s7612_s9 + $0xb8] sm:$0xff] %vm223_vm0, %v4140_v48  ;;  %v4052_v63 = vadd.f32 %v4511_v19, %v3827_v39  ;;  %v4046_v22 = vpop.f32.mrb[103].mxu1 }
 0x3c5   : > { %4171 = vst.msk [vmem:[%s7612_s9 + $0xb0] sm:$0xff] %vm223_vm0, %v4139_v13  ;;  %v4047_v54 = vadd.f32 %v4046_v22, %v3822_v16 }
 0x3c6   : > { %v4142_v14 = vadd.f32 %v4110_v1, %v4052_v63 }
 0x3c7   : > { %v4141_v23 = vadd.f32 %v4109_v4, %v4047_v54  ;;  %v4514_v10 = vpop.f32.mrb[104].mxu1 }
 0x3c8   : > { %4174 = vst.msk [vmem:[%s7612_s9 + $0xc8] sm:$0xff] %vm223_vm0, %v4142_v14  ;;  %v4062_v59 = vadd.f32 %v4514_v10, %v3837_v34  ;;  %v4056_v50 = vpop.f32.mrb[105].mxu1 }
 0x3c9   : > { %4173 = vst.msk [vmem:[%s7612_s9 + $0xc0] sm:$0xff] %vm223_vm0, %v4141_v23  ;;  %v4057_v41 = vadd.f32 %v4056_v50, %v3832_v43 }
 0x3ca   : > { %v4144_v29 = vadd.f32 %v4112_v6, %v4062_v59 }
 0x3cb   : > { %v4143_v7 = vadd.f32 %v4111_v32, %v4057_v41  ;;  %v4517_v38 = vpop.f32.mrb[106].mxu1 }
 0x3cc   : > { %4176 = vst.msk [vmem:[%s7612_s9 + $0xd8] sm:$0xff] %vm223_vm0, %v4144_v29  ;;  %v4072_v27 = vadd.f32 %v4517_v38, %v3847_v51  ;;  %v4066_v2 = vpop.f32.mrb[107].mxu1 }
 0x3cd   : > { %4175 = vst.msk [vmem:[%s7612_s9 + $0xd0] sm:$0xff] %vm223_vm0, %v4143_v7  ;;  %v4067_v36 = vadd.f32 %v4066_v2, %v3842_v55 }
 0x3ce   : > { %v4146_v28 = vadd.f32 %v4114_v3, %v4072_v27 }
 0x3cf   : > { %v4145_v52 = vadd.f32 %v4113_v37, %v4067_v36  ;;  %v4520_v24 = vpop.f32.mrb[108].mxu1 }
 0x3d0   : > { %4178 = vst.msk [vmem:[%s7612_s9 + $0xe8] sm:$0xff] %vm223_vm0, %v4146_v28  ;;  %v4082_v60 = vadd.f32 %v4520_v24, %v3857_v0  ;;  %v4076_v31 = vpop.f32.mrb[109].mxu1 }
 0x3d1   : > { %4177 = vst.msk [vmem:[%s7612_s9 + $0xe0] sm:$0xff] %vm223_vm0, %v4145_v52  ;;  %v4077_v11 = vadd.f32 %v4076_v31, %v3852_v12 }
 0x3d2   : > { %v4148_v20 = vadd.f32 %v4116_v8, %v4082_v60 }
 0x3d3   : > { %v4147_v62 = vadd.f32 %v4115_v35, %v4077_v11 }
 0x3d4   : > { %4180 = vst.msk [vmem:[%s7612_s9 + $0xf8] sm:$0xff] %vm223_vm0, %v4148_v20 }
 0x3d5   : > { %4179 = vst.msk [vmem:[%s7612_s9 + $0xf0] sm:$0xff] %vm223_vm0, %v4147_v62 }
 0x3d6   : > { %5657 = shalt.err (!%p5654_p3)
}
 0x3d7   : > { %s5658_s30 = scalar_lea.hbm %s7766_s15, 4096  ;;  %s5662_s23 = scalar_lea.hbm %s7822_s5, 8192 }
 0x3d8   : > { %p5659_p4 = scmp.ne.s32.totalorder %s7766_s15, %s5658_s30  ;;  %p5663_p9 = scmp.lt.u32.totalorder %s7766_s15, %s7822_s5 }
 0x3d9   : > { %p5664_p10 = scmp.lt.u32.totalorder %s5662_s23, %s5658_s30  ;;  %p5666_p12 = scmp.lt.u32.totalorder %s5658_s30, %s7766_s15 }
 0x3da   : > { %p5660_p7 = pnand %p5659_p4, %p5784_p5 }
 0x3db   : > { %p5665_p11 = por %p5664_p10, %p5663_p9 }
 0x3dc   : > { %p5661_p8 = pneg %p5660_p7 }
 0x3dd   : > { %p5667_p13 = por %p5666_p12, %p5665_p11 }
 0x3df   : > { %p5668_p0 = pnand %p5667_p13, %p5661_p8 }
 0x3e1   : > { %5671 = shalt.err (!%p5668_p0)
}
 0x3e2   : > { %s5714_s9 = smov 128   ;;  %s5715_s11 = smov 8  }
 0x3e3   : > { %4637 = dma.vmem_to_hbm [thread:$0]  (%p5784_p5), %s7768_s12, 4096, %s7766_s15, %s7776_s22, %s5714_s9, %s5714_s9, %s5715_s11  }
 0x3e4 PF: > { %p4643_p1 = scmp.ge.s32.totalorder %s5706_s21, 2  ;;  %s4210_s13 = sand.u32 1, %s5694_s18  }
 0x3e5   : > { %s4211_s14 = scalar_lea.sflag [#allocation4], %s4210_s13 }
 0x3e6   : > { %p4640_p2 = pnand %p4643_p1, %p5788_p6 }
 0x3e8   : > { %5689 = dma.done.wait (!%p4640_p2), %s4211_s14, 4096  }
 0x3e9   : > { %5691 = vsyncadd (!%p4640_p2), %s4211_s14, 4294963200  ;;  %p15_p3 = scmp.ge.s32.totalorder %s5771_s24, 4   ;;  %s7825_s18 = smov %s5698_s19 }
 0x3ea   : > { %s7826_s19 = smov %s5702_s20  ;;  %s7827_s20 = smov %s5782_s27 }
 0x3eb   : > { %s7828_s21 = smov %s5771_s24  ;;  %17 = sbr.rel (!%p15_p3) target bundleno = 3 (0x3), region = 77 }
 0x3f2   :  { %4216 = vsyncpa [#allocation4], 1 }
 0x3f3   :  { %4218 = vsyncpa [#allocation4 + $0x1], 1 }

</bundles_post_ra>
